<compile_context>
chip_gen: v7x
topology: tpu7x:2x2x1
jax: 0.10.0
libtpu: 0.0.40
codegen_flags: <defaults>
</compile_context>

<pallas_src>
import math
from functools import partial

import jax
import jax.numpy as jnp
from jax import lax
from jax.experimental import pallas as pl
from jax.experimental.pallas import tpu as pltpu

NEG_INF = -1000000000.0     # matches masked_fill(-1e9) / additive -1e9 in the reference
LN_EPS = 1e-5


# --------------------------------------------------------------------------
# in-kernel helpers
# --------------------------------------------------------------------------

def _layernorm(x, g, b):
    m = jnp.mean(x, axis=-1, keepdims=True)
    v = jnp.mean(jnp.square(x - m), axis=-1, keepdims=True)
    return (x - m) * lax.rsqrt(v + LN_EPS) * g + b


def _erf(x):
    # Abramowitz & Stegun 7.1.26 (|abs err| < 1.5e-7): matches torch's exact-erf
    # GELU to ~f32 precision without relying on a lax.erf lowering inside Mosaic.
    p = 0.3275911
    a1, a2, a3, a4, a5 = 0.254829592, -0.284496736, 1.421413741, -1.453152027, 1.061405429
    sgn = jnp.where(x >= 0.0, 1.0, -1.0)
    ax = jnp.abs(x)
    t = 1.0 / (1.0 + p * ax)
    poly = ((((a5 * t + a4) * t + a3) * t + a2) * t + a1) * t
    return sgn * (1.0 - poly * jnp.exp(-ax * ax))


def _gelu(x):
    return 0.5 * x * (1.0 + _erf(x * 0.7071067811865476))


def _softmax(s):
    m = jnp.max(s, axis=-1, keepdims=True)
    e = jnp.exp(s - m)
    return e / jnp.sum(e, axis=-1, keepdims=True)


# --------------------------------------------------------------------------
# fused kernel: one grid step = (batch b, hierarchy level lv, latent layer j)
#   j == 0      : encode cross-attention  -> lat_scr
#   every j     : latent transformer layer j on lat_scr
#   j == L - 1  : adjacency-guided decode + final norm + projection + skip,
#                 accumulate over levels; write out at the last level.
# --------------------------------------------------------------------------

def _cg_kernel(tpl_ref, mix_ref,
               x_ref, pos2_ref, lat0_ref, pn_ref,
               i2l_wq_ref, i2l_wkv_ref, i2l_wo_ref, i2l_bo_ref,
               lnorm_ref, l_wqkv_ref, l_wo_ref, l_bo_ref,
               m_w1_ref, m_b1_ref, m_w2_ref, m_b2_ref,
               seq_wqkv_ref, seq_wo_ref, seq_bo_ref,
               proj_w_ref, proj_b_ref,
               out_ref,
               lat_scr, acc_scr,
               *, S, H, NLmax, nh, hd, L, NLVL, scale):
    f32 = jnp.float32
    I = nh * hd
    lv = pl.program_id(1)
    j = pl.program_id(2)

    def mm(a, b):
        return jnp.dot(a, b, preferred_element_type=f32)

    def split_heads(x):      # (Lx, I) -> (nh, Lx, hd) via static slices (no reshape relayout)
        return jnp.stack([x[:, h * hd:(h + 1) * hd] for h in range(nh)], axis=0)

    def merge_heads(x):      # (nh, Lx, hd) -> (Lx, I)
        return jnp.concatenate([x[h] for h in range(nh)], axis=-1)

    def head_scores(q, k):   # one batched dot_general over the heads axis
        return jnp.einsum('hqd,hkd->hqk', split_heads(q), split_heads(k),
                          preferred_element_type=f32) * scale

    def head_out(a, v):      # one batched dot_general over the heads axis
        return merge_heads(jnp.einsum('hqk,hkd->hqd', a, split_heads(v),
                                      preferred_element_type=f32))

    x0 = x_ref[...]          # (S, H) raw hidden states (decode q/k/v input + skip)
    pn = pn_ref[...]         # (6, H): [norm1_g, norm1_b, norm2_g, norm2_b, final_g, final_b]

    # ---------------- encode: input -> latent cross-attention (j == 0 only) ---------
    @pl.when(j == 0)
    def _encode():
        tpl = tpl_ref[lv]
        # reference encode() contains a duplicated block -> input pos-emb added twice
        xpos = x0 + pos2_ref[...]
        kv_in = _layernorm(xpos, pn[2:3], pn[3:4])             # perceiver norm2
        kv = mm(kv_in, i2l_wkv_ref[...])                       # (S, 2I) fused K|V
        q_lat = _layernorm(lat0_ref[...], pn[0:1], pn[1:2])    # perceiver norm1
        q = mm(q_lat, i2l_wq_ref[...])                         # (NLmax, I)
        # fixed tokens-per-latent group mask, additive (exactly as in the reference)
        lat_id = lax.broadcasted_iota(jnp.int32, (NLmax, S), 0)
        tok_id = lax.broadcasted_iota(jnp.int32, (NLmax, S), 1)
        in_group = (tok_id >= lat_id * tpl) & (tok_id < (lat_id + 1) * tpl)
        bias = jnp.where(in_group, 0.0, NEG_INF)               # (NLmax, S)
        a_enc = _softmax(head_scores(q, kv[:, :I]) + bias[None])
        o_enc = head_out(a_enc, kv[:, I:])
        lat_scr[...] = mm(o_enc, i2l_wo_ref[...]) + i2l_bo_ref[...]

    # ---------------- latent transformer layer j (every step) -----------------------
    ln = lnorm_ref[...]                                        # (4, H)
    xl = lat_scr[...]                                          # (NLmax, H)
    xn = _layernorm(xl, ln[0:1], ln[1:2])
    qkv = mm(xn, l_wqkv_ref[...])                              # (NLmax, 3I) fused QKV
    lrow = lax.broadcasted_iota(jnp.int32, (NLmax, NLmax), 0)
    lcol = lax.broadcasted_iota(jnp.int32, (NLmax, NLmax), 1)
    lat_causal = (lcol > lrow)[None]
    s_lat = jnp.where(lat_causal, NEG_INF, head_scores(qkv[:, :I], qkv[:, I:2 * I]))
    a_lat = _softmax(s_lat)                                    # (nh, NLmax, NLmax)
    attn_o = mm(head_out(a_lat, qkv[:, 2 * I:]), l_wo_ref[...]) + l_bo_ref[...]
    x_mid = xl + attn_o
    h_mid = _gelu(mm(_layernorm(x_mid, ln[2:3], ln[3:4]), m_w1_ref[...]) + m_b1_ref[...])
    lat_scr[...] = x_mid + mm(h_mid, m_w2_ref[...]) + m_b2_ref[...]
    # NOTE: encode()'s final_norm(latents) is never consumed downstream -> skipped.

    # ---------------- decode + projection + skip + level integration (j == L-1) -----
    @pl.when(j == L - 1)
    def _decode():
        # F.interpolate(adj[:, :, :1, :1], mode='nearest') -> constant adj[b, h, 0, 0]
        adj00 = a_lat[:, 0:1, 0:1]                             # (nh, 1, 1) last layer
        mix = mix_ref[lv]
        om_adj = (1.0 - mix) * adj00
        q_in = _layernorm(x0, pn[0:1], pn[1:2])                # decode reuses perceiver norm1
        qkv_d = mm(q_in, seq_wqkv_ref[...])                    # (S, 3I)
        srow = lax.broadcasted_iota(jnp.int32, (S, S), 0)
        scol = lax.broadcasted_iota(jnp.int32, (S, S), 1)
        seq_causal = (scol > srow)[None]
        s_d = jnp.where(seq_causal, NEG_INF, head_scores(qkv_d[:, :I], qkv_d[:, I:2 * I]))
        local = _softmax(s_d)
        mixed = jnp.where(seq_causal, 0.0, mix * local + om_adj)
        mixed = mixed / (jnp.sum(mixed, axis=-1, keepdims=True) + 1e-9)  # normalize_after_mixing
        o_d = mm(head_out(mixed, qkv_d[:, 2 * I:]), seq_wo_ref[...]) + seq_bo_ref[...]
        dec = _layernorm(o_d, pn[4:5], pn[5:6])                # final_norm
        proj = mm(dec, proj_w_ref[...]) + proj_b_ref[...]      # level projection
        contrib = x0 + proj                                    # use_skip=True

        @pl.when(lv == 0)
        def _():
            acc_scr[...] = contrib

        @pl.when(lv > 0)
        def _():
            acc_scr[...] = acc_scr[...] + contrib

        @pl.when(lv == NLVL - 1)
        def _():
            # final "integrated_output = sum(levels) + hidden_states"
            # TODO(synk): for realistic H (>=128) present a lane-dense output slab.
            out_ref[...] = acc_scr[...] + x0


# --------------------------------------------------------------------------
# wrapper: one fused pallas_call for ALL hierarchy levels
# --------------------------------------------------------------------------

def cg_attention_forward(params, hidden_states, cfg_list):
    """Forward of CG_Attention_Interpolate as a single fused Pallas kernel."""
    f32 = jnp.float32
    B, S, H = hidden_states.shape
    NLVL = len(cfg_list)
    nh = cfg_list[0]['num_heads']
    hd = cfg_list[0]['head_dim']
    I = nh * hd
    pps = params['perceivers']
    projs = params['projections']
    L = len(pps[0]['latent_layers'])
    NLmax = max(cfg['num_latents'] for cfg in cfg_list)
    scale = hd ** (-0.5)

    for cfg in cfg_list:
        num_active = -(-S // cfg['tokens_per_latent'])
        if max(num_active // S, 1) != 1:
            # TODO(synk): general nearest-interp source sizes (>1) not implemented
            # (unreachable while tokens_per_latent >= 1, as enforced by the module).
            raise NotImplementedError("size_of_adj_matrix > 1 not supported")

    def stk(fn):           # (NLVL, ...) per-level stack
        return jnp.stack([jnp.asarray(fn(pp), f32) for pp in pps])

    def stk2(fn):          # (NLVL, L, ...) per-level / per-layer stack
        return jnp.stack([jnp.stack([jnp.asarray(fn(lp), f32)
                                     for lp in pp['latent_layers']]) for pp in pps])

    x = hidden_states.astype(f32)
    pos2 = stk(lambda pp: 2.0 * pp['input_pos_emb'][0, :S, :])                # (NLVL,S,H)
    lat0 = jnp.stack([
        jnp.pad(jnp.asarray((pp['latent_array'] + pp['latent_pos_emb'])[0], f32),
                ((0, NLmax - cfg['num_latents']), (0, 0)))
        for pp, cfg in zip(pps, cfg_list)])                                   # (NLVL,NLmax,H)
    pnorm = stk(lambda pp: jnp.stack([pp['norm1_g'], pp['norm1_b'],
                                      pp['norm2_g'], pp['norm2_b'],
                                      pp['final_g'], pp['final_b']]))         # (NLVL,6,H)

    i2l_wq = stk(lambda pp: pp['input_to_latent']['wq'])
    i2l_wkv = stk(lambda pp: jnp.concatenate([pp['input_to_latent']['wk'],
                                              pp['input_to_latent']['wv']], axis=1))
    i2l_wo = stk(lambda pp: pp['input_to_latent']['wo'])
    i2l_bo = stk(lambda pp: pp['input_to_latent']['bo'].reshape(1, -1))

    lnorm = stk2(lambda lp: jnp.stack([lp['norm1_g'], lp['norm1_b'],
                                       lp['norm2_g'], lp['norm2_b']]))        # (NLVL,L,4,H)
    l_wqkv = stk2(lambda lp: jnp.concatenate([lp['attn']['wq'], lp['attn']['wk'],
                                              lp['attn']['wv']], axis=1))
    l_wo = stk2(lambda lp: lp['attn']['wo'])
    l_bo = stk2(lambda lp: lp['attn']['bo'].reshape(1, -1))
    m_w1 = stk2(lambda lp: lp['mlp_w1'])
    m_b1 = stk2(lambda lp: lp['mlp_b1'].reshape(1, -1))
    m_w2 = stk2(lambda lp: lp['mlp_w2'])
    m_b2 = stk2(lambda lp: lp['mlp_b2'].reshape(1, -1))

    seq_wqkv = stk(lambda pp: jnp.concatenate([pp['seq_attn']['wq'], pp['seq_attn']['wk'],
                                               pp['seq_attn']['wv']], axis=1))
    seq_wo = stk(lambda pp: pp['seq_attn']['wo'])
    seq_bo = stk(lambda pp: pp['seq_attn']['bo'].reshape(1, -1))
    proj_w = jnp.stack([jnp.asarray(p['w'], f32) for p in projs])
    proj_b = jnp.stack([jnp.asarray(p['b'], f32).reshape(1, -1) for p in projs])

    tpl_arr = jnp.asarray([cfg['tokens_per_latent'] for cfg in cfg_list], jnp.int32)
    mix_arr = jnp.stack([jnp.asarray(pp['mix_weights'], f32).reshape(()) for pp in pps])

    smem = pl.BlockSpec(memory_space=pltpu.MemorySpace.SMEM)

    def lvl(*shape):       # per-level block, resident across the layer axis
        zeros = (0,) * len(shape)
        return pl.BlockSpec((None,) + shape, lambda b, lv, j: (lv,) + zeros)

    def lyr(*shape):       # per-(level, layer) block, streamed along the layer axis
        zeros = (0,) * len(shape)
        return pl.BlockSpec((None, None) + shape, lambda b, lv, j: (lv, j) + zeros)

    x_spec = pl.BlockSpec((None, S, H), lambda b, lv, j: (b, 0, 0))

    in_specs = [smem, smem,
                x_spec, lvl(S, H), lvl(NLmax, H), lvl(6, H),
                lvl(H, I), lvl(H, 2 * I), lvl(I, H), lvl(1, H),
                lyr(4, H), lyr(H, 3 * I), lyr(I, H), lyr(1, H),
                lyr(H, 4 * H), lyr(1, 4 * H), lyr(4 * H, H), lyr(1, H),
                lvl(H, 3 * I), lvl(I, H), lvl(1, H),
                lvl(H, H), lvl(1, H)]

    kernel = partial(_cg_kernel, S=S, H=H, NLmax=NLmax, nh=nh, hd=hd,
                     L=L, NLVL=NLVL, scale=scale)

    out = pl.pallas_call(
        kernel,
        out_shape=jax.ShapeDtypeStruct((B, S, H), f32),
        grid=(B, NLVL, L),
        in_specs=in_specs,
        out_specs=pl.BlockSpec((None, S, H), lambda b, lv, j: (b, 0, 0)),
        scratch_shapes=[pltpu.VMEM((NLmax, H), f32),   # latent state across layer steps
                        pltpu.VMEM((S, H), f32)],      # level-sum accumulator
        compiler_params=pltpu.CompilerParams(
            dimension_semantics=("parallel", "arbitrary", "arbitrary"),
            vmem_limit_bytes=32 * 1024 * 1024),
    )(tpl_arr, mix_arr, x, pos2, lat0, pnorm,
      i2l_wq, i2l_wkv, i2l_wo, i2l_bo,
      lnorm, l_wqkv, l_wo, l_bo, m_w1, m_b1, m_w2, m_b2,
      seq_wqkv, seq_wo, seq_bo, proj_w, proj_b)
    return out, None, None


# --------------------------------------------------------------------------
# Deterministic parameter initialization (shapes from the module __init__)
# --------------------------------------------------------------------------

def init_params(key, hidden, num_heads, head_dim, max_pos,
                num_latents_list, num_latent_layers, mix_initial):
    def lin(k, din, dout, bias=True):
        w = jax.random.normal(k, (din, dout), jnp.float32) / math.sqrt(din)
        b = jnp.zeros((dout,), jnp.float32) if bias else None
        return w, b

    def cross_attn(k):
        ks = jax.random.split(k, 4)
        inner = num_heads * head_dim
        wq, _ = lin(ks[0], hidden, inner, bias=False)
        wk, _ = lin(ks[1], hidden, inner, bias=False)
        wv, _ = lin(ks[2], hidden, inner, bias=False)
        wo, bo = lin(ks[3], inner, hidden)
        return {'wq': wq, 'wk': wk, 'wv': wv, 'wo': wo, 'bo': bo}

    def latent_layer(k):
        k1, k2, k3 = jax.random.split(k, 3)
        w1, b1 = lin(k2, hidden, 4 * hidden)
        w2, b2 = lin(k3, 4 * hidden, hidden)
        return {'attn': cross_attn(k1),
                'norm1_g': jnp.ones((hidden,)), 'norm1_b': jnp.zeros((hidden,)),
                'norm2_g': jnp.ones((hidden,)), 'norm2_b': jnp.zeros((hidden,)),
                'mlp_w1': w1, 'mlp_b1': b1, 'mlp_w2': w2, 'mlp_b2': b2}

    perceivers, projections = [], []
    level_keys = jax.random.split(key, len(num_latents_list))
    for li, nl in enumerate(num_latents_list):
        ks = jax.random.split(level_keys[li], 6 + num_latent_layers)
        pp = {
            'input_pos_emb': jax.random.normal(ks[0], (1, max_pos, hidden)) / math.sqrt(hidden),
            'latent_pos_emb': jax.random.normal(ks[1], (1, nl, hidden)) / math.sqrt(hidden),
            'latent_array': jax.random.normal(ks[2], (1, nl, hidden)) / math.sqrt(hidden),
            'input_to_latent': cross_attn(ks[3]),
            'seq_attn': cross_attn(ks[4]),
            'latent_layers': [latent_layer(ks[5 + j]) for j in range(num_latent_layers)],
            'mix_weights': jnp.asarray([mix_initial], jnp.float32),
            'norm1_g': jnp.ones((hidden,)), 'norm1_b': jnp.zeros((hidden,)),
            'norm2_g': jnp.ones((hidden,)), 'norm2_b': jnp.zeros((hidden,)),
            'final_g': jnp.ones((hidden,)), 'final_b': jnp.zeros((hidden,)),
        }
        pw, pb = lin(ks[5 + num_latent_layers], hidden, hidden)
        perceivers.append(pp)
        projections.append({'w': pw, 'b': pb})
    return {'perceivers': perceivers, 'projections': projections}


# --------------------------------------------------------------------------

if __name__ == "__main__":
    BATCH, SEQ, HIDDEN = 2, 16, 32
    NUM_HEADS = 4
    HEAD_DIM = HIDDEN // NUM_HEADS
    MAX_POS = 16                     # max_position_embeddings (== seq here)
    NUM_LATENTS_LIST = [8, 4]        # hierarchy levels (each < MAX_POS)
    NUM_LATENT_LAYERS = 2
    MIX_INITIAL = 0.7                # config.gnn_config.mix_weights_initial

    key = jax.random.PRNGKey(0)
    kparams, kx = jax.random.split(key)
    params = init_params(kparams, HIDDEN, NUM_HEADS, HEAD_DIM, MAX_POS,
                         NUM_LATENTS_LIST, NUM_LATENT_LAYERS, MIX_INITIAL)
    hidden_states = jax.random.normal(kx, (BATCH, SEQ, HIDDEN), jnp.float32)

    cfg_list = [{'num_latents': nl,
                 'tokens_per_latent': MAX_POS // nl,
                 'num_heads': NUM_HEADS,
                 'head_dim': HEAD_DIM,
                 'max_position_embeddings': MAX_POS}
                for nl in NUM_LATENTS_LIST]

    fwd = jax.jit(lambda p, x: cg_attention_forward(p, x, cfg_list))
    out, _, _ = fwd(params, hidden_states)
    out = jax.block_until_ready(out)
    assert out.shape == (BATCH, SEQ, HIDDEN)
    assert bool(jnp.all(jnp.isfinite(out)))
    print("KERNEL_OK")
</pallas_src>

<mosaic_0001>
module attributes {stable_mosaic.version = 11 : i64} {
  func.func @_cg_kernel(%arg0: i32, %arg1: i32, %arg2: i32, %arg3: memref<2xi32, #tpu.memory_space<smem>>, %arg4: memref<2xf32, #tpu.memory_space<smem>>, %arg5: memref<1x16x32xf32, #tpu.memory_space<vmem>>, %arg6: memref<1x16x32xf32, #tpu.memory_space<vmem>>, %arg7: memref<1x8x32xf32, #tpu.memory_space<vmem>>, %arg8: memref<1x6x32xf32, #tpu.memory_space<vmem>>, %arg9: memref<1x32x32xf32, #tpu.memory_space<vmem>>, %arg10: memref<1x32x64xf32, #tpu.memory_space<vmem>>, %arg11: memref<1x32x32xf32, #tpu.memory_space<vmem>>, %arg12: memref<1x1x32xf32, #tpu.memory_space<vmem>>, %arg13: memref<1x1x4x32xf32, #tpu.memory_space<vmem>>, %arg14: memref<1x1x32x96xf32, #tpu.memory_space<vmem>>, %arg15: memref<1x1x32x32xf32, #tpu.memory_space<vmem>>, %arg16: memref<1x1x1x32xf32, #tpu.memory_space<vmem>>, %arg17: memref<1x1x32x128xf32, #tpu.memory_space<vmem>>, %arg18: memref<1x1x1x128xf32, #tpu.memory_space<vmem>>, %arg19: memref<1x1x128x32xf32, #tpu.memory_space<vmem>>, %arg20: memref<1x1x1x32xf32, #tpu.memory_space<vmem>>, %arg21: memref<1x32x96xf32, #tpu.memory_space<vmem>>, %arg22: memref<1x32x32xf32, #tpu.memory_space<vmem>>, %arg23: memref<1x1x32xf32, #tpu.memory_space<vmem>>, %arg24: memref<1x32x32xf32, #tpu.memory_space<vmem>>, %arg25: memref<1x1x32xf32, #tpu.memory_space<vmem>>, %arg26: memref<1x16x32xf32, #tpu.memory_space<vmem>>, %arg27: memref<8x32xf32, #tpu.memory_space<vmem>>, %arg28: memref<16x32xf32, #tpu.memory_space<vmem>>) attributes {dimension_semantics = [#tpu.dimension_semantics<parallel>, #tpu.dimension_semantics<arbitrary>, #tpu.dimension_semantics<arbitrary>], iteration_bounds = array<i64: 2, 2, 2>, scalar_prefetch = 0 : i64, scratch_operands = 2 : i64, tpu.core_type = #tpu.core_type<tc>, window_params = [{transform_indices = @transform_0, window_bounds = array<i64: 2>}, {transform_indices = @transform_1, window_bounds = array<i64: 2>}, {transform_indices = @transform_2, window_bounds = array<i64: 1, 16, 32>}, {transform_indices = @transform_3, window_bounds = array<i64: 1, 16, 32>}, {transform_indices = @transform_4, window_bounds = array<i64: 1, 8, 32>}, {transform_indices = @transform_5, window_bounds = array<i64: 1, 6, 32>}, {transform_indices = @transform_6, window_bounds = array<i64: 1, 32, 32>}, {transform_indices = @transform_7, window_bounds = array<i64: 1, 32, 64>}, {transform_indices = @transform_8, window_bounds = array<i64: 1, 32, 32>}, {transform_indices = @transform_9, window_bounds = array<i64: 1, 1, 32>}, {transform_indices = @transform_10, window_bounds = array<i64: 1, 1, 4, 32>}, {transform_indices = @transform_11, window_bounds = array<i64: 1, 1, 32, 96>}, {transform_indices = @transform_12, window_bounds = array<i64: 1, 1, 32, 32>}, {transform_indices = @transform_13, window_bounds = array<i64: 1, 1, 1, 32>}, {transform_indices = @transform_14, window_bounds = array<i64: 1, 1, 32, 128>}, {transform_indices = @transform_15, window_bounds = array<i64: 1, 1, 1, 128>}, {transform_indices = @transform_16, window_bounds = array<i64: 1, 1, 128, 32>}, {transform_indices = @transform_17, window_bounds = array<i64: 1, 1, 1, 32>}, {transform_indices = @transform_18, window_bounds = array<i64: 1, 32, 96>}, {transform_indices = @transform_19, window_bounds = array<i64: 1, 32, 32>}, {transform_indices = @transform_20, window_bounds = array<i64: 1, 1, 32>}, {transform_indices = @transform_21, window_bounds = array<i64: 1, 32, 32>}, {transform_indices = @transform_22, window_bounds = array<i64: 1, 1, 32>}, {transform_indices = @transform_23, window_bounds = array<i64: 1, 16, 32>}]} {
    %c0 = arith.constant 0 : index
    %c0_0 = arith.constant 0 : index
    %c0_1 = arith.constant 0 : index
    %0 = vector.load %arg5[%c0, %c0_0, %c0_1] : memref<1x16x32xf32, #tpu.memory_space<vmem>>, vector<1x16x32xf32>
    %1 = vector.shape_cast %0 : vector<1x16x32xf32> to vector<16x32xf32>
    %c0_2 = arith.constant 0 : index
    %c0_3 = arith.constant 0 : index
    %c0_4 = arith.constant 0 : index
    %2 = vector.load %arg8[%c0_2, %c0_3, %c0_4] : memref<1x6x32xf32, #tpu.memory_space<vmem>>, vector<1x6x32xf32>
    %3 = vector.shape_cast %2 : vector<1x6x32xf32> to vector<6x32xf32>
    %c0_i32 = arith.constant 0 : i32
    %4 = arith.cmpi eq, %arg2, %c0_i32 : i32
    %5 = arith.extui %4 : i1 to i32
    %c0_i32_5 = arith.constant 0 : i32
    %6 = arith.cmpi ne, %5, %c0_i32_5 : i32
    scf.if %6 {
      %189 = arith.index_cast %arg1 : i32 to index
      %190 = memref.load %arg3[%189] : memref<2xi32, #tpu.memory_space<smem>>
      %c0_78 = arith.constant 0 : index
      %c0_79 = arith.constant 0 : index
      %c0_80 = arith.constant 0 : index
      %191 = vector.load %arg6[%c0_78, %c0_79, %c0_80] : memref<1x16x32xf32, #tpu.memory_space<vmem>>, vector<1x16x32xf32>
      %192 = vector.shape_cast %191 : vector<1x16x32xf32> to vector<16x32xf32>
      %193 = arith.addf %1, %192 : vector<16x32xf32>
      %194 = vector.extract_strided_slice %3 {offsets = [2, 0], sizes = [1, 32], strides = [1, 1]} : vector<6x32xf32> to vector<1x32xf32>
      %195 = vector.extract_strided_slice %3 {offsets = [3, 0], sizes = [1, 32], strides = [1, 1]} : vector<6x32xf32> to vector<1x32xf32>
      %cst_81 = arith.constant dense<0.000000e+00> : vector<16xf32>
      %196 = vector.multi_reduction <add>, %193, %cst_81 [1] : vector<16x32xf32> to vector<16xf32>
      %197 = vector.shape_cast %196 : vector<16xf32> to vector<16x1xf32>
      %cst_82 = arith.constant 3.200000e+01 : f32
      %198 = vector.broadcast %cst_82 : f32 to vector<16x1xf32>
      %199 = arith.divf %197, %198 : vector<16x1xf32>
      %200 = vector.broadcast %199 : vector<16x1xf32> to vector<16x32xf32>
      %201 = arith.subf %193, %200 : vector<16x32xf32>
      %202 = arith.mulf %201, %201 : vector<16x32xf32>
      %cst_83 = arith.constant dense<0.000000e+00> : vector<16xf32>
      %203 = vector.multi_reduction <add>, %202, %cst_83 [1] : vector<16x32xf32> to vector<16xf32>
      %204 = vector.shape_cast %203 : vector<16xf32> to vector<16x1xf32>
      %cst_84 = arith.constant 3.200000e+01 : f32
      %205 = vector.broadcast %cst_84 : f32 to vector<16x1xf32>
      %206 = arith.divf %204, %205 : vector<16x1xf32>
      %207 = vector.broadcast %199 : vector<16x1xf32> to vector<16x32xf32>
      %208 = arith.subf %193, %207 : vector<16x32xf32>
      %cst_85 = arith.constant 9.99999974E-6 : f32
      %209 = vector.broadcast %cst_85 : f32 to vector<16x1xf32>
      %210 = arith.addf %206, %209 : vector<16x1xf32>
      %211 = math.rsqrt %210 : vector<16x1xf32>
      %212 = vector.broadcast %211 : vector<16x1xf32> to vector<16x32xf32>
      %213 = arith.mulf %208, %212 : vector<16x32xf32>
      %214 = vector.broadcast %194 : vector<1x32xf32> to vector<16x32xf32>
      %215 = arith.mulf %213, %214 : vector<16x32xf32>
      %216 = vector.broadcast %195 : vector<1x32xf32> to vector<16x32xf32>
      %217 = arith.addf %215, %216 : vector<16x32xf32>
      %c0_86 = arith.constant 0 : index
      %c0_87 = arith.constant 0 : index
      %c0_88 = arith.constant 0 : index
      %218 = vector.load %arg10[%c0_86, %c0_87, %c0_88] : memref<1x32x64xf32, #tpu.memory_space<vmem>>, vector<1x32x64xf32>
      %219 = vector.shape_cast %218 : vector<1x32x64xf32> to vector<32x64xf32>
      %cst_89 = arith.constant dense<0.000000e+00> : vector<16x64xf32>
      %220 = tpu.matmul %217, %219, %cst_89 {dimension_numbers = #tpu.dot_dimension_numbers<[1], [0], [0], [1], [0, 0, 1, 1], [], []>} : vector<16x32xf32>, vector<32x64xf32>, vector<16x64xf32> -> vector<16x64xf32>
      %c0_90 = arith.constant 0 : index
      %c0_91 = arith.constant 0 : index
      %c0_92 = arith.constant 0 : index
      %221 = vector.load %arg7[%c0_90, %c0_91, %c0_92] : memref<1x8x32xf32, #tpu.memory_space<vmem>>, vector<1x8x32xf32>
      %222 = vector.shape_cast %221 : vector<1x8x32xf32> to vector<8x32xf32>
      %223 = vector.extract_strided_slice %3 {offsets = [0, 0], sizes = [1, 32], strides = [1, 1]} : vector<6x32xf32> to vector<1x32xf32>
      %224 = vector.extract_strided_slice %3 {offsets = [1, 0], sizes = [1, 32], strides = [1, 1]} : vector<6x32xf32> to vector<1x32xf32>
      %cst_93 = arith.constant dense<0.000000e+00> : vector<8xf32>
      %225 = vector.multi_reduction <add>, %222, %cst_93 [1] : vector<8x32xf32> to vector<8xf32>
      %226 = vector.shape_cast %225 : vector<8xf32> to vector<8x1xf32>
      %cst_94 = arith.constant 3.200000e+01 : f32
      %227 = vector.broadcast %cst_94 : f32 to vector<8x1xf32>
      %228 = arith.divf %226, %227 : vector<8x1xf32>
      %229 = vector.broadcast %228 : vector<8x1xf32> to vector<8x32xf32>
      %230 = arith.subf %222, %229 : vector<8x32xf32>
      %231 = arith.mulf %230, %230 : vector<8x32xf32>
      %cst_95 = arith.constant dense<0.000000e+00> : vector<8xf32>
      %232 = vector.multi_reduction <add>, %231, %cst_95 [1] : vector<8x32xf32> to vector<8xf32>
      %233 = vector.shape_cast %232 : vector<8xf32> to vector<8x1xf32>
      %cst_96 = arith.constant 3.200000e+01 : f32
      %234 = vector.broadcast %cst_96 : f32 to vector<8x1xf32>
      %235 = arith.divf %233, %234 : vector<8x1xf32>
      %236 = vector.broadcast %228 : vector<8x1xf32> to vector<8x32xf32>
      %237 = arith.subf %222, %236 : vector<8x32xf32>
      %cst_97 = arith.constant 9.99999974E-6 : f32
      %238 = vector.broadcast %cst_97 : f32 to vector<8x1xf32>
      %239 = arith.addf %235, %238 : vector<8x1xf32>
      %240 = math.rsqrt %239 : vector<8x1xf32>
      %241 = vector.broadcast %240 : vector<8x1xf32> to vector<8x32xf32>
      %242 = arith.mulf %237, %241 : vector<8x32xf32>
      %243 = vector.broadcast %223 : vector<1x32xf32> to vector<8x32xf32>
      %244 = arith.mulf %242, %243 : vector<8x32xf32>
      %245 = vector.broadcast %224 : vector<1x32xf32> to vector<8x32xf32>
      %246 = arith.addf %244, %245 : vector<8x32xf32>
      %c0_98 = arith.constant 0 : index
      %c0_99 = arith.constant 0 : index
      %c0_100 = arith.constant 0 : index
      %247 = vector.load %arg9[%c0_98, %c0_99, %c0_100] : memref<1x32x32xf32, #tpu.memory_space<vmem>>, vector<1x32x32xf32>
      %248 = vector.shape_cast %247 : vector<1x32x32xf32> to vector<32x32xf32>
      %cst_101 = arith.constant dense<0.000000e+00> : vector<8x32xf32>
      %249 = tpu.matmul %246, %248, %cst_101 {dimension_numbers = #tpu.dot_dimension_numbers<[1], [0], [0], [1], [0, 0, 1, 1], [], []>} : vector<8x32xf32>, vector<32x32xf32>, vector<8x32xf32> -> vector<8x32xf32>
      %250 = tpu.iota {dimensions = array<i32: 0>} : vector<8x16xi32>
      %251 = tpu.iota {dimensions = array<i32: 1>} : vector<8x16xi32>
      %252 = vector.broadcast %190 : i32 to vector<8x16xi32>
      %253 = arith.muli %250, %252 : vector<8x16xi32>
      %254 = arith.cmpi sge, %251, %253 : vector<8x16xi32>
      %c1_i32_102 = arith.constant 1 : i32
      %255 = vector.broadcast %c1_i32_102 : i32 to vector<8x16xi32>
      %256 = arith.addi %250, %255 : vector<8x16xi32>
      %257 = vector.broadcast %190 : i32 to vector<8x16xi32>
      %258 = arith.muli %256, %257 : vector<8x16xi32>
      %259 = arith.cmpi slt, %251, %258 : vector<8x16xi32>
      %260 = arith.andi %254, %259 : vector<8x16xi1>
      %cst_103 = arith.constant 0.000000e+00 : f32
      %cst_104 = arith.constant -1.000000e+09 : f32
      %261 = vector.broadcast %cst_103 : f32 to vector<8x16xf32>
      %262 = vector.broadcast %cst_104 : f32 to vector<8x16xf32>
      %263 = arith.select %260, %261, %262 : vector<8x16xi1>, vector<8x16xf32>
      %264 = vector.extract_strided_slice %220 {offsets = [0, 0], sizes = [16, 32], strides = [1, 1]} : vector<16x64xf32> to vector<16x32xf32>
      %265 = vector.extract_strided_slice %249 {offsets = [0, 0], sizes = [8, 8], strides = [1, 1]} : vector<8x32xf32> to vector<8x8xf32>
      %266 = vector.extract_strided_slice %249 {offsets = [0, 8], sizes = [8, 8], strides = [1, 1]} : vector<8x32xf32> to vector<8x8xf32>
      %267 = vector.extract_strided_slice %249 {offsets = [0, 16], sizes = [8, 8], strides = [1, 1]} : vector<8x32xf32> to vector<8x8xf32>
      %268 = vector.extract_strided_slice %249 {offsets = [0, 24], sizes = [8, 8], strides = [1, 1]} : vector<8x32xf32> to vector<8x8xf32>
      %269 = vector.shape_cast %265 : vector<8x8xf32> to vector<1x8x8xf32>
      %270 = vector.shape_cast %266 : vector<8x8xf32> to vector<1x8x8xf32>
      %271 = vector.shape_cast %267 : vector<8x8xf32> to vector<1x8x8xf32>
      %272 = vector.shape_cast %268 : vector<8x8xf32> to vector<1x8x8xf32>
      %273 = tpu.concatenate %269, %270, %271, %272 in 0 : vector<1x8x8xf32>, vector<1x8x8xf32>, vector<1x8x8xf32>, vector<1x8x8xf32> -> vector<4x8x8xf32>
      %274 = vector.extract_strided_slice %264 {offsets = [0, 0], sizes = [16, 8], strides = [1, 1]} : vector<16x32xf32> to vector<16x8xf32>
      %275 = vector.extract_strided_slice %264 {offsets = [0, 8], sizes = [16, 8], strides = [1, 1]} : vector<16x32xf32> to vector<16x8xf32>
      %276 = vector.extract_strided_slice %264 {offsets = [0, 16], sizes = [16, 8], strides = [1, 1]} : vector<16x32xf32> to vector<16x8xf32>
      %277 = vector.extract_strided_slice %264 {offsets = [0, 24], sizes = [16, 8], strides = [1, 1]} : vector<16x32xf32> to vector<16x8xf32>
      %278 = vector.shape_cast %274 : vector<16x8xf32> to vector<1x16x8xf32>
      %279 = vector.shape_cast %275 : vector<16x8xf32> to vector<1x16x8xf32>
      %280 = vector.shape_cast %276 : vector<16x8xf32> to vector<1x16x8xf32>
      %281 = vector.shape_cast %277 : vector<16x8xf32> to vector<1x16x8xf32>
      %282 = tpu.concatenate %278, %279, %280, %281 in 0 : vector<1x16x8xf32>, vector<1x16x8xf32>, vector<1x16x8xf32>, vector<1x16x8xf32> -> vector<4x16x8xf32>
      "tpu.trace_start"() <{level = 10 : i32, message = "hqd,hkd->hqk"}> : () -> ()
      %cst_105 = arith.constant dense<0.000000e+00> : vector<4x8x16xf32>
      %283 = tpu.matmul %273, %282, %cst_105 {dimension_numbers = #tpu.dot_dimension_numbers<[2], [2], [1], [1], [0, 0, 0, 1, 1, 1], [0], [0]>} : vector<4x8x8xf32>, vector<4x16x8xf32>, vector<4x8x16xf32> -> vector<4x8x16xf32>
      "tpu.trace_stop"() : () -> ()
      %cst_106 = arith.constant 0.353553385 : f32
      %284 = vector.broadcast %cst_106 : f32 to vector<4x8x16xf32>
      %285 = arith.mulf %283, %284 : vector<4x8x16xf32>
      %286 = vector.shape_cast %263 : vector<8x16xf32> to vector<1x8x16xf32>
      %287 = vector.broadcast %286 : vector<1x8x16xf32> to vector<4x8x16xf32>
      %288 = arith.addf %285, %287 : vector<4x8x16xf32>
      %cst_107 = arith.constant dense<0xFF800000> : vector<4x8xf32>
      %289 = vector.multi_reduction <maximumf>, %288, %cst_107 [2] : vector<4x8x16xf32> to vector<4x8xf32>
      %290 = vector.shape_cast %289 : vector<4x8xf32> to vector<4x8x1xf32>
      %291 = vector.broadcast %290 : vector<4x8x1xf32> to vector<4x8x16xf32>
      %292 = arith.subf %288, %291 : vector<4x8x16xf32>
      %293 = math.exp %292 : vector<4x8x16xf32>
      %cst_108 = arith.constant dense<0.000000e+00> : vector<4x8xf32>
      %294 = vector.multi_reduction <add>, %293, %cst_108 [2] : vector<4x8x16xf32> to vector<4x8xf32>
      %295 = vector.shape_cast %294 : vector<4x8xf32> to vector<4x8x1xf32>
      %296 = vector.broadcast %295 : vector<4x8x1xf32> to vector<4x8x16xf32>
      %297 = arith.divf %293, %296 : vector<4x8x16xf32>
      %298 = vector.extract_strided_slice %220 {offsets = [0, 32], sizes = [16, 32], strides = [1, 1]} : vector<16x64xf32> to vector<16x32xf32>
      %299 = vector.extract_strided_slice %298 {offsets = [0, 0], sizes = [16, 8], strides = [1, 1]} : vector<16x32xf32> to vector<16x8xf32>
      %300 = vector.extract_strided_slice %298 {offsets = [0, 8], sizes = [16, 8], strides = [1, 1]} : vector<16x32xf32> to vector<16x8xf32>
      %301 = vector.extract_strided_slice %298 {offsets = [0, 16], sizes = [16, 8], strides = [1, 1]} : vector<16x32xf32> to vector<16x8xf32>
      %302 = vector.extract_strided_slice %298 {offsets = [0, 24], sizes = [16, 8], strides = [1, 1]} : vector<16x32xf32> to vector<16x8xf32>
      %303 = vector.shape_cast %299 : vector<16x8xf32> to vector<1x16x8xf32>
      %304 = vector.shape_cast %300 : vector<16x8xf32> to vector<1x16x8xf32>
      %305 = vector.shape_cast %301 : vector<16x8xf32> to vector<1x16x8xf32>
      %306 = vector.shape_cast %302 : vector<16x8xf32> to vector<1x16x8xf32>
      %307 = tpu.concatenate %303, %304, %305, %306 in 0 : vector<1x16x8xf32>, vector<1x16x8xf32>, vector<1x16x8xf32>, vector<1x16x8xf32> -> vector<4x16x8xf32>
      "tpu.trace_start"() <{level = 10 : i32, message = "hqk,hkd->hqd"}> : () -> ()
      %cst_109 = arith.constant dense<0.000000e+00> : vector<4x8x8xf32>
      %308 = tpu.matmul %297, %307, %cst_109 {dimension_numbers = #tpu.dot_dimension_numbers<[2], [1], [1], [2], [0, 0, 0, 1, 1, 2], [0], [0]>} : vector<4x8x16xf32>, vector<4x16x8xf32>, vector<4x8x8xf32> -> vector<4x8x8xf32>
      "tpu.trace_stop"() : () -> ()
      %309 = vector.extract_strided_slice %308 {offsets = [0, 0, 0], sizes = [1, 8, 8], strides = [1, 1, 1]} : vector<4x8x8xf32> to vector<1x8x8xf32>
      %310 = vector.shape_cast %309 : vector<1x8x8xf32> to vector<8x8xf32>
      %311 = vector.extract_strided_slice %308 {offsets = [1, 0, 0], sizes = [1, 8, 8], strides = [1, 1, 1]} : vector<4x8x8xf32> to vector<1x8x8xf32>
      %312 = vector.shape_cast %311 : vector<1x8x8xf32> to vector<8x8xf32>
      %313 = vector.extract_strided_slice %308 {offsets = [2, 0, 0], sizes = [1, 8, 8], strides = [1, 1, 1]} : vector<4x8x8xf32> to vector<1x8x8xf32>
      %314 = vector.shape_cast %313 : vector<1x8x8xf32> to vector<8x8xf32>
      %315 = vector.extract_strided_slice %308 {offsets = [3, 0, 0], sizes = [1, 8, 8], strides = [1, 1, 1]} : vector<4x8x8xf32> to vector<1x8x8xf32>
      %316 = vector.shape_cast %315 : vector<1x8x8xf32> to vector<8x8xf32>
      %317 = tpu.concatenate %310, %312, %314, %316 in 1 : vector<8x8xf32>, vector<8x8xf32>, vector<8x8xf32>, vector<8x8xf32> -> vector<8x32xf32>
      %c0_110 = arith.constant 0 : index
      %c0_111 = arith.constant 0 : index
      %c0_112 = arith.constant 0 : index
      %318 = vector.load %arg11[%c0_110, %c0_111, %c0_112] : memref<1x32x32xf32, #tpu.memory_space<vmem>>, vector<1x32x32xf32>
      %319 = vector.shape_cast %318 : vector<1x32x32xf32> to vector<32x32xf32>
      %cst_113 = arith.constant dense<0.000000e+00> : vector<8x32xf32>
      %320 = tpu.matmul %317, %319, %cst_113 {dimension_numbers = #tpu.dot_dimension_numbers<[1], [0], [0], [1], [0, 0, 1, 1], [], []>} : vector<8x32xf32>, vector<32x32xf32>, vector<8x32xf32> -> vector<8x32xf32>
      %c0_114 = arith.constant 0 : index
      %c0_115 = arith.constant 0 : index
      %c0_116 = arith.constant 0 : index
      %321 = vector.load %arg12[%c0_114, %c0_115, %c0_116] : memref<1x1x32xf32, #tpu.memory_space<vmem>>, vector<1x1x32xf32>
      %322 = vector.shape_cast %321 : vector<1x1x32xf32> to vector<1x32xf32>
      %323 = vector.broadcast %322 : vector<1x32xf32> to vector<8x32xf32>
      %324 = arith.addf %320, %323 : vector<8x32xf32>
      %c0_117 = arith.constant 0 : index
      %c0_118 = arith.constant 0 : index
      %325 = vector.load %arg27[%c0_117, %c0_118] : memref<8x32xf32, #tpu.memory_space<vmem>>, vector<8x32xf32>
      tpu.vector_store %arg27[%c0_117, %c0_118], %324 {strides = array<i32>} : memref<8x32xf32, #tpu.memory_space<vmem>>, vector<8x32xf32>,
    } else {
    }
    %c0_6 = arith.constant 0 : index
    %c0_7 = arith.constant 0 : index
    %c0_8 = arith.constant 0 : index
    %c0_9 = arith.constant 0 : index
    %7 = vector.load %arg13[%c0_6, %c0_7, %c0_8, %c0_9] : memref<1x1x4x32xf32, #tpu.memory_space<vmem>>, vector<1x1x4x32xf32>
    %8 = vector.shape_cast %7 : vector<1x1x4x32xf32> to vector<4x32xf32>
    %c0_10 = arith.constant 0 : index
    %c0_11 = arith.constant 0 : index
    %9 = vector.load %arg27[%c0_10, %c0_11] : memref<8x32xf32, #tpu.memory_space<vmem>>, vector<8x32xf32>
    %10 = vector.extract_strided_slice %8 {offsets = [0, 0], sizes = [1, 32], strides = [1, 1]} : vector<4x32xf32> to vector<1x32xf32>
    %11 = vector.extract_strided_slice %8 {offsets = [1, 0], sizes = [1, 32], strides = [1, 1]} : vector<4x32xf32> to vector<1x32xf32>
    %cst = arith.constant dense<0.000000e+00> : vector<8xf32>
    %12 = vector.multi_reduction <add>, %9, %cst [1] : vector<8x32xf32> to vector<8xf32>
    %13 = vector.shape_cast %12 : vector<8xf32> to vector<8x1xf32>
    %cst_12 = arith.constant 3.200000e+01 : f32
    %14 = vector.broadcast %cst_12 : f32 to vector<8x1xf32>
    %15 = arith.divf %13, %14 : vector<8x1xf32>
    %16 = vector.broadcast %15 : vector<8x1xf32> to vector<8x32xf32>
    %17 = arith.subf %9, %16 : vector<8x32xf32>
    %18 = arith.mulf %17, %17 : vector<8x32xf32>
    %cst_13 = arith.constant dense<0.000000e+00> : vector<8xf32>
    %19 = vector.multi_reduction <add>, %18, %cst_13 [1] : vector<8x32xf32> to vector<8xf32>
    %20 = vector.shape_cast %19 : vector<8xf32> to vector<8x1xf32>
    %cst_14 = arith.constant 3.200000e+01 : f32
    %21 = vector.broadcast %cst_14 : f32 to vector<8x1xf32>
    %22 = arith.divf %20, %21 : vector<8x1xf32>
    %23 = vector.broadcast %15 : vector<8x1xf32> to vector<8x32xf32>
    %24 = arith.subf %9, %23 : vector<8x32xf32>
    %cst_15 = arith.constant 9.99999974E-6 : f32
    %25 = vector.broadcast %cst_15 : f32 to vector<8x1xf32>
    %26 = arith.addf %22, %25 : vector<8x1xf32>
    %27 = math.rsqrt %26 : vector<8x1xf32>
    %28 = vector.broadcast %27 : vector<8x1xf32> to vector<8x32xf32>
    %29 = arith.mulf %24, %28 : vector<8x32xf32>
    %30 = vector.broadcast %10 : vector<1x32xf32> to vector<8x32xf32>
    %31 = arith.mulf %29, %30 : vector<8x32xf32>
    %32 = vector.broadcast %11 : vector<1x32xf32> to vector<8x32xf32>
    %33 = arith.addf %31, %32 : vector<8x32xf32>
    %c0_16 = arith.constant 0 : index
    %c0_17 = arith.constant 0 : index
    %c0_18 = arith.constant 0 : index
    %c0_19 = arith.constant 0 : index
    %34 = vector.load %arg14[%c0_16, %c0_17, %c0_18, %c0_19] : memref<1x1x32x96xf32, #tpu.memory_space<vmem>>, vector<1x1x32x96xf32>
    %35 = vector.shape_cast %34 : vector<1x1x32x96xf32> to vector<32x96xf32>
    %cst_20 = arith.constant dense<0.000000e+00> : vector<8x96xf32>
    %36 = tpu.matmul %33, %35, %cst_20 {dimension_numbers = #tpu.dot_dimension_numbers<[1], [0], [0], [1], [0, 0, 1, 1], [], []>} : vector<8x32xf32>, vector<32x96xf32>, vector<8x96xf32> -> vector<8x96xf32>
    %37 = tpu.iota {dimensions = array<i32: 0>} : vector<8x8xi32>
    %38 = tpu.iota {dimensions = array<i32: 1>} : vector<8x8xi32>
    %39 = arith.cmpi sgt, %38, %37 : vector<8x8xi32>
    %40 = vector.shape_cast %39 : vector<8x8xi1> to vector<1x8x8xi1>
    %41 = vector.extract_strided_slice %36 {offsets = [0, 0], sizes = [8, 32], strides = [1, 1]} : vector<8x96xf32> to vector<8x32xf32>
    %42 = vector.extract_strided_slice %36 {offsets = [0, 32], sizes = [8, 32], strides = [1, 1]} : vector<8x96xf32> to vector<8x32xf32>
    %43 = vector.extract_strided_slice %41 {offsets = [0, 0], sizes = [8, 8], strides = [1, 1]} : vector<8x32xf32> to vector<8x8xf32>
    %44 = vector.extract_strided_slice %41 {offsets = [0, 8], sizes = [8, 8], strides = [1, 1]} : vector<8x32xf32> to vector<8x8xf32>
    %45 = vector.extract_strided_slice %41 {offsets = [0, 16], sizes = [8, 8], strides = [1, 1]} : vector<8x32xf32> to vector<8x8xf32>
    %46 = vector.extract_strided_slice %41 {offsets = [0, 24], sizes = [8, 8], strides = [1, 1]} : vector<8x32xf32> to vector<8x8xf32>
    %47 = vector.shape_cast %43 : vector<8x8xf32> to vector<1x8x8xf32>
    %48 = vector.shape_cast %44 : vector<8x8xf32> to vector<1x8x8xf32>
    %49 = vector.shape_cast %45 : vector<8x8xf32> to vector<1x8x8xf32>
    %50 = vector.shape_cast %46 : vector<8x8xf32> to vector<1x8x8xf32>
    %51 = tpu.concatenate %47, %48, %49, %50 in 0 : vector<1x8x8xf32>, vector<1x8x8xf32>, vector<1x8x8xf32>, vector<1x8x8xf32> -> vector<4x8x8xf32>
    %52 = vector.extract_strided_slice %42 {offsets = [0, 0], sizes = [8, 8], strides = [1, 1]} : vector<8x32xf32> to vector<8x8xf32>
    %53 = vector.extract_strided_slice %42 {offsets = [0, 8], sizes = [8, 8], strides = [1, 1]} : vector<8x32xf32> to vector<8x8xf32>
    %54 = vector.extract_strided_slice %42 {offsets = [0, 16], sizes = [8, 8], strides = [1, 1]} : vector<8x32xf32> to vector<8x8xf32>
    %55 = vector.extract_strided_slice %42 {offsets = [0, 24], sizes = [8, 8], strides = [1, 1]} : vector<8x32xf32> to vector<8x8xf32>
    %56 = vector.shape_cast %52 : vector<8x8xf32> to vector<1x8x8xf32>
    %57 = vector.shape_cast %53 : vector<8x8xf32> to vector<1x8x8xf32>
    %58 = vector.shape_cast %54 : vector<8x8xf32> to vector<1x8x8xf32>
    %59 = vector.shape_cast %55 : vector<8x8xf32> to vector<1x8x8xf32>
    %60 = tpu.concatenate %56, %57, %58, %59 in 0 : vector<1x8x8xf32>, vector<1x8x8xf32>, vector<1x8x8xf32>, vector<1x8x8xf32> -> vector<4x8x8xf32>
    "tpu.trace_start"() <{level = 10 : i32, message = "hqd,hkd->hqk"}> : () -> ()
    %cst_21 = arith.constant dense<0.000000e+00> : vector<4x8x8xf32>
    %61 = tpu.matmul %51, %60, %cst_21 {dimension_numbers = #tpu.dot_dimension_numbers<[2], [2], [1], [1], [0, 0, 0, 1, 1, 1], [0], [0]>} : vector<4x8x8xf32>, vector<4x8x8xf32>, vector<4x8x8xf32> -> vector<4x8x8xf32>
    "tpu.trace_stop"() : () -> ()
    %cst_22 = arith.constant 0.353553385 : f32
    %62 = vector.broadcast %cst_22 : f32 to vector<4x8x8xf32>
    %63 = arith.mulf %61, %62 : vector<4x8x8xf32>
    %cst_23 = arith.constant -1.000000e+09 : f32
    %64 = vector.shape_cast %40 : vector<1x8x8xi1> to vector<1x8x8xi1>
    %65 = vector.broadcast %64 : vector<1x8x8xi1> to vector<4x8x8xi1>
    %66 = vector.broadcast %cst_23 : f32 to vector<4x8x8xf32>
    %67 = arith.select %65, %66, %63 : vector<4x8x8xi1>, vector<4x8x8xf32>
    %cst_24 = arith.constant dense<0xFF800000> : vector<4x8xf32>
    %68 = vector.multi_reduction <maximumf>, %67, %cst_24 [2] : vector<4x8x8xf32> to vector<4x8xf32>
    %69 = vector.shape_cast %68 : vector<4x8xf32> to vector<4x8x1xf32>
    %70 = vector.broadcast %69 : vector<4x8x1xf32> to vector<4x8x8xf32>
    %71 = arith.subf %67, %70 : vector<4x8x8xf32>
    %72 = math.exp %71 : vector<4x8x8xf32>
    %cst_25 = arith.constant dense<0.000000e+00> : vector<4x8xf32>
    %73 = vector.multi_reduction <add>, %72, %cst_25 [2] : vector<4x8x8xf32> to vector<4x8xf32>
    %74 = vector.shape_cast %73 : vector<4x8xf32> to vector<4x8x1xf32>
    %75 = vector.broadcast %74 : vector<4x8x1xf32> to vector<4x8x8xf32>
    %76 = arith.divf %72, %75 : vector<4x8x8xf32>
    %77 = vector.extract_strided_slice %36 {offsets = [0, 64], sizes = [8, 32], strides = [1, 1]} : vector<8x96xf32> to vector<8x32xf32>
    %78 = vector.extract_strided_slice %77 {offsets = [0, 0], sizes = [8, 8], strides = [1, 1]} : vector<8x32xf32> to vector<8x8xf32>
    %79 = vector.extract_strided_slice %77 {offsets = [0, 8], sizes = [8, 8], strides = [1, 1]} : vector<8x32xf32> to vector<8x8xf32>
    %80 = vector.extract_strided_slice %77 {offsets = [0, 16], sizes = [8, 8], strides = [1, 1]} : vector<8x32xf32> to vector<8x8xf32>
    %81 = vector.extract_strided_slice %77 {offsets = [0, 24], sizes = [8, 8], strides = [1, 1]} : vector<8x32xf32> to vector<8x8xf32>
    %82 = vector.shape_cast %78 : vector<8x8xf32> to vector<1x8x8xf32>
    %83 = vector.shape_cast %79 : vector<8x8xf32> to vector<1x8x8xf32>
    %84 = vector.shape_cast %80 : vector<8x8xf32> to vector<1x8x8xf32>
    %85 = vector.shape_cast %81 : vector<8x8xf32> to vector<1x8x8xf32>
    %86 = tpu.concatenate %82, %83, %84, %85 in 0 : vector<1x8x8xf32>, vector<1x8x8xf32>, vector<1x8x8xf32>, vector<1x8x8xf32> -> vector<4x8x8xf32>
    "tpu.trace_start"() <{level = 10 : i32, message = "hqk,hkd->hqd"}> : () -> ()
    %cst_26 = arith.constant dense<0.000000e+00> : vector<4x8x8xf32>
    %87 = tpu.matmul %76, %86, %cst_26 {dimension_numbers = #tpu.dot_dimension_numbers<[2], [1], [1], [2], [0, 0, 0, 1, 1, 2], [0], [0]>} : vector<4x8x8xf32>, vector<4x8x8xf32>, vector<4x8x8xf32> -> vector<4x8x8xf32>
    "tpu.trace_stop"() : () -> ()
    %88 = vector.extract_strided_slice %87 {offsets = [0, 0, 0], sizes = [1, 8, 8], strides = [1, 1, 1]} : vector<4x8x8xf32> to vector<1x8x8xf32>
    %89 = vector.shape_cast %88 : vector<1x8x8xf32> to vector<8x8xf32>
    %90 = vector.extract_strided_slice %87 {offsets = [1, 0, 0], sizes = [1, 8, 8], strides = [1, 1, 1]} : vector<4x8x8xf32> to vector<1x8x8xf32>
    %91 = vector.shape_cast %90 : vector<1x8x8xf32> to vector<8x8xf32>
    %92 = vector.extract_strided_slice %87 {offsets = [2, 0, 0], sizes = [1, 8, 8], strides = [1, 1, 1]} : vector<4x8x8xf32> to vector<1x8x8xf32>
    %93 = vector.shape_cast %92 : vector<1x8x8xf32> to vector<8x8xf32>
    %94 = vector.extract_strided_slice %87 {offsets = [3, 0, 0], sizes = [1, 8, 8], strides = [1, 1, 1]} : vector<4x8x8xf32> to vector<1x8x8xf32>
    %95 = vector.shape_cast %94 : vector<1x8x8xf32> to vector<8x8xf32>
    %96 = tpu.concatenate %89, %91, %93, %95 in 1 : vector<8x8xf32>, vector<8x8xf32>, vector<8x8xf32>, vector<8x8xf32> -> vector<8x32xf32>
    %c0_27 = arith.constant 0 : index
    %c0_28 = arith.constant 0 : index
    %c0_29 = arith.constant 0 : index
    %c0_30 = arith.constant 0 : index
    %97 = vector.load %arg15[%c0_27, %c0_28, %c0_29, %c0_30] : memref<1x1x32x32xf32, #tpu.memory_space<vmem>>, vector<1x1x32x32xf32>
    %98 = vector.shape_cast %97 : vector<1x1x32x32xf32> to vector<32x32xf32>
    %cst_31 = arith.constant dense<0.000000e+00> : vector<8x32xf32>
    %99 = tpu.matmul %96, %98, %cst_31 {dimension_numbers = #tpu.dot_dimension_numbers<[1], [0], [0], [1], [0, 0, 1, 1], [], []>} : vector<8x32xf32>, vector<32x32xf32>, vector<8x32xf32> -> vector<8x32xf32>
    %c0_32 = arith.constant 0 : index
    %c0_33 = arith.constant 0 : index
    %c0_34 = arith.constant 0 : index
    %c0_35 = arith.constant 0 : index
    %100 = vector.load %arg16[%c0_32, %c0_33, %c0_34, %c0_35] : memref<1x1x1x32xf32, #tpu.memory_space<vmem>>, vector<1x1x1x32xf32>
    %101 = vector.shape_cast %100 : vector<1x1x1x32xf32> to vector<1x32xf32>
    %102 = vector.broadcast %101 : vector<1x32xf32> to vector<8x32xf32>
    %103 = arith.addf %99, %102 : vector<8x32xf32>
    %104 = arith.addf %9, %103 : vector<8x32xf32>
    %105 = vector.extract_strided_slice %8 {offsets = [2, 0], sizes = [1, 32], strides = [1, 1]} : vector<4x32xf32> to vector<1x32xf32>
    %106 = vector.extract_strided_slice %8 {offsets = [3, 0], sizes = [1, 32], strides = [1, 1]} : vector<4x32xf32> to vector<1x32xf32>
    %cst_36 = arith.constant dense<0.000000e+00> : vector<8xf32>
    %107 = vector.multi_reduction <add>, %104, %cst_36 [1] : vector<8x32xf32> to vector<8xf32>
    %108 = vector.shape_cast %107 : vector<8xf32> to vector<8x1xf32>
    %cst_37 = arith.constant 3.200000e+01 : f32
    %109 = vector.broadcast %cst_37 : f32 to vector<8x1xf32>
    %110 = arith.divf %108, %109 : vector<8x1xf32>
    %111 = vector.broadcast %110 : vector<8x1xf32> to vector<8x32xf32>
    %112 = arith.subf %104, %111 : vector<8x32xf32>
    %113 = arith.mulf %112, %112 : vector<8x32xf32>
    %cst_38 = arith.constant dense<0.000000e+00> : vector<8xf32>
    %114 = vector.multi_reduction <add>, %113, %cst_38 [1] : vector<8x32xf32> to vector<8xf32>
    %115 = vector.shape_cast %114 : vector<8xf32> to vector<8x1xf32>
    %cst_39 = arith.constant 3.200000e+01 : f32
    %116 = vector.broadcast %cst_39 : f32 to vector<8x1xf32>
    %117 = arith.divf %115, %116 : vector<8x1xf32>
    %118 = vector.broadcast %110 : vector<8x1xf32> to vector<8x32xf32>
    %119 = arith.subf %104, %118 : vector<8x32xf32>
    %cst_40 = arith.constant 9.99999974E-6 : f32
    %120 = vector.broadcast %cst_40 : f32 to vector<8x1xf32>
    %121 = arith.addf %117, %120 : vector<8x1xf32>
    %122 = math.rsqrt %121 : vector<8x1xf32>
    %123 = vector.broadcast %122 : vector<8x1xf32> to vector<8x32xf32>
    %124 = arith.mulf %119, %123 : vector<8x32xf32>
    %125 = vector.broadcast %105 : vector<1x32xf32> to vector<8x32xf32>
    %126 = arith.mulf %124, %125 : vector<8x32xf32>
    %127 = vector.broadcast %106 : vector<1x32xf32> to vector<8x32xf32>
    %128 = arith.addf %126, %127 : vector<8x32xf32>
    %c0_41 = arith.constant 0 : index
    %c0_42 = arith.constant 0 : index
    %c0_43 = arith.constant 0 : index
    %c0_44 = arith.constant 0 : index
    %129 = vector.load %arg17[%c0_41, %c0_42, %c0_43, %c0_44] : memref<1x1x32x128xf32, #tpu.memory_space<vmem>>, vector<1x1x32x128xf32>
    %130 = vector.shape_cast %129 : vector<1x1x32x128xf32> to vector<32x128xf32>
    %cst_45 = arith.constant dense<0.000000e+00> : vector<8x128xf32>
    %131 = tpu.matmul %128, %130, %cst_45 {dimension_numbers = #tpu.dot_dimension_numbers<[1], [0], [0], [1], [0, 0, 1, 1], [], []>} : vector<8x32xf32>, vector<32x128xf32>, vector<8x128xf32> -> vector<8x128xf32>
    %c0_46 = arith.constant 0 : index
    %c0_47 = arith.constant 0 : index
    %c0_48 = arith.constant 0 : index
    %c0_49 = arith.constant 0 : index
    %132 = vector.load %arg18[%c0_46, %c0_47, %c0_48, %c0_49] : memref<1x1x1x128xf32, #tpu.memory_space<vmem>>, vector<1x1x1x128xf32>
    %133 = vector.shape_cast %132 : vector<1x1x1x128xf32> to vector<1x128xf32>
    %134 = vector.broadcast %133 : vector<1x128xf32> to vector<8x128xf32>
    %135 = arith.addf %131, %134 : vector<8x128xf32>
    %cst_50 = arith.constant 5.000000e-01 : f32
    %136 = vector.broadcast %cst_50 : f32 to vector<8x128xf32>
    %137 = arith.mulf %136, %135 : vector<8x128xf32>
    %cst_51 = arith.constant 0.707106769 : f32
    %138 = vector.broadcast %cst_51 : f32 to vector<8x128xf32>
    %139 = arith.mulf %135, %138 : vector<8x128xf32>
    %cst_52 = arith.constant 0.000000e+00 : f32
    %140 = vector.broadcast %cst_52 : f32 to vector<8x128xf32>
    %141 = arith.cmpf oge, %139, %140 : vector<8x128xf32>
    %cst_53 = arith.constant 1.000000e+00 : f32
    %cst_54 = arith.constant -1.000000e+00 : f32
    %142 = vector.broadcast %cst_53 : f32 to vector<8x128xf32>
    %143 = vector.broadcast %cst_54 : f32 to vector<8x128xf32>
    %144 = arith.select %141, %142, %143 : vector<8x128xi1>, vector<8x128xf32>
    %145 = math.absf %139 : vector<8x128xf32>
    %cst_55 = arith.constant 0.327591091 : f32
    %146 = vector.broadcast %cst_55 : f32 to vector<8x128xf32>
    %147 = arith.mulf %146, %145 : vector<8x128xf32>
    %cst_56 = arith.constant 1.000000e+00 : f32
    %148 = vector.broadcast %cst_56 : f32 to vector<8x128xf32>
    %149 = arith.addf %148, %147 : vector<8x128xf32>
    %cst_57 = arith.constant 1.000000e+00 : f32
    %150 = vector.broadcast %cst_57 : f32 to vector<8x128xf32>
    %151 = arith.divf %150, %149 : vector<8x128xf32>
    %cst_58 = arith.constant 1.06140542 : f32
    %152 = vector.broadcast %cst_58 : f32 to vector<8x128xf32>
    %153 = arith.mulf %152, %151 : vector<8x128xf32>
    %cst_59 = arith.constant -1.45315206 : f32
    %154 = vector.broadcast %cst_59 : f32 to vector<8x128xf32>
    %155 = arith.addf %153, %154 : vector<8x128xf32>
    %156 = arith.mulf %155, %151 : vector<8x128xf32>
    %cst_60 = arith.constant 1.42141378 : f32
    %157 = vector.broadcast %cst_60 : f32 to vector<8x128xf32>
    %158 = arith.addf %156, %157 : vector<8x128xf32>
    %159 = arith.mulf %158, %151 : vector<8x128xf32>
    %cst_61 = arith.constant -0.284496725 : f32
    %160 = vector.broadcast %cst_61 : f32 to vector<8x128xf32>
    %161 = arith.addf %159, %160 : vector<8x128xf32>
    %162 = arith.mulf %161, %151 : vector<8x128xf32>
    %cst_62 = arith.constant 0.254829586 : f32
    %163 = vector.broadcast %cst_62 : f32 to vector<8x128xf32>
    %164 = arith.addf %162, %163 : vector<8x128xf32>
    %165 = arith.mulf %164, %151 : vector<8x128xf32>
    %cst_63 = arith.constant 0.000000e+00 : f32
    %166 = vector.broadcast %cst_63 : f32 to vector<8x128xf32>
    %167 = arith.subf %166, %145 : vector<8x128xf32>
    %168 = arith.mulf %167, %145 : vector<8x128xf32>
    %169 = math.exp %168 : vector<8x128xf32>
    %170 = arith.mulf %165, %169 : vector<8x128xf32>
    %cst_64 = arith.constant 1.000000e+00 : f32
    %171 = vector.broadcast %cst_64 : f32 to vector<8x128xf32>
    %172 = arith.subf %171, %170 : vector<8x128xf32>
    %173 = arith.mulf %144, %172 : vector<8x128xf32>
    %cst_65 = arith.constant 1.000000e+00 : f32
    %174 = vector.broadcast %cst_65 : f32 to vector<8x128xf32>
    %175 = arith.addf %174, %173 : vector<8x128xf32>
    %176 = arith.mulf %137, %175 : vector<8x128xf32>
    %c0_66 = arith.constant 0 : index
    %c0_67 = arith.constant 0 : index
    %c0_68 = arith.constant 0 : index
    %c0_69 = arith.constant 0 : index
    %177 = vector.load %arg19[%c0_66, %c0_67, %c0_68, %c0_69] : memref<1x1x128x32xf32, #tpu.memory_space<vmem>>, vector<1x1x128x32xf32>
    %178 = vector.shape_cast %177 : vector<1x1x128x32xf32> to vector<128x32xf32>
    %cst_70 = arith.constant dense<0.000000e+00> : vector<8x32xf32>
    %179 = tpu.matmul %176, %178, %cst_70 {dimension_numbers = #tpu.dot_dimension_numbers<[1], [0], [0], [1], [0, 0, 1, 1], [], []>} : vector<8x128xf32>, vector<128x32xf32>, vector<8x32xf32> -> vector<8x32xf32>
    %180 = arith.addf %104, %179 : vector<8x32xf32>
    %c0_71 = arith.constant 0 : index
    %c0_72 = arith.constant 0 : index
    %c0_73 = arith.constant 0 : index
    %c0_74 = arith.constant 0 : index
    %181 = vector.load %arg20[%c0_71, %c0_72, %c0_73, %c0_74] : memref<1x1x1x32xf32, #tpu.memory_space<vmem>>, vector<1x1x1x32xf32>
    %182 = vector.shape_cast %181 : vector<1x1x1x32xf32> to vector<1x32xf32>
    %183 = vector.broadcast %182 : vector<1x32xf32> to vector<8x32xf32>
    %184 = arith.addf %180, %183 : vector<8x32xf32>
    %c0_75 = arith.constant 0 : index
    %c0_76 = arith.constant 0 : index
    %185 = vector.load %arg27[%c0_75, %c0_76] : memref<8x32xf32, #tpu.memory_space<vmem>>, vector<8x32xf32>
    tpu.vector_store %arg27[%c0_75, %c0_76], %184 {strides = array<i32>} : memref<8x32xf32, #tpu.memory_space<vmem>>, vector<8x32xf32>,
    %c1_i32 = arith.constant 1 : i32
    %186 = arith.cmpi eq, %arg2, %c1_i32 : i32
    %187 = arith.extui %186 : i1 to i32
    %c0_i32_77 = arith.constant 0 : i32
    %188 = arith.cmpi ne, %187, %c0_i32_77 : i32
    scf.if %188 {
      %189 = vector.extract_strided_slice %76 {offsets = [0, 0, 0], sizes = [4, 1, 1], strides = [1, 1, 1]} : vector<4x8x8xf32> to vector<4x1x1xf32>
      %190 = arith.index_cast %arg1 : i32 to index
      %191 = memref.load %arg4[%190] : memref<2xf32, #tpu.memory_space<smem>>
      %cst_78 = arith.constant 1.000000e+00 : f32
      %192 = arith.subf %cst_78, %191 : f32
      %193 = vector.broadcast %192 : f32 to vector<4x1x1xf32>
      %194 = arith.mulf %193, %189 : vector<4x1x1xf32>
      %195 = vector.extract_strided_slice %3 {offsets = [0, 0], sizes = [1, 32], strides = [1, 1]} : vector<6x32xf32> to vector<1x32xf32>
      %196 = vector.extract_strided_slice %3 {offsets = [1, 0], sizes = [1, 32], strides = [1, 1]} : vector<6x32xf32> to vector<1x32xf32>
      %cst_79 = arith.constant dense<0.000000e+00> : vector<16xf32>
      %197 = vector.multi_reduction <add>, %1, %cst_79 [1] : vector<16x32xf32> to vector<16xf32>
      %198 = vector.shape_cast %197 : vector<16xf32> to vector<16x1xf32>
      %cst_80 = arith.constant 3.200000e+01 : f32
      %199 = vector.broadcast %cst_80 : f32 to vector<16x1xf32>
      %200 = arith.divf %198, %199 : vector<16x1xf32>
      %201 = vector.broadcast %200 : vector<16x1xf32> to vector<16x32xf32>
      %202 = arith.subf %1, %201 : vector<16x32xf32>
      %203 = arith.mulf %202, %202 : vector<16x32xf32>
      %cst_81 = arith.constant dense<0.000000e+00> : vector<16xf32>
      %204 = vector.multi_reduction <add>, %203, %cst_81 [1] : vector<16x32xf32> to vector<16xf32>
      %205 = vector.shape_cast %204 : vector<16xf32> to vector<16x1xf32>
      %cst_82 = arith.constant 3.200000e+01 : f32
      %206 = vector.broadcast %cst_82 : f32 to vector<16x1xf32>
      %207 = arith.divf %205, %206 : vector<16x1xf32>
      %208 = vector.broadcast %200 : vector<16x1xf32> to vector<16x32xf32>
      %209 = arith.subf %1, %208 : vector<16x32xf32>
      %cst_83 = arith.constant 9.99999974E-6 : f32
      %210 = vector.broadcast %cst_83 : f32 to vector<16x1xf32>
      %211 = arith.addf %207, %210 : vector<16x1xf32>
      %212 = math.rsqrt %211 : vector<16x1xf32>
      %213 = vector.broadcast %212 : vector<16x1xf32> to vector<16x32xf32>
      %214 = arith.mulf %209, %213 : vector<16x32xf32>
      %215 = vector.broadcast %195 : vector<1x32xf32> to vector<16x32xf32>
      %216 = arith.mulf %214, %215 : vector<16x32xf32>
      %217 = vector.broadcast %196 : vector<1x32xf32> to vector<16x32xf32>
      %218 = arith.addf %216, %217 : vector<16x32xf32>
      %c0_84 = arith.constant 0 : index
      %c0_85 = arith.constant 0 : index
      %c0_86 = arith.constant 0 : index
      %219 = vector.load %arg21[%c0_84, %c0_85, %c0_86] : memref<1x32x96xf32, #tpu.memory_space<vmem>>, vector<1x32x96xf32>
      %220 = vector.shape_cast %219 : vector<1x32x96xf32> to vector<32x96xf32>
      %cst_87 = arith.constant dense<0.000000e+00> : vector<16x96xf32>
      %221 = tpu.matmul %218, %220, %cst_87 {dimension_numbers = #tpu.dot_dimension_numbers<[1], [0], [0], [1], [0, 0, 1, 1], [], []>} : vector<16x32xf32>, vector<32x96xf32>, vector<16x96xf32> -> vector<16x96xf32>
      %222 = tpu.iota {dimensions = array<i32: 0>} : vector<16x16xi32>
      %223 = tpu.iota {dimensions = array<i32: 1>} : vector<16x16xi32>
      %224 = arith.cmpi sgt, %223, %222 : vector<16x16xi32>
      %225 = vector.shape_cast %224 : vector<16x16xi1> to vector<1x16x16xi1>
      %226 = vector.extract_strided_slice %221 {offsets = [0, 0], sizes = [16, 32], strides = [1, 1]} : vector<16x96xf32> to vector<16x32xf32>
      %227 = vector.extract_strided_slice %221 {offsets = [0, 32], sizes = [16, 32], strides = [1, 1]} : vector<16x96xf32> to vector<16x32xf32>
      %228 = vector.extract_strided_slice %226 {offsets = [0, 0], sizes = [16, 8], strides = [1, 1]} : vector<16x32xf32> to vector<16x8xf32>
      %229 = vector.extract_strided_slice %226 {offsets = [0, 8], sizes = [16, 8], strides = [1, 1]} : vector<16x32xf32> to vector<16x8xf32>
      %230 = vector.extract_strided_slice %226 {offsets = [0, 16], sizes = [16, 8], strides = [1, 1]} : vector<16x32xf32> to vector<16x8xf32>
      %231 = vector.extract_strided_slice %226 {offsets = [0, 24], sizes = [16, 8], strides = [1, 1]} : vector<16x32xf32> to vector<16x8xf32>
      %232 = vector.shape_cast %228 : vector<16x8xf32> to vector<1x16x8xf32>
      %233 = vector.shape_cast %229 : vector<16x8xf32> to vector<1x16x8xf32>
      %234 = vector.shape_cast %230 : vector<16x8xf32> to vector<1x16x8xf32>
      %235 = vector.shape_cast %231 : vector<16x8xf32> to vector<1x16x8xf32>
      %236 = tpu.concatenate %232, %233, %234, %235 in 0 : vector<1x16x8xf32>, vector<1x16x8xf32>, vector<1x16x8xf32>, vector<1x16x8xf32> -> vector<4x16x8xf32>
      %237 = vector.extract_strided_slice %227 {offsets = [0, 0], sizes = [16, 8], strides = [1, 1]} : vector<16x32xf32> to vector<16x8xf32>
      %238 = vector.extract_strided_slice %227 {offsets = [0, 8], sizes = [16, 8], strides = [1, 1]} : vector<16x32xf32> to vector<16x8xf32>
      %239 = vector.extract_strided_slice %227 {offsets = [0, 16], sizes = [16, 8], strides = [1, 1]} : vector<16x32xf32> to vector<16x8xf32>
      %240 = vector.extract_strided_slice %227 {offsets = [0, 24], sizes = [16, 8], strides = [1, 1]} : vector<16x32xf32> to vector<16x8xf32>
      %241 = vector.shape_cast %237 : vector<16x8xf32> to vector<1x16x8xf32>
      %242 = vector.shape_cast %238 : vector<16x8xf32> to vector<1x16x8xf32>
      %243 = vector.shape_cast %239 : vector<16x8xf32> to vector<1x16x8xf32>
      %244 = vector.shape_cast %240 : vector<16x8xf32> to vector<1x16x8xf32>
      %245 = tpu.concatenate %241, %242, %243, %244 in 0 : vector<1x16x8xf32>, vector<1x16x8xf32>, vector<1x16x8xf32>, vector<1x16x8xf32> -> vector<4x16x8xf32>
      "tpu.trace_start"() <{level = 10 : i32, message = "hqd,hkd->hqk"}> : () -> ()
      %cst_88 = arith.constant dense<0.000000e+00> : vector<4x16x16xf32>
      %246 = tpu.matmul %236, %245, %cst_88 {dimension_numbers = #tpu.dot_dimension_numbers<[2], [2], [1], [1], [0, 0, 0, 1, 1, 1], [0], [0]>} : vector<4x16x8xf32>, vector<4x16x8xf32>, vector<4x16x16xf32> -> vector<4x16x16xf32>
      "tpu.trace_stop"() : () -> ()
      %cst_89 = arith.constant 0.353553385 : f32
      %247 = vector.broadcast %cst_89 : f32 to vector<4x16x16xf32>
      %248 = arith.mulf %246, %247 : vector<4x16x16xf32>
      %cst_90 = arith.constant -1.000000e+09 : f32
      %249 = vector.shape_cast %225 : vector<1x16x16xi1> to vector<1x16x16xi1>
      %250 = vector.broadcast %249 : vector<1x16x16xi1> to vector<4x16x16xi1>
      %251 = vector.broadcast %cst_90 : f32 to vector<4x16x16xf32>
      %252 = arith.select %250, %251, %248 : vector<4x16x16xi1>, vector<4x16x16xf32>
      %cst_91 = arith.constant dense<0xFF800000> : vector<4x16xf32>
      %253 = vector.multi_reduction <maximumf>, %252, %cst_91 [2] : vector<4x16x16xf32> to vector<4x16xf32>
      %254 = vector.shape_cast %253 : vector<4x16xf32> to vector<4x16x1xf32>
      %255 = vector.broadcast %254 : vector<4x16x1xf32> to vector<4x16x16xf32>
      %256 = arith.subf %252, %255 : vector<4x16x16xf32>
      %257 = math.exp %256 : vector<4x16x16xf32>
      %cst_92 = arith.constant dense<0.000000e+00> : vector<4x16xf32>
      %258 = vector.multi_reduction <add>, %257, %cst_92 [2] : vector<4x16x16xf32> to vector<4x16xf32>
      %259 = vector.shape_cast %258 : vector<4x16xf32> to vector<4x16x1xf32>
      %260 = vector.broadcast %259 : vector<4x16x1xf32> to vector<4x16x16xf32>
      %261 = arith.divf %257, %260 : vector<4x16x16xf32>
      %262 = vector.broadcast %191 : f32 to vector<4x16x16xf32>
      %263 = arith.mulf %262, %261 : vector<4x16x16xf32>
      %264 = vector.broadcast %194 : vector<4x1x1xf32> to vector<4x16x16xf32>
      %265 = arith.addf %263, %264 : vector<4x16x16xf32>
      %cst_93 = arith.constant 0.000000e+00 : f32
      %266 = vector.shape_cast %225 : vector<1x16x16xi1> to vector<1x16x16xi1>
      %267 = vector.broadcast %266 : vector<1x16x16xi1> to vector<4x16x16xi1>
      %268 = vector.broadcast %cst_93 : f32 to vector<4x16x16xf32>
      %269 = arith.select %267, %268, %265 : vector<4x16x16xi1>, vector<4x16x16xf32>
      %cst_94 = arith.constant dense<0.000000e+00> : vector<4x16xf32>
      %270 = vector.multi_reduction <add>, %269, %cst_94 [2] : vector<4x16x16xf32> to vector<4x16xf32>
      %271 = vector.shape_cast %270 : vector<4x16xf32> to vector<4x16x1xf32>
      %cst_95 = arith.constant 9.99999971E-10 : f32
      %272 = vector.broadcast %cst_95 : f32 to vector<4x16x1xf32>
      %273 = arith.addf %271, %272 : vector<4x16x1xf32>
      %274 = vector.broadcast %273 : vector<4x16x1xf32> to vector<4x16x16xf32>
      %275 = arith.divf %269, %274 : vector<4x16x16xf32>
      %276 = vector.extract_strided_slice %221 {offsets = [0, 64], sizes = [16, 32], strides = [1, 1]} : vector<16x96xf32> to vector<16x32xf32>
      %277 = vector.extract_strided_slice %276 {offsets = [0, 0], sizes = [16, 8], strides = [1, 1]} : vector<16x32xf32> to vector<16x8xf32>
      %278 = vector.extract_strided_slice %276 {offsets = [0, 8], sizes = [16, 8], strides = [1, 1]} : vector<16x32xf32> to vector<16x8xf32>
      %279 = vector.extract_strided_slice %276 {offsets = [0, 16], sizes = [16, 8], strides = [1, 1]} : vector<16x32xf32> to vector<16x8xf32>
      %280 = vector.extract_strided_slice %276 {offsets = [0, 24], sizes = [16, 8], strides = [1, 1]} : vector<16x32xf32> to vector<16x8xf32>
      %281 = vector.shape_cast %277 : vector<16x8xf32> to vector<1x16x8xf32>
      %282 = vector.shape_cast %278 : vector<16x8xf32> to vector<1x16x8xf32>
      %283 = vector.shape_cast %279 : vector<16x8xf32> to vector<1x16x8xf32>
      %284 = vector.shape_cast %280 : vector<16x8xf32> to vector<1x16x8xf32>
      %285 = tpu.concatenate %281, %282, %283, %284 in 0 : vector<1x16x8xf32>, vector<1x16x8xf32>, vector<1x16x8xf32>, vector<1x16x8xf32> -> vector<4x16x8xf32>
      "tpu.trace_start"() <{level = 10 : i32, message = "hqk,hkd->hqd"}> : () -> ()
      %cst_96 = arith.constant dense<0.000000e+00> : vector<4x16x8xf32>
      %286 = tpu.matmul %275, %285, %cst_96 {dimension_numbers = #tpu.dot_dimension_numbers<[2], [1], [1], [2], [0, 0, 0, 1, 1, 2], [0], [0]>} : vector<4x16x16xf32>, vector<4x16x8xf32>, vector<4x16x8xf32> -> vector<4x16x8xf32>
      "tpu.trace_stop"() : () -> ()
      %287 = vector.extract_strided_slice %286 {offsets = [0, 0, 0], sizes = [1, 16, 8], strides = [1, 1, 1]} : vector<4x16x8xf32> to vector<1x16x8xf32>
      %288 = vector.shape_cast %287 : vector<1x16x8xf32> to vector<16x8xf32>
      %289 = vector.extract_strided_slice %286 {offsets = [1, 0, 0], sizes = [1, 16, 8], strides = [1, 1, 1]} : vector<4x16x8xf32> to vector<1x16x8xf32>
      %290 = vector.shape_cast %289 : vector<1x16x8xf32> to vector<16x8xf32>
      %291 = vector.extract_strided_slice %286 {offsets = [2, 0, 0], sizes = [1, 16, 8], strides = [1, 1, 1]} : vector<4x16x8xf32> to vector<1x16x8xf32>
      %292 = vector.shape_cast %291 : vector<1x16x8xf32> to vector<16x8xf32>
      %293 = vector.extract_strided_slice %286 {offsets = [3, 0, 0], sizes = [1, 16, 8], strides = [1, 1, 1]} : vector<4x16x8xf32> to vector<1x16x8xf32>
      %294 = vector.shape_cast %293 : vector<1x16x8xf32> to vector<16x8xf32>
      %295 = tpu.concatenate %288, %290, %292, %294 in 1 : vector<16x8xf32>, vector<16x8xf32>, vector<16x8xf32>, vector<16x8xf32> -> vector<16x32xf32>
      %c0_97 = arith.constant 0 : index
      %c0_98 = arith.constant 0 : index
      %c0_99 = arith.constant 0 : index
      %296 = vector.load %arg22[%c0_97, %c0_98, %c0_99] : memref<1x32x32xf32, #tpu.memory_space<vmem>>, vector<1x32x32xf32>
      %297 = vector.shape_cast %296 : vector<1x32x32xf32> to vector<32x32xf32>
      %cst_100 = arith.constant dense<0.000000e+00> : vector<16x32xf32>
      %298 = tpu.matmul %295, %297, %cst_100 {dimension_numbers = #tpu.dot_dimension_numbers<[1], [0], [0], [1], [0, 0, 1, 1], [], []>} : vector<16x32xf32>, vector<32x32xf32>, vector<16x32xf32> -> vector<16x32xf32>
      %c0_101 = arith.constant 0 : index
      %c0_102 = arith.constant 0 : index
      %c0_103 = arith.constant 0 : index
      %299 = vector.load %arg23[%c0_101, %c0_102, %c0_103] : memref<1x1x32xf32, #tpu.memory_space<vmem>>, vector<1x1x32xf32>
      %300 = vector.shape_cast %299 : vector<1x1x32xf32> to vector<1x32xf32>
      %301 = vector.broadcast %300 : vector<1x32xf32> to vector<16x32xf32>
      %302 = arith.addf %298, %301 : vector<16x32xf32>
      %303 = vector.extract_strided_slice %3 {offsets = [4, 0], sizes = [1, 32], strides = [1, 1]} : vector<6x32xf32> to vector<1x32xf32>
      %304 = vector.extract_strided_slice %3 {offsets = [5, 0], sizes = [1, 32], strides = [1, 1]} : vector<6x32xf32> to vector<1x32xf32>
      %cst_104 = arith.constant dense<0.000000e+00> : vector<16xf32>
      %305 = vector.multi_reduction <add>, %302, %cst_104 [1] : vector<16x32xf32> to vector<16xf32>
      %306 = vector.shape_cast %305 : vector<16xf32> to vector<16x1xf32>
      %cst_105 = arith.constant 3.200000e+01 : f32
      %307 = vector.broadcast %cst_105 : f32 to vector<16x1xf32>
      %308 = arith.divf %306, %307 : vector<16x1xf32>
      %309 = vector.broadcast %308 : vector<16x1xf32> to vector<16x32xf32>
      %310 = arith.subf %302, %309 : vector<16x32xf32>
      %311 = arith.mulf %310, %310 : vector<16x32xf32>
      %cst_106 = arith.constant dense<0.000000e+00> : vector<16xf32>
      %312 = vector.multi_reduction <add>, %311, %cst_106 [1] : vector<16x32xf32> to vector<16xf32>
      %313 = vector.shape_cast %312 : vector<16xf32> to vector<16x1xf32>
      %cst_107 = arith.constant 3.200000e+01 : f32
      %314 = vector.broadcast %cst_107 : f32 to vector<16x1xf32>
      %315 = arith.divf %313, %314 : vector<16x1xf32>
      %316 = vector.broadcast %308 : vector<16x1xf32> to vector<16x32xf32>
      %317 = arith.subf %302, %316 : vector<16x32xf32>
      %cst_108 = arith.constant 9.99999974E-6 : f32
      %318 = vector.broadcast %cst_108 : f32 to vector<16x1xf32>
      %319 = arith.addf %315, %318 : vector<16x1xf32>
      %320 = math.rsqrt %319 : vector<16x1xf32>
      %321 = vector.broadcast %320 : vector<16x1xf32> to vector<16x32xf32>
      %322 = arith.mulf %317, %321 : vector<16x32xf32>
      %323 = vector.broadcast %303 : vector<1x32xf32> to vector<16x32xf32>
      %324 = arith.mulf %322, %323 : vector<16x32xf32>
      %325 = vector.broadcast %304 : vector<1x32xf32> to vector<16x32xf32>
      %326 = arith.addf %324, %325 : vector<16x32xf32>
      %c0_109 = arith.constant 0 : index
      %c0_110 = arith.constant 0 : index
      %c0_111 = arith.constant 0 : index
      %327 = vector.load %arg24[%c0_109, %c0_110, %c0_111] : memref<1x32x32xf32, #tpu.memory_space<vmem>>, vector<1x32x32xf32>
      %328 = vector.shape_cast %327 : vector<1x32x32xf32> to vector<32x32xf32>
      %cst_112 = arith.constant dense<0.000000e+00> : vector<16x32xf32>
      %329 = tpu.matmul %326, %328, %cst_112 {dimension_numbers = #tpu.dot_dimension_numbers<[1], [0], [0], [1], [0, 0, 1, 1], [], []>} : vector<16x32xf32>, vector<32x32xf32>, vector<16x32xf32> -> vector<16x32xf32>
      %c0_113 = arith.constant 0 : index
      %c0_114 = arith.constant 0 : index
      %c0_115 = arith.constant 0 : index
      %330 = vector.load %arg25[%c0_113, %c0_114, %c0_115] : memref<1x1x32xf32, #tpu.memory_space<vmem>>, vector<1x1x32xf32>
      %331 = vector.shape_cast %330 : vector<1x1x32xf32> to vector<1x32xf32>
      %332 = vector.broadcast %331 : vector<1x32xf32> to vector<16x32xf32>
      %333 = arith.addf %329, %332 : vector<16x32xf32>
      %334 = arith.addf %1, %333 : vector<16x32xf32>
      %c0_i32_116 = arith.constant 0 : i32
      %335 = arith.cmpi eq, %arg1, %c0_i32_116 : i32
      %336 = arith.extui %335 : i1 to i32
      %c0_i32_117 = arith.constant 0 : i32
      %337 = arith.cmpi ne, %336, %c0_i32_117 : i32
      scf.if %337 {
        %c0_122 = arith.constant 0 : index
        %c0_123 = arith.constant 0 : index
        %344 = vector.load %arg28[%c0_122, %c0_123] : memref<16x32xf32, #tpu.memory_space<vmem>>, vector<16x32xf32>
        tpu.vector_store %arg28[%c0_122, %c0_123], %334 {strides = array<i32>} : memref<16x32xf32, #tpu.memory_space<vmem>>, vector<16x32xf32>,
      } else {
      }
      %c0_i32_118 = arith.constant 0 : i32
      %338 = arith.cmpi sgt, %arg1, %c0_i32_118 : i32
      %339 = arith.extui %338 : i1 to i32
      %c0_i32_119 = arith.constant 0 : i32
      %340 = arith.cmpi ne, %339, %c0_i32_119 : i32
      scf.if %340 {
        %c0_122 = arith.constant 0 : index
        %c0_123 = arith.constant 0 : index
        %344 = vector.load %arg28[%c0_122, %c0_123] : memref<16x32xf32, #tpu.memory_space<vmem>>, vector<16x32xf32>
        %345 = arith.addf %344, %334 : vector<16x32xf32>
        %c0_124 = arith.constant 0 : index
        %c0_125 = arith.constant 0 : index
        %346 = vector.load %arg28[%c0_124, %c0_125] : memref<16x32xf32, #tpu.memory_space<vmem>>, vector<16x32xf32>
        tpu.vector_store %arg28[%c0_124, %c0_125], %345 {strides = array<i32>} : memref<16x32xf32, #tpu.memory_space<vmem>>, vector<16x32xf32>,
      } else {
      }
      %c1_i32_120 = arith.constant 1 : i32
      %341 = arith.cmpi eq, %arg1, %c1_i32_120 : i32
      %342 = arith.extui %341 : i1 to i32
      %c0_i32_121 = arith.constant 0 : i32
      %343 = arith.cmpi ne, %342, %c0_i32_121 : i32
      scf.if %343 {
        %c0_122 = arith.constant 0 : index
        %c0_123 = arith.constant 0 : index
        %344 = vector.load %arg28[%c0_122, %c0_123] : memref<16x32xf32, #tpu.memory_space<vmem>>, vector<16x32xf32>
        %345 = arith.addf %344, %1 : vector<16x32xf32>
        %c0_124 = arith.constant 0 : index
        %c0_125 = arith.constant 0 : index
        %c0_126 = arith.constant 0 : index
        %346 = vector.load %arg26[%c0_124, %c0_125, %c0_126] : memref<1x16x32xf32, #tpu.memory_space<vmem>>, vector<1x16x32xf32>
        %347 = vector.shape_cast %346 : vector<1x16x32xf32> to vector<16x32xf32>
        %348 = vector.shape_cast %345 : vector<16x32xf32> to vector<1x16x32xf32>
        tpu.vector_store %arg26[%c0_124, %c0_125, %c0_126], %348 {strides = array<i32>} : memref<1x16x32xf32, #tpu.memory_space<vmem>>, vector<1x16x32xf32>,
      } else {
      }
    } else {
    }
    return
  }
  func.func @transform_0(%arg0: i32, %arg1: i32, %arg2: i32) -> i32 {
    %c0_i32 = arith.constant 0 : i32
    %c0_i32_0 = arith.constant 0 : i32
    return %c0_i32 : i32
  }
  func.func @transform_1(%arg0: i32, %arg1: i32, %arg2: i32) -> i32 {
    %c0_i32 = arith.constant 0 : i32
    %c0_i32_0 = arith.constant 0 : i32
    return %c0_i32 : i32
  }
  func.func @transform_2(%arg0: i32, %arg1: i32, %arg2: i32) -> (i32, i32, i32) {
    %c0_i32 = arith.constant 0 : i32
    %c0_i32_0 = arith.constant 0 : i32
    %c0_i32_1 = arith.constant 0 : i32
    return %arg0, %c0_i32, %c0_i32_0 : i32, i32, i32
  }
  func.func @transform_3(%arg0: i32, %arg1: i32, %arg2: i32) -> (i32, i32, i32) {
    %c0_i32 = arith.constant 0 : i32
    %c0_i32_0 = arith.constant 0 : i32
    %c0_i32_1 = arith.constant 0 : i32
    return %arg1, %c0_i32, %c0_i32_0 : i32, i32, i32
  }
  func.func @transform_4(%arg0: i32, %arg1: i32, %arg2: i32) -> (i32, i32, i32) {
    %c0_i32 = arith.constant 0 : i32
    %c0_i32_0 = arith.constant 0 : i32
    %c0_i32_1 = arith.constant 0 : i32
    return %arg1, %c0_i32, %c0_i32_0 : i32, i32, i32
  }
  func.func @transform_5(%arg0: i32, %arg1: i32, %arg2: i32) -> (i32, i32, i32) {
    %c0_i32 = arith.constant 0 : i32
    %c0_i32_0 = arith.constant 0 : i32
    %c0_i32_1 = arith.constant 0 : i32
    return %arg1, %c0_i32, %c0_i32_0 : i32, i32, i32
  }
  func.func @transform_6(%arg0: i32, %arg1: i32, %arg2: i32) -> (i32, i32, i32) {
    %c0_i32 = arith.constant 0 : i32
    %c0_i32_0 = arith.constant 0 : i32
    %c0_i32_1 = arith.constant 0 : i32
    return %arg1, %c0_i32, %c0_i32_0 : i32, i32, i32
  }
  func.func @transform_7(%arg0: i32, %arg1: i32, %arg2: i32) -> (i32, i32, i32) {
    %c0_i32 = arith.constant 0 : i32
    %c0_i32_0 = arith.constant 0 : i32
    %c0_i32_1 = arith.constant 0 : i32
    return %arg1, %c0_i32, %c0_i32_0 : i32, i32, i32
  }
  func.func @transform_8(%arg0: i32, %arg1: i32, %arg2: i32) -> (i32, i32, i32) {
    %c0_i32 = arith.constant 0 : i32
    %c0_i32_0 = arith.constant 0 : i32
    %c0_i32_1 = arith.constant 0 : i32
    return %arg1, %c0_i32, %c0_i32_0 : i32, i32, i32
  }
  func.func @transform_9(%arg0: i32, %arg1: i32, %arg2: i32) -> (i32, i32, i32) {
    %c0_i32 = arith.constant 0 : i32
    %c0_i32_0 = arith.constant 0 : i32
    %c0_i32_1 = arith.constant 0 : i32
    return %arg1, %c0_i32, %c0_i32_0 : i32, i32, i32
  }
  func.func @transform_10(%arg0: i32, %arg1: i32, %arg2: i32) -> (i32, i32, i32, i32) {
    %c0_i32 = arith.constant 0 : i32
    %c0_i32_0 = arith.constant 0 : i32
    %c0_i32_1 = arith.constant 0 : i32
    return %arg1, %arg2, %c0_i32, %c0_i32_0 : i32, i32, i32, i32
  }
  func.func @transform_11(%arg0: i32, %arg1: i32, %arg2: i32) -> (i32, i32, i32, i32) {
    %c0_i32 = arith.constant 0 : i32
    %c0_i32_0 = arith.constant 0 : i32
    %c0_i32_1 = arith.constant 0 : i32
    return %arg1, %arg2, %c0_i32, %c0_i32_0 : i32, i32, i32, i32
  }
  func.func @transform_12(%arg0: i32, %arg1: i32, %arg2: i32) -> (i32, i32, i32, i32) {
    %c0_i32 = arith.constant 0 : i32
    %c0_i32_0 = arith.constant 0 : i32
    %c0_i32_1 = arith.constant 0 : i32
    return %arg1, %arg2, %c0_i32, %c0_i32_0 : i32, i32, i32, i32
  }
  func.func @transform_13(%arg0: i32, %arg1: i32, %arg2: i32) -> (i32, i32, i32, i32) {
    %c0_i32 = arith.constant 0 : i32
    %c0_i32_0 = arith.constant 0 : i32
    %c0_i32_1 = arith.constant 0 : i32
    return %arg1, %arg2, %c0_i32, %c0_i32_0 : i32, i32, i32, i32
  }
  func.func @transform_14(%arg0: i32, %arg1: i32, %arg2: i32) -> (i32, i32, i32, i32) {
    %c0_i32 = arith.constant 0 : i32
    %c0_i32_0 = arith.constant 0 : i32
    %c0_i32_1 = arith.constant 0 : i32
    return %arg1, %arg2, %c0_i32, %c0_i32_0 : i32, i32, i32, i32
  }
  func.func @transform_15(%arg0: i32, %arg1: i32, %arg2: i32) -> (i32, i32, i32, i32) {
    %c0_i32 = arith.constant 0 : i32
    %c0_i32_0 = arith.constant 0 : i32
    %c0_i32_1 = arith.constant 0 : i32
    return %arg1, %arg2, %c0_i32, %c0_i32_0 : i32, i32, i32, i32
  }
  func.func @transform_16(%arg0: i32, %arg1: i32, %arg2: i32) -> (i32, i32, i32, i32) {
    %c0_i32 = arith.constant 0 : i32
    %c0_i32_0 = arith.constant 0 : i32
    %c0_i32_1 = arith.constant 0 : i32
    return %arg1, %arg2, %c0_i32, %c0_i32_0 : i32, i32, i32, i32
  }
  func.func @transform_17(%arg0: i32, %arg1: i32, %arg2: i32) -> (i32, i32, i32, i32) {
    %c0_i32 = arith.constant 0 : i32
    %c0_i32_0 = arith.constant 0 : i32
    %c0_i32_1 = arith.constant 0 : i32
    return %arg1, %arg2, %c0_i32, %c0_i32_0 : i32, i32, i32, i32
  }
  func.func @transform_18(%arg0: i32, %arg1: i32, %arg2: i32) -> (i32, i32, i32) {
    %c0_i32 = arith.constant 0 : i32
    %c0_i32_0 = arith.constant 0 : i32
    %c0_i32_1 = arith.constant 0 : i32
    return %arg1, %c0_i32, %c0_i32_0 : i32, i32, i32
  }
  func.func @transform_19(%arg0: i32, %arg1: i32, %arg2: i32) -> (i32, i32, i32) {
    %c0_i32 = arith.constant 0 : i32
    %c0_i32_0 = arith.constant 0 : i32
    %c0_i32_1 = arith.constant 0 : i32
    return %arg1, %c0_i32, %c0_i32_0 : i32, i32, i32
  }
  func.func @transform_20(%arg0: i32, %arg1: i32, %arg2: i32) -> (i32, i32, i32) {
    %c0_i32 = arith.constant 0 : i32
    %c0_i32_0 = arith.constant 0 : i32
    %c0_i32_1 = arith.constant 0 : i32
    return %arg1, %c0_i32, %c0_i32_0 : i32, i32, i32
  }
  func.func @transform_21(%arg0: i32, %arg1: i32, %arg2: i32) -> (i32, i32, i32) {
    %c0_i32 = arith.constant 0 : i32
    %c0_i32_0 = arith.constant 0 : i32
    %c0_i32_1 = arith.constant 0 : i32
    return %arg1, %c0_i32, %c0_i32_0 : i32, i32, i32
  }
  func.func @transform_22(%arg0: i32, %arg1: i32, %arg2: i32) -> (i32, i32, i32) {
    %c0_i32 = arith.constant 0 : i32
    %c0_i32_0 = arith.constant 0 : i32
    %c0_i32_1 = arith.constant 0 : i32
    return %arg1, %c0_i32, %c0_i32_0 : i32, i32, i32
  }
  func.func @transform_23(%arg0: i32, %arg1: i32, %arg2: i32) -> (i32, i32, i32) {
    %c0_i32 = arith.constant 0 : i32
    %c0_i32_0 = arith.constant 0 : i32
    %c0_i32_1 = arith.constant 0 : i32
    return %arg0, %c0_i32, %c0_i32_0 : i32, i32, i32
  }
}

</mosaic_0001>

<bundles_post_ra>
// kernel: _lambda_.1
= control target key start
LH: loop header
LB: loop body
LE: loop exit
PB: predicated region body
PF: predicated region fallthrough
CT: control target
= control target key end

     0   :  { %s7344_s0 = inlined_call_operand.vmem [shape: s32[2], index: 0, kind: input, shape index: {}]   ;;  %s7345_s1 = inlined_call_operand.vmem [shape: f32[2], index: 1, kind: input, shape index: {}]   ;;  %s7346_s2 = inlined_call_operand.vmem [shape: f32[2,16,32], index: 2, kind: input, shape index: {}]   ;;  %s7347_s3 = inlined_call_operand.vmem [shape: f32[2,16,32], index: 3, kind: input, shape index: {}]   ;;  %s7348_s4 = inlined_call_operand.vmem [shape: f32[2,8,32], index: 4, kind: input, shape index: {}]   ;;  %s7349_s5 = inlined_call_operand.vmem [shape: f32[2,6,32], index: 5, kind: input, shape index: {}]   ;;  %s7350_s6 = inlined_call_operand.vmem [shape: f32[2,32,32], index: 6, kind: input, shape index: {}]   ;;  %s7351_s7 = inlined_call_operand.vmem [shape: f32[2,32,64], index: 7, kind: input, shape index: {}]   ;;  %s7352_s8 = inlined_call_operand.vmem [shape: f32[2,32,32], index: 8, kind: input, shape index: {}]   ;;  %s7353_s9 = inlined_call_operand.vmem [shape: f32[2,1,32], index: 9, kind: input, shape index: {}]   ;;  %s7354_s10 = inlined_call_operand.vmem [shape: f32[2,2,4,32], index: 10, kind: input, shape index: {}]   ;;  %s7355_s11 = inlined_call_operand.vmem [shape: f32[2,2,32,96], index: 11, kind: input, shape index: {}]   ;;  %s7356_s12 = inlined_call_operand.vmem [shape: f32[2,2,32,32], index: 12, kind: input, shape index: {}]   ;;  %s7357_s13 = inlined_call_operand.vmem [shape: f32[2,2,1,32], index: 13, kind: input, shape index: {}]   ;;  %s7358_s14 = inlined_call_operand.vmem [shape: f32[2,2,32,128], index: 14, kind: input, shape index: {}]   ;;  %s7359_s15 = inlined_call_operand.vmem [shape: f32[2,2,1,128], index: 15, kind: input, shape index: {}]   ;;  %s7360_s16 = inlined_call_operand.vmem [shape: f32[2,2,128,32], index: 16, kind: input, shape index: {}]   ;;  %s7361_s17 = inlined_call_operand.vmem [shape: f32[2,2,1,32], index: 17, kind: input, shape index: {}]   ;;  %s7362_s18 = inlined_call_operand.vmem [shape: f32[2,32,96], index: 18, kind: input, shape index: {}]   ;;  %s7363_s19 = inlined_call_operand.vmem [shape: f32[2,32,32], index: 19, kind: input, shape index: {}]   ;;  %s7364_s20 = inlined_call_operand.vmem [shape: f32[2,1,32], index: 20, kind: input, shape index: {}]   ;;  %s7365_s21 = inlined_call_operand.vmem [shape: f32[2,32,32], index: 21, kind: input, shape index: {}]   ;;  %s7366_s22 = inlined_call_operand.vmem [shape: f32[2,1,32], index: 22, kind: input, shape index: {}]   ;;  %s7367_s23 = inlined_call_operand.hbm [shape: f32[2,16,32], index: 23, kind: output, shape index: {}]  }
   0x1   :  { %7395 = sst [smem:[#allocation35_spill]] %s7344_s0 }
   0x2   :  { %7396 = sst [smem:[#allocation36_spill]] %s7345_s1 }
   0x3   :  { %7397 = sst [smem:[#allocation37_spill]] %s7346_s2 }
   0x4   :  { %7398 = sst [smem:[#allocation38_spill]] %s7347_s3 }
   0x5   :  { %7399 = sst [smem:[#allocation39_spill]] %s7348_s4 }
   0x6   :  { %7400 = sst [smem:[#allocation40_spill]] %s7349_s5 }
   0x7   :  { %7401 = sst [smem:[#allocation41_spill]] %s7350_s6 }
   0x8   :  { %7402 = sst [smem:[#allocation42_spill]] %s7351_s7 }
   0x9   :  { %7403 = sst [smem:[#allocation43_spill]] %s7352_s8 }
   0xa   :  { %7404 = sst [smem:[#allocation44_spill]] %s7353_s9 }
   0xb   :  { %7405 = sst [smem:[#allocation45_spill]] %s7354_s10 }
   0xc   :  { %7406 = sst [smem:[#allocation46_spill]] %s7355_s11 }
   0xd   :  { %7407 = sst [smem:[#allocation47_spill]] %s7356_s12 }
   0xe   :  { %7408 = sst [smem:[#allocation48_spill]] %s7357_s13 }
   0xf   :  { %7409 = sst [smem:[#allocation49_spill]] %s7358_s14 }
  0x10   :  { %7410 = sst [smem:[#allocation50_spill]] %s7359_s15 }
  0x11   :  { %7411 = sst [smem:[#allocation51_spill]] %s7360_s16 }
  0x12   :  { %7412 = sst [smem:[#allocation52_spill]] %s7361_s17 }
  0x13   :  { %7413 = sst [smem:[#allocation53_spill]] %s7362_s18 }
  0x14   :  { %7414 = sst [smem:[#allocation54_spill]] %s7363_s19 }
  0x15   :  { %7415 = sst [smem:[#allocation55_spill]] %s7364_s20 }
  0x16   :  { %7416 = sst [smem:[#allocation56_spill]] %s7365_s21 }
  0x17   :  { %7417 = sst [smem:[#allocation57_spill]] %s7366_s22 }
  0x18   :  { %7418 = sst [smem:[#allocation58_spill]] %s7367_s23 }
  0x19   :  { %28 = vsyncpa [#allocation6], 0 }
  0x1a   :  { %29 = vsyncpa [#allocation8], 0 }
  0x1b   :  { %30 = vsyncpa [#allocation5], 0 }
  0x1c   :  { %32 = vsyncpa [#allocation5 + $0x1], 0  ;;  %s6440_s4 = smov 0   ;;  %s6442_s30 = smov 0  }
  0x1d   :  { %s6444_s24 = smov 0   ;;  %s6446_s25 = smov 0  }
  0x1e   :  { %s6448_s5 = smov 0   ;;  %s6450_s1 = smov 0  }
  0x1f   :  { %s6452_s26 = smov 0   ;;  %s6454_s2 = smov 0  }
  0x20   :  { %s6456_s6 = smov 0   ;;  %s6458_s27 = smov 0  }
  0x21 LB: > { %7419 = sst [smem:[#allocation13_spill]] %s6247_s4  ;;  %s5097_s7 = sadd.s32 4294967295, %s6283_s27   ;;  %s6283_s27 = sphi %s6458_s27, %s38_s27   ;;  %s6279_s6 = sphi %s6456_s6, %s7519_s6   ;;  %s6275_s2 = sphi %s6454_s2, %s7518_s2   ;;  %s6271_s26 = sphi %s6452_s26, %s7517_s26   ;;  %s6267_s1 = sphi %s6450_s1, %s7516_s1   ;;  %s6263_s5 = sphi %s6448_s5, %s7515_s5   ;;  %s6259_s25 = sphi %s6446_s25, %s7514_s25   ;;  %s6255_s24 = sphi %s6444_s24, %s7513_s24   ;;  %s6251_s30 = sphi %s6442_s30, %s7512_s30   ;;  %s6247_s4 = sphi %s6440_s4, %s7511_s4  }
  0x22   : > { %7420 = sst [smem:[#allocation14_spill]] %s6251_s30  ;;  %s5098_s28 = sadd.s32 4294967294, %s6283_s27  }
  0x23   : > { %7421 = sst [smem:[#allocation15_spill]] %s6255_s24  ;;  %s50_s29 = sadd.s32 1, %s6271_s26 }
  0x24   : > { %7422 = sst [smem:[#allocation16_spill]] %s6263_s5  ;;  %s53_s3 = sadd.s32 1, %s6275_s2 }
  0x25   : > { %7423 = sst [smem:[#allocation17_spill]] %s6267_s1  ;;  %p51_p0 = scmp.ge.s32.totalorder %s50_s29, 2 }
  0x26   : > { %7424 = sst [smem:[#allocation18_spill]] %s6271_s26  ;;  %s57_s0 = sadd.s32 1, %s6279_s6 }
  0x27   : > { %7425 = sst [smem:[#allocation19_spill]] %s6275_s2  ;;  %s668_s23 = sadd.s32 1, %s6255_s24 }
  0x28   : > { %7426 = sst [smem:[#allocation20_spill]] %s6279_s6  ;;  %p678_p1 = scmp.ne.s32.totalorder %s6255_s24, %s6251_s30 }
  0x29   : > { %7427 = sst [smem:[#allocation21_spill]] %s6283_s27  ;;  %s7521_s29 = smov (%p51_p0, %s50_s29), 0 }
  0x2a   : > { %7428 = sst [smem:[#allocation22_spill]] %s7521_s29  ;;  %s7523_s3 = smov (!%p51_p0, %s53_s3), %s6275_s2 }
  0x2b   : > { %p679_p2 = scmp.eq.s32.totalorder %s5097_s7, 7  ;;  %p684_p3 = scmp.ne.s32.totalorder %s6251_s30, %s6247_s4 }
  0x2c   : > { %p55_p4 = scmp.ge.s32.totalorder %s7523_s3, 2  ;;  %p685_p5 = scmp.eq.s32.totalorder %s5098_s28, 7 }
  0x2d   : > { %p6503_p6 = por %p679_p2, %p678_p1  ;;  %p5099_p7 = scmp.ge.s32.totalorder %s6283_s27, 1 }
  0x2e   : > { %s7525_s3 = smov (%p55_p4, %s7523_s3), 0  ;;  %s7527_s0 = smov (!%p55_p4, %s57_s0), %s6279_s6 }
  0x2f   : > { %s7429_s22 = scalar_select %p6503_p6, 1, 0 }
  0x30   : > { %7431 = sst [smem:[#allocation24_spill]] %s7525_s3  ;;  %p6511_p8 = por %p685_p5, %p684_p3 }
  0x31   : > { %7430 = sst [smem:[#allocation23_spill]] %s7429_s22  ;;  %p692_p9 = scmp.lt.s32.totalorder %s6283_s27, 9 }
  0x32   : > { %s7432_s26 = scalar_select %p6511_p8, 1, 0 }
  0x33   : > { %p59_p10 = scmp.ge.s32.totalorder %s7527_s0, 2  ;;  %p6516_p11 = pnand %p5099_p7, %p692_p9 }
  0x34   : > { %7433 = sst [smem:[#allocation25_spill]] %s7432_s26  ;;  %p6520_p12 = scmp.eq.s32.totalorder %s5097_s7, 0 }
  0x35   : > { %s7434_s29 = scalar_select %p6516_p11, 1, 0 }
  0x36   : > { %s7435_s28 = scalar_select %p6520_p12, 1, 0 }
  0x37   : > { %s7529_s0 = smov (%p59_p10, %s7527_s0), 0  ;;  %p5828_p13 = pneg %p6516_p11 }
  0x38   : > { %7436 = sst [smem:[#allocation26_spill]] %s7529_s0  ;;  %s7437_s26 = sld [smem:[#allocation35_spill]] }
  0x39   : > { %s665_s27 = ssub.s32 %s6279_s6, %s7529_s0  ;;  %p6535_p1 = pnand %p6520_p12, %p5828_p13 }
  0x3a   : > { %p666_p0 = scmp.eq.s32.totalorder %s665_s27, 0  ;;  %s7439_s16 = sld [smem:[#allocation36_spill]] }
  0x3b   : > { %p6137_p3 = pneg %p6535_p1 }
  0x3c   : > { %s6543_s17 = scalar_select %p666_p0, %s6255_s24, %s668_s23  }
  0x3e   : > { %s705_s4 = sshll.u32 %s7437_s26, 4  ;;  %7440 = sst [smem:[#allocation27_spill]] %s6543_s17  ;;  %s706_s4 = int_to_ptr.vmem [resolvable:$true] %s705_s4 }
  0x3f   : > { %s6135_s15 = scalar_lea.vmem %s706_s4, 16  ;;  %p6143_p7 = scmp.lt.s32.totalorder %s706_s4, %s706_s4 }
  0x40   : > { %s716_s20 = sshll.u32 %s7439_s16, 4  ;;  %p6136_p2 = scmp.ne.s32.totalorder %s706_s4, %s6135_s15  ;;  %s717_s20 = int_to_ptr.vmem [resolvable:$true] %s716_s20 }
  0x41   : > { %p6144_p9 = scmp.lt.s32.totalorder %s6135_s15, %s6135_s15 }
  0x42   : > { %p6138_p4 = pnand %p6137_p3, %p6136_p2 }
  0x43   : > { %p6145_p10 = por %p6144_p9, %p6143_p7 }
  0x44   : > { %p6139_p5 = pneg %p6138_p4 }
  0x46   : > { %p6146_p13 = pnand %p6145_p10, %p6139_p5 }
  0x48   : > { %6149 = shalt.err (!%p6146_p13)
}
  0x49   : > { %s6285_s26 = smov [#allocation4]   ;;  %s6150_s21 = scalar_lea.vmem %s717_s20, 16 }
  0x4a   : > { %5831 = dma.vmem_to_smem (!%p6535_p1), %s706_s4, 16, %s6285_s26, [#allocation6]  }
  0x4b   : > { %p6151_p8 = scmp.ne.s32.totalorder %s717_s20, %s6150_s21  ;;  %p6158_p12 = scmp.lt.s32.totalorder %s717_s20, %s717_s20 }
  0x4c   : > { %p6159_p11 = scmp.lt.s32.totalorder %s6150_s21, %s6150_s21 }
  0x4d   : > { %p6153_p0 = pnand %p6151_p8, %p6137_p3 }
  0x4e   : > { %p6160_p2 = por %p6159_p11, %p6158_p12 }
  0x4f   : > { %p6154_p6 = pneg %p6153_p0 }
  0x51   : > { %p6161_p4 = pnand %p6160_p2, %p6154_p6 }
  0x53   : > { %6164 = shalt.err (!%p6161_p4)
}
  0x54   : > { %s6286_s16 = smov [#allocation7]   ;;  %p7441_p5 = scmp.ne.s32.totalorder %s7434_s29, 0 }
  0x55   : > { %5834 = dma.vmem_to_smem (!%p6535_p1), %s717_s20, 16, %s6286_s16, [#allocation8]  }
  0x56   : > { %914 = sbr.rel (%p7441_p5) target bundleno = 7041 (0x1b81), region = 112 }
  0x5d   : > { %p7442_p7 = scmp.ne.s32.totalorder %s7435_s28, 0 }
  0x5f   : > { %6234 = dma.done.wait (%p7442_p7), [#allocation6], 16  }
  0x60   : > { %6236 = vsyncadd (%p7442_p7), [#allocation6], 4294967280 }
  0x61   : > { %6238 = dma.done.wait (%p7442_p7), [#allocation8], 16  }
  0x62   : > { %6240 = vsyncadd (%p7442_p7), [#allocation8], 4294967280 }
  0x63   : > { %924 = sfence }
  0x64   : > { %s7381_s15 = sand.u32 1, %s6251_s30   ;;  %p1100_p6 = scmp.lt.s32.totalorder %s6267_s1, 1 }
  0x65   : > { %s6565_s20 = sshll.u32 %s7381_s15, 4  ;;  %p1105_p8 = scmp.lt.s32.totalorder %s6263_s5, 1 }
  0x66   : > { %s1101_s22 = scalar_select %p1100_p6, %s6267_s1, 1 }
  0x67   : > { %s6570_s23 = scalar_select %p1105_p8, %s6263_s5, 1 }
  0x68   : > { %s5223_s4 = sshll.u32 %s1101_s22, 4  ;;  %p1138_p11 = scmp.lt.s32.totalorder %s6259_s25, 1 }
  0x69   : > { %s7443_s29 = sld [smem:[#allocation37_spill]]  ;;  %s5224_s28 = sshll.u32 %s6570_s23, 4 }
  0x6a   : > { %s7444_s21 = sld [smem:[#allocation38_spill]]  ;;  %s6583_s15 = sshll.u32 %s6570_s23, 3 }
  0x6b   : > { %s7446_s6 = sld [smem:[#allocation40_spill]]  ;;  %s5225_s7 = sshll.u32 %s6570_s23, 5 }
  0x6c   : > { %s7450_s22 = sld [smem:[#allocation42_spill]]  ;;  %s7451_s8 = sld [smem:[#allocation43_spill]] }
  0x6d   : > { %s7453_s18 = sld [smem:[#allocation53_spill]]  ;;  %s7455_s19 = sld [smem:[#allocation54_spill]] }
  0x6e   : > { %s7457_s10 = sld [smem:[#allocation45_spill]]  ;;  %s7459_s11 = sld [smem:[#allocation46_spill]] }
  0x6f   : > { %s1104_s3 = scalar_lea.vmem %s7443_s29, %s5223_s4  ;;  %s5119_s29 = sshll.u32 %s6570_s23, 1 }
  0x70   : > { %s6580_s16 = scalar_lea.vmem %s7444_s21, %s5224_s28  ;;  %v6585_v0 = vld [vmem:[%s1104_s3] sm:$0xff]  ;;  %v6587_v1 = vld [vmem:[%s1104_s3 + $0x8] sm:$0xff]  ;;  %s7448_s3 = sld [smem:[#allocation41_spill]] }
  0x71   : > { %s1117_s17 = scalar_lea.vmem %s7446_s6, %s6583_s15  ;;  %s7461_s12 = sld [smem:[#allocation47_spill]] }
  0x72   : > { %v6602_v2 = vld [vmem:[%s1117_s17] sm:$0x3f]  ;;  %s6612_s2 = scalar_lea.vmem %s7450_s22, %s5225_s7  ;;  %s6617_s6 = scalar_lea.vmem %s7451_s8, %s5225_s7 }
  0x73   : > { %7452 = sst [smem:[#allocation29_spill]] %s6617_s6  ;;  %s6626_s21 = scalar_lea.vmem %s7453_s18, %s5225_s7 }
  0x74   : > { %s1139_s28 = scalar_select %p1138_p11, %s6259_s25, 1 }
  0x75   : > { %7454 = sst [smem:[#allocation30_spill]] %s6626_s21  ;;  %s7464_s14 = sld [smem:[#allocation49_spill]] }
  0x76   : > { %s6607_s1 = scalar_lea.vmem %s7448_s3, %s5225_s7  ;;  %s6631_s3 = scalar_lea.vmem %s7455_s19, %s5225_s7 }
  0x77   : > { %7449 = sst [smem:[#allocation28_spill]] %s6607_s1  ;;  %s6633_s5 = sadd.s32 %s5119_s29, %s1139_s28 }
  0x78   : > { %7456 = sst [smem:[#allocation31_spill]] %s6631_s3  ;;  %s5121_s27 = sshll.u32 %s1139_s28, 2 }
  0x79   : > { %s5120_s0 = sshll.u32 %s6633_s5, 2  ;;  %s1150_s22 = sadd.s32 %s5121_s27, %s6583_s15 }
  0x7a   : > { %s6640_s26 = scalar_lea.vmem %s7457_s10, %s5120_s0  ;;  %s5123_s30 = sshll.u32 %s1150_s22, 3 }
  0x7b   : > { %7458 = sst [smem:[#allocation32_spill]] %s6640_s26  ;;  %s6645_s29 = scalar_lea.vmem %s7459_s11, %s5123_s30 }
  0x7c   : > { %7460 = sst [smem:[#allocation33_spill]] %s6645_s29  ;;  %s6650_s3 = scalar_lea.vmem %s7461_s12, %s5123_s30 }
  0x7d   : > { %7462 = sst [smem:[#allocation34_spill]] %s6650_s3  ;;  %s6659_s0 = scalar_lea.vmem %s7464_s14, %s5123_s30 }
  0x7e   : > { %s7465_s10 = sld [smem:[#allocation50_spill]]  ;;  %s5132_s24 = sshll.u32 %s1139_s28, 4 }
  0x7f   : > { %s1191_s11 = sadd.s32 %s5225_s7, %s5132_s24  ;;  %s7466_s18 = sld [smem:[#allocation52_spill]] }
  0x80   : > { %s5134_s12 = sshll.u32 %s1191_s11, 3  ;;  %s7467_s9 = sld [smem:[#allocation55_spill]] }
  0x81   : > { %s7468_s6 = sld [smem:[#allocation51_spill]]  ;;  %s7469_s22 = sld [smem:[#allocation56_spill]] }
  0x82   : > { %s7470_s24 = sld [smem:[#allocation57_spill]]  ;;  %s6688_s29 = scalar_lea.vmem [#allocation9], %s6565_s20 }
  0x83   : > { %p5142_p12 = scmp.ne.s32.totalorder %s6259_s25, 0 }
  0x84   : > { %s1184_s8 = scalar_lea.vmem %s7465_s10, %s6633_s5  ;;  %v1230_v3 = vld [vmem:[%s6580_s16] sm:$0xff] (!%p5142_p12)  ;;  %vm1234_vm0 = vcmask (!%p5142_p12), 261120   ;;  %s7471_s13 = sld [smem:[#allocation39_spill]] (!%p5142_p12)  ;;  %v1231_v5 = vld [vmem:[%s6580_s16 + $0x8] sm:$0xff] (!%p5142_p12)  ;;  %v6287_v30 = vmov (!%p5142_p12), 0.0|0.0   ;;  %v1276_v32 = vld [vmem:[%s6612_s2 + $0x10] sm:$0xff] (!%p5142_p12)  ;;  %v1262_v42 = vlaneseq (!%p5142_p12) }
  0x85   : > { %s1200_s19 = scalar_lea.vmem %s7466_s18, %s6633_s5  ;;  %1228 = sbr.rel (%p5142_p12) target bundleno = 1925 (0x785), region = 124  ;;  %v1232_v6 = vadd.f32 (!%p5142_p12), %v1230_v3, %v6585_v0  ;;  %v1233_v8 = vadd.f32 (!%p5142_p12), %v1231_v5, %v6587_v1  ;;  %v1274_v26 = vld [vmem:[%s6612_s2] sm:$0xff] (!%p5142_p12)  ;;  %v1275_v27 = vld [vmem:[%s6612_s2 + $0x8] sm:$0xff] (!%p5142_p12)  ;;  %5664 = vmatprep.subr.bf16.mxu1 (!%p5142_p12), %v6287_v30  ;;  %v1277_v33 = vld [vmem:[%s6612_s2 + $0x18] sm:$0xff] (!%p5142_p12)  ;;  %vm6288_vm1 = vmmov (!%p5142_p12), 0   ;;  %v6289_v39 = vmov (!%p5142_p12), 0.0  }
  0x86   : > { %s1213_s21 = scalar_lea.vmem %s7467_s9, %s6570_s23  ;;  %s7473_s1 = sld [smem:[#allocation28_spill]] (!%p5142_p12)  ;;  %v5656_v29 = vpack.c.bf16 (!%p5142_p12), %v1275_v27, %v1274_v26  ;;  %v5660_v35 = vpack.c.bf16 (!%p5142_p12), %v1277_v33, %v1276_v32  ;;  %5389 = vmatprep.mubr.msk.f32.mxu1 (!%p5142_p12), %vm6288_vm1, %v6289_v39  ;;  %v6729_v48 = vshrl.u32 (!%p5142_p12), %v1262_v42, 7  ;;  %vm1493_vm2 = vcmask (!%p5142_p12), 64512  }
  0x87   : > { %s6676_s30 = scalar_lea.vmem %s7468_s6, %s5134_s12  ;;  %s6681_s10 = scalar_lea.vmem %s7469_s22, %s5225_s7  ;;  %v1235_v9 = vsel (!%p5142_p12), %vm1234_vm0, %v1232_v6, 0.0  ;;  %v1238_v10 = vsel (!%p5142_p12), %vm1234_vm0, %v1233_v8, 0.0  ;;  %vm6752_vm3 = vmpackc.low (!%p5142_p12), %vm1493_vm2, %vm1493_vm2  ;;  %vm1806_vm7 = vcmask (!%p5142_p12), 130048   ;;  %vm2181_vm8 = vcmask (!%p5142_p12), 195584  }
  0x88   : > { %s1221_s26 = scalar_lea.vmem %s7470_s24, %s6570_s23  ;;  %1236 = vadd.xlane.f32.xlu0 (!%p5142_p12), %v1235_v9  ;;  %5657 = vmatprep.subr.bf16.mxu0 (!%p5142_p12), %v5656_v29  ;;  %v1264_v51 = vsub.s32 (!%p5142_p12), 2, %v6729_v48  ;;  %v1270_v52 = vsub.s32 (!%p5142_p12), 3, %v6729_v48  ;;  %v1375_v54 = vsub.s32 (!%p5142_p12), 0, %v6729_v48  ;;  %v1380_v58 = vsub.s32 (!%p5142_p12), 1, %v6729_v48  ;;  %s6291_s20 = smov (!%p5142_p12), 120  }
  0x89   : > { %5659 = vmatpush3.bf16.msra.mxu0 (!%p5142_p12), %v5656_v29  ;;  %s6292_s16 = smov (!%p5142_p12), 104   ;;  %s7476_s7 = sld [smem:[#allocation16_spill]] (!%p5142_p12)  ;;  %v1467_v33 = vadd.s32 (!%p5142_p12), 1, %v6729_v48 }
  0x8a   : > { %s7472_s14 = scalar_lea.vmem (!%p5142_p12), %s7471_s13, %s6583_s15  ;;  %5661 = vmatprep.subr.bf16.mxu0 (!%p5142_p12), %v5660_v35  ;;  %v1265_v53 = vrot.slane (!%p5142_p12), %v6602_v2, %v1264_v51  ;;  %v1271_v57 = vrot.slane (!%p5142_p12), %v6602_v2, %v1270_v52  ;;  %v1376_v60 = vrot.slane (!%p5142_p12), %v6602_v2, %v1375_v54  ;;  %s6290_s15 = smov (!%p5142_p12), 112  }
  0x8b   : > { %v1359_v4 = vld [vmem:[%s7472_s14] sm:$0xff] (!%p5142_p12)  ;;  %s6294_s3 = smov (!%p5142_p12), 96   ;;  %s7477_s27 = sld [smem:[#allocation29_spill]] (!%p5142_p12) }
  0x8c   : > { %v1360_v7 = vsel %vm1234_vm0, %v1359_v4, 0.0  ;;  %1239 = vadd.xlane.f32.xlu0 %v1238_v10  ;;  %v1383_v28 = vld [vmem:[%s7473_s1] sm:$0xff]  ;;  %v1384_v31 = vld [vmem:[%s7473_s1 + $0x8] sm:$0xff]  ;;  %v1385_v36 = vld [vmem:[%s7473_s1 + $0x10] sm:$0xff]  ;;  %s6295_s18 = smov 16   ;;  %s6296_s9 = smov 8  }
  0x8d   : > { %1361 = vadd.xlane.f32.xlu1 %v1360_v7  ;;  %v5665_v34 = vpack.c.bf16 %v1384_v31, %v1383_v28  ;;  %5663 = vmatpush3.bf16.msra.mxu0 %v5660_v35  ;;  %v1386_v37 = vld [vmem:[%s7473_s1 + $0x18] sm:$0xff]  ;;  %v1463_v35 = vand.u32 127, %v1262_v42  ;;  %s6297_s6 = smov 24   ;;  %s7478_s28 = sld [smem:[#allocation44_spill]] }
  0x8e   : > { %5670 = vmatprep.subr.bf16.mxu0 %v6287_v30  ;;  %v5668_v38 = vpack.c.bf16 %v1386_v37, %v1385_v36 }
  0x8f   : > { %5666 = vmatpush3.bf16.msra.mxu1 %v5665_v34  ;;  %s1229_s2 = sld [smem:[#allocation4 + %s7476_s7]] }
  0x90   : > { %5667 = vmatprep.subr.bf16.mxu1 %v6287_v30 }
  0x93   : > { %5669 = vmatpush3.bf16.msra.mxu1 %v5668_v38  ;;  %s7479_s17 = scalar_lea.vmem %s7478_s28, %s6570_s23 }
  0x94   : > { %5674 = vmatprep.subr.bf16.mxu1 %v6287_v30 }
  0x95   : > { %v1464_v34 = vstv %s1229_s2 }
  0x96   : > { %v1465_v36 = vmul.u32 %v1464_v34, %v6729_v48  ;;  %v1468_v37 = vmul.u32 %v1467_v33, %v1464_v34 }
  0x98   : > { %vm1466_vm4 = vcmp.ge.s32.totalorder %v1463_v35, %v1465_v36  ;;  %vm1469_vm5 = vcmp.lt.s32.totalorder %v1463_v35, %v1468_v37 }
  0x99   : > { %vm1470_vm6 = vmand %vm1466_vm4, %vm1469_vm5 }
 0x115   : > { %v1237_v13 = vpop.xlane.xlu0 %1236 }
 0x116   : > { %v1242_v14 = vmul.f32 0.03125, %v1237_v13 }
 0x118   : > { %v1244_v16 = vsub.f32 %v1232_v6, %v1242_v14 }
 0x119   : > { %v1240_v17 = vpop.xlane.xlu0 %1239 }
 0x11a   : > { %v1362_v11 = vpop.xlane.xlu1 %1361  ;;  %v1243_v18 = vmul.f32 0.03125, %v1240_v17  ;;  %v1246_v19 = vmul.f32 %v1244_v16, %v1244_v16 }
 0x11b   : > { %v1363_v12 = vmul.f32 0.03125, %v1362_v11 }
 0x11c   : > { %v6707_v21 = vsub.f32 %v1233_v8, %v1243_v18  ;;  %v1248_v22 = vsel %vm1234_vm0, %v1246_v19, 0.0 }
 0x11d   : > { %v6703_v15 = vsub.f32 %v1359_v4, %v1363_v12  ;;  %1249 = vadd.xlane.f32.xlu1 %v1248_v22  ;;  %v1381_v4 = vrot.slane %v6602_v2, %v1380_v58 }
 0x11e   : > { %v1247_v24 = vmul.f32 %v6707_v21, %v6707_v21 }
 0x11f   : > { %v1365_v20 = vmul.f32 %v6703_v15, %v6703_v15 }
 0x120   : > { %v1251_v25 = vsel %vm1234_vm0, %v1247_v24, 0.0 }
 0x121   : > { %v1366_v23 = vsel %vm1234_vm0, %v1365_v20, 0.0  ;;  %1252 = vadd.xlane.f32.xlu0 %v1251_v25 }
 0x122   : > { %1367 = vadd.xlane.f32.xlu1 %v1366_v23 }
 0x1aa   : > { %v1250_v40 = vpop.xlane.xlu1 %1249 }
 0x1ab   : > { %v1254_v41 = vmul.f32 0.03125, %v1250_v40  ;;  %v6293_v40 = vmov -1e+09  }
 0x1ad   : > { %v1256_v43 = vadd.f32 1e-05, %v1254_v41  ;;  %v1471_v41 = vsel %vm1470_vm6, 0.0, %v6293_v40 }
 0x1ae   : > { %v1253_v45 = vpop.xlane.xlu0 %1252 }
 0x1af   : > { %v1368_v44 = vpop.xlane.xlu1 %1367  ;;  %5993 = vrsqrt.f32 %v1256_v43  ;;  %v1255_v47 = vmul.f32 0.03125, %v1253_v45 }
 0x1b0   : > { %v1369_v46 = vmul.f32 0.03125, %v1368_v44 }
 0x1b1   : > { %v1257_v50 = vadd.f32 1e-05, %v1255_v47 }
 0x1b2   : > { %v1370_v49 = vadd.f32 1e-05, %v1369_v46 }
 0x1b4   : > { %5995 = vrsqrt.f32 %v1370_v49 }
 0x1b5   : > { %5997 = vrsqrt.f32 %v1257_v50 }
 0x1b9   : > { %v5994_v55 = vpop.eup %5993 }
 0x1ba   : > { %v1260_v56 = vmul.f32 %v5994_v55, %v1244_v16 }
 0x1bc   : > { %v1266_v59 = vmul.f32 %v1265_v53, %v1260_v56 }
 0x1be   : > { %v5996_v61 = vpop.eup %5995  ;;  %v1272_v63 = vadd.f32 %v1271_v57, %v1266_v59 }
 0x1bf   : > { %v5998_v62 = vpop.eup %5997  ;;  %v1372_v3 = vmul.f32 %v5996_v61, %v6703_v15 }
 0x1c0   : > { %v1261_v5 = vmul.f32 %v5998_v62, %v6707_v21  ;;  %5378 = vmatprep.mubr.msk.f32.mxu0 %vm1234_vm0, %v1272_v63 }
 0x1c1   : > { %v1377_v6 = vmul.f32 %v1376_v60, %v1372_v3 }
 0x1c2   : > { %v1267_v7 = vmul.f32 %v1265_v53, %v1261_v5 }
 0x1c3   : > { %v1382_v8 = vadd.f32 %v1381_v4, %v1377_v6 }
 0x1c4   : > { %v1273_v9 = vadd.f32 %v1271_v57, %v1267_v7 }
 0x1c5   : > { %5390 = vmatmul.mubr.msk.f32.vlgmr.msra.gmra.mrb[0].mxu1 %vm1234_vm0, %v1382_v8 }
 0x1c6   : > { %5379 = vmatmul.mubr.msk.f32.vlgmr.msra.gmra.mrb[0].mxu0 %vm1234_vm0, %v1273_v9  ;;  %5403 = vmatprep.mubr.msk.f32.mxu1 %vm6288_vm1, %v6289_v39 }
 0x1c7   : > { %5396 = vmatprep.mubr.msk.f32.mxu0 %vm6288_vm1, %v6289_v39 }
 0x298   : > { %v1456_v10 = vpop.f32.mrb[0].mxu1 }
 0x299   : > { %v5380_v11 = vpop.f32.mrb[0].mxu0  ;;  %v5391_v12 = vpop.f32.mrb[1].mxu1 }
 0x29a   : > { %v1350_v13 = vpop.f32.mrb[1].mxu0 }
 0x29b   : > { %v5671_v14 = vpack.c.bf16 %v5380_v11, %v1350_v13  ;;  %v6748_v15 = vpack.i.bf16 %v5380_v11, %v1350_v13 }
 0x29d   : > { %5964 = vrot.lane.b32.xlu1 %v6748_v15, %s6290_s15  ;;  %5959 = vrot.lane.b32.xlu0 %v6748_v15, %s6291_s20 }
 0x29e   : > { %5673 = vmatpush3.bf16.xpose.msk.msra.mxu0 %vm6752_vm3, %v5671_v14 }
 0x29f   : > { %5678 = vmatprep.subr.bf16.mxu0 %v6287_v30 }
 0x2a1   : > { %5969 = vrot.lane.b32.xlu1 %v6748_v15, %s6292_s16  ;;  %1475 = vrot.lane.b32.xlu0 %v1456_v10, %s6290_s15 }
 0x2a5   : > { %5397 = vmatmul.mubr.msk.f32.vlgmr.msra.gmra.mrb[2].mxu0 %vm1493_vm2, %v1456_v10  ;;  %1473 = vrot.lane.b32.xlu1 %v1456_v10, %s6291_s20 }
 0x2a6   : > { %5410 = vmatprep.mubr.msk.f32.mxu0 %vm6288_vm1, %v6289_v39 }
 0x2a9   : > { %1477 = vrot.lane.b32.xlu1 %v1456_v10, %s6292_s16 }
 0x30f   : > { %v6765_v17 = vpop.permute.xlu1 %5964  ;;  %v6767_v18 = vpop.permute.xlu0 %5959 }
 0x310   : > { %v5967_v19 = vunpack.i.h.bf16 %v6765_v17  ;;  %v5966_v20 = vunpack.i.l.bf16 %v6765_v17  ;;  %v5962_v21 = vunpack.i.h.bf16 %v6767_v18  ;;  %v5961_v22 = vunpack.i.l.bf16 %v6767_v18 }
 0x312   : > { %v5679_v23 = vpack.c.bf16 %v5967_v19, %v5966_v20  ;;  %v5675_v24 = vpack.c.bf16 %v5962_v21, %v5961_v22 }
 0x313   : > { %v6773_v25 = vpop.permute.xlu1 %5969  ;;  %v1476_v29 = vpop.permute.xlu0 %1475 }
 0x314   : > { %v5972_v26 = vunpack.i.h.bf16 %v6773_v25  ;;  %v5971_v27 = vunpack.i.l.bf16 %v6773_v25  ;;  %5677 = vmatpush3.bf16.xpose.msk.msra.mxu1 %vm6752_vm3, %v5675_v24  ;;  %5681 = vmatpush3.bf16.xpose.msk.msra.mxu0 %vm6752_vm3, %v5679_v23 }
 0x315   : > { %5682 = vmatprep.subr.bf16.mxu1 %v6287_v30  ;;  %5692 = vmatprep.subr.bf16.mxu0 %v6287_v30 }
 0x316   : > { %v5683_v28 = vpack.c.bf16 %v5972_v26, %v5971_v27 }
 0x317   : > { %v1474_v31 = vpop.permute.xlu1 %1473 }
 0x31b   : > { %5404 = vmatmul.mubr.msk.f32.vlgmr.msra.gmra.mrb[2].mxu1 %vm1493_vm2, %v1474_v31  ;;  %5411 = vmatmul.mubr.msk.f32.vlgmr.msra.gmra.mrb[4].mxu0 %vm1493_vm2, %v1476_v29  ;;  %v1478_v32 = vpop.permute.xlu1 %1477 }
 0x31c   : > { %5685 = vmatpush3.bf16.xpose.msk.msra.mxu1 %vm6752_vm3, %v5683_v28  ;;  %5417 = vmatprep.mubr.msk.f32.mxu1 %vm6288_vm1, %v6289_v39 }
 0x31d   : > { %5686 = vmatprep.subr.bf16.mxu1 %v6287_v30  ;;  %5438 = vmatprep.mubr.msk.f32.mxu0 %vm6288_vm1, %v6289_v39 }
 0x323   : > { %5418 = vmatmul.mubr.msk.f32.vlgmr.msra.gmra.mrb[4].mxu1 %vm1493_vm2, %v1478_v32 }
 0x324   : > { %5424 = vmatprep.mubr.msk.f32.mxu1 %vm6288_vm1, %v6289_v39 }
 0x378   : > { %v1566_v38 = vpop.f32.mrb[2].mxu0 }
 0x379   : > { %v1798_v43 = vmul.f32 0.35355338, %v1566_v38  ;;  %v5398_v44 = vpop.f32.mrb[3].mxu0 }
 0x37b   : > { %v1802_v45 = vadd.f32 %v1798_v43, %v1471_v41 }
 0x37d   : > { %v1807_v46 = vsel %vm1806_vm7, %v1802_v45, -inf }
 0x37e   : > { %1808 = vmax.xlane.f32.xlu0 %v1807_v46 }
 0x3ee   : > { %v1642_v47 = vpop.f32.mrb[2].mxu1  ;;  %v1718_v49 = vpop.f32.mrb[4].mxu0 }
 0x3ef   : > { %v1799_v50 = vmul.f32 0.35355338, %v1642_v47  ;;  %v1800_v42 = vmul.f32 0.35355338, %v1718_v49  ;;  %v5405_v51 = vpop.f32.mrb[3].mxu1  ;;  %v5412_v48 = vpop.f32.mrb[5].mxu0 }
 0x3f0   : > { %v2183_v51 = vld [vmem:[%s7477_s27] sm:$0xff]  ;;  %v2184_v48 = vld [vmem:[%s7477_s27 + $0x8] sm:$0xff] }
 0x3f1   : > { %v1803_v52 = vadd.f32 %v1799_v50, %v1471_v41  ;;  %v1804_v53 = vadd.f32 %v1800_v42, %v1471_v41 }
 0x3f3   : > { %v1810_v54 = vsel %vm1806_vm7, %v1803_v52, -inf  ;;  %v1813_v55 = vsel %vm1806_vm7, %v1804_v53, -inf }
 0x3f4   : > { %1811 = vmax.xlane.f32.xlu1 %v1810_v54  ;;  %1814 = vmax.xlane.f32.xlu0 %v1813_v55  ;;  %v2186_v54 = vld [vmem:[%s7477_s27 + $0x18] sm:$0xff] }
 0x3f6   : > { %v1794_v56 = vpop.f32.mrb[4].mxu1 }
 0x3f7   : > { %v1801_v57 = vmul.f32 0.35355338, %v1794_v56  ;;  %v5419_v58 = vpop.f32.mrb[5].mxu1 }
 0x3f9   : > { %v1805_v59 = vadd.f32 %v1801_v57, %v1471_v41 }
 0x3fb   : > { %v1816_v60 = vsel %vm1806_vm7, %v1805_v59, -inf }
 0x3fc   : > { %1817 = vmax.xlane.f32.xlu0 %v1816_v60 }
 0x40b   : > { %v1809_v61 = vpop.xlane.xlu0 %1808 }
 0x40c   : > { %v1819_v62 = vsub.f32 %v1802_v45, %v1809_v61 }
 0x40e   : > { %v1823_v63 = vmul.f32 1.442695, %v1819_v62 }
 0x410   : > { %5999 = vpow2.f32 %v1823_v63 }
 0x41a   : > { %v6000_v3 = vpop.eup %5999 }
 0x41b   : > { %v1831_v4 = vsel %vm1806_vm7, %v6000_v3, 0.0 }
 0x41c   : > { %1832 = vadd.xlane.f32.xlu0 %v1831_v4 }
 0x481   : > { %v1812_v5 = vpop.xlane.xlu1 %1811  ;;  %v1815_v6 = vpop.xlane.xlu0 %1814 }
 0x482   : > { %v1820_v7 = vsub.f32 %v1803_v52, %v1812_v5  ;;  %v1821_v8 = vsub.f32 %v1804_v53, %v1815_v6  ;;  %v2185_v52 = vld [vmem:[%s7477_s27 + $0x10] sm:$0xff]  ;;  %v5699_v53 = vpack.c.bf16 %v2184_v48, %v2183_v51 }
 0x483   : > { %v5702_v55 = vpack.c.bf16 %v2186_v54, %v2185_v52 }
 0x484   : > { %v1825_v9 = vmul.f32 1.442695, %v1820_v7  ;;  %v1827_v10 = vmul.f32 1.442695, %v1821_v8  ;;  %v5162_v7 = vld [vmem:[%s7479_s17] ss:$0 sm:$0xff] }
 0x486   : > { %6001 = vpow2.f32 %v1825_v9 }
 0x487   : > { %6003 = vpow2.f32 %v1827_v10 }
 0x489   : > { %v1818_v16 = vpop.xlane.xlu0 %1817 }
 0x48a   : > { %v1822_v19 = vsub.f32 %v1805_v59, %v1818_v16 }
 0x48c   : > { %v1829_v20 = vmul.f32 1.442695, %v1822_v19 }
 0x48e   : > { %6005 = vpow2.f32 %v1829_v20 }
 0x490   : > { %v6002_v11 = vpop.eup %6001 }
 0x491   : > { %v6004_v12 = vpop.eup %6003  ;;  %v1834_v13 = vsel %vm1806_vm7, %v6002_v11, 0.0 }
 0x492   : > { %1835 = vadd.xlane.f32.xlu1 %v1834_v13  ;;  %v1837_v14 = vsel %vm1806_vm7, %v6004_v12, 0.0 }
 0x493   : > { %1838 = vadd.xlane.f32.xlu0 %v1837_v14 }
 0x498   : > { %v6006_v21 = vpop.eup %6005 }
 0x499   : > { %v1840_v22 = vsel %vm1806_vm7, %v6006_v21, 0.0 }
 0x4a3   : > { %5979 = vrot.lane.b32.xlu1 %v6767_v18, %s6294_s3 }
 0x4a7   : > { %5984 = vrot.lane.b32.xlu1 %v6765_v17, %s6294_s3 }
 0x4a9   : > { %5974 = vrot.lane.b32.xlu0 %v6748_v15, %s6294_s3  ;;  %v1833_v23 = vpop.xlane.xlu0 %1832 }
 0x4aa   : > { %6007 = vrcp.f32 %v1833_v23 }
 0x4b4   : > { %v6008_v28 = vpop.eup %6007 }
 0x4cb   : > { %1841 = vadd.xlane.f32.xlu1 %v1840_v22 }
 0x4dc   : > { %5989 = vrot.lane.b32.xlu1 %v6773_v25, %s6294_s3  ;;  %v1844_v25 = vmul.f32 %v6008_v28, %v6000_v3 }
 0x51f   : > { %v1836_v24 = vpop.xlane.xlu1 %1835 }
 0x520   : > { %6009 = vrcp.f32 %v1836_v24  ;;  %v1839_v26 = vpop.xlane.xlu0 %1838 }
 0x521   : > { %6011 = vrcp.f32 %v1839_v26 }
 0x523   : > { %v5980_v18 = vpop.permute.xlu1 %5979 }
 0x524   : > { %v5975_v17 = vpop.permute.xlu0 %5974  ;;  %v5982_v29 = vunpack.i.h.bf16 %v5980_v18  ;;  %v5981_v31 = vunpack.i.l.bf16 %v5980_v18 }
 0x525   : > { %v5977_v27 = vunpack.i.h.bf16 %v5975_v17  ;;  %v5976_v15 = vunpack.i.l.bf16 %v5975_v17 }
 0x526   : > { %v5690_v40 = vpack.c.bf16 %v5982_v29, %v5981_v31 }
 0x527   : > { %v5687_v32 = vpack.c.bf16 %v5977_v27, %v5976_v15  ;;  %v5985_v33 = vpop.permute.xlu1 %5984 }
 0x528   : > { %v5987_v34 = vunpack.i.h.bf16 %v5985_v33  ;;  %v5986_v35 = vunpack.i.l.bf16 %v5985_v33 }
 0x529   : > { %5688 = vmatpush3.bf16.msra.mxu1 %v5687_v32 }
 0x52a   : > { %v6010_v36 = vpop.eup %6009  ;;  %v5693_v37 = vpack.c.bf16 %v5987_v34, %v5986_v35  ;;  %5689 = vmatprep.subr.bf16.mxu1 %v6287_v30 }
 0x52b   : > { %v6012_v38 = vpop.eup %6011  ;;  %v1846_v43 = vmul.f32 %v6010_v36, %v6002_v11 }
 0x52c   : > { %5425 = vmatmul.mubr.msk.f32.vlgmr.msra.gmra.mrb[6].mxu1 %vm1806_vm7, %v1844_v25  ;;  %5694 = vmatpush3.bf16.msra.mxu0 %v5693_v37  ;;  %v1848_v41 = vmul.f32 %v6012_v38, %v6004_v12 }
 0x52d   : > { %5691 = vmatpush3.bf16.msra.mxu1 %v5690_v40  ;;  %5431 = vmatprep.mubr.msk.f32.mxu1 %vm6288_vm1, %v6289_v39 }
 0x52e   : > { %5695 = vmatprep.subr.bf16.mxu1 %v6287_v30  ;;  %5698 = vmatprep.subr.bf16.mxu0 %v6287_v30 }
 0x52f   : > { %5439 = vmatmul.mubr.msk.f32.vlgmr.msra.gmra.mrb[6].mxu0 %vm1806_vm7, %v1848_v41 }
 0x530   : > { %5432 = vmatmul.mubr.msk.f32.vlgmr.msra.gmra.mrb[8].mxu1 %vm1806_vm7, %v1846_v43  ;;  %5456 = vmatprep.mubr.msk.f32.mxu0 %vm6288_vm1, %v6289_v39 }
 0x531   : > { %5445 = vmatprep.mubr.msk.f32.mxu1 %vm6288_vm1, %v6289_v39  ;;  %5700 = vmatpush3.bf16.msra.mxu0 %v5699_v53 }
 0x532   : > { %5701 = vmatprep.subr.bf16.mxu0 %v6287_v30 }
 0x535   : > { %5703 = vmatpush3.bf16.msra.mxu0 %v5702_v55 }
 0x558   : > { %v1842_v44 = vpop.xlane.xlu1 %1841 }
 0x559   : > { %6013 = vrcp.f32 %v1842_v44 }
 0x55c   : > { %v5990_v45 = vpop.permute.xlu1 %5989 }
 0x55d   : > { %v5992_v46 = vunpack.i.h.bf16 %v5990_v45  ;;  %v5991_v47 = vunpack.i.l.bf16 %v5990_v45 }
 0x55f   : > { %v5696_v49 = vpack.c.bf16 %v5992_v46, %v5991_v47 }
 0x561   : > { %5697 = vmatpush3.bf16.msra.mxu1 %v5696_v49 }
 0x563   : > { %v6014_v50 = vpop.eup %6013 }
 0x564   : > { %v1850_v42 = vmul.f32 %v6014_v50, %v6006_v21 }
 0x566   : > { %5446 = vmatmul.mubr.msk.f32.vlgmr.msra.gmra.mrb[10].mxu1 %vm1806_vm7, %v1850_v42 }
 0x5ff   : > { %v1926_v39 = vpop.f32.mrb[6].mxu1 }
 0x600   : > { %v5426_v56 = vpop.f32.mrb[7].mxu1 }
 0x602   : > { %v2084_v57 = vpop.f32.mrb[6].mxu0 }
 0x603   : > { %v2005_v58 = vpop.f32.mrb[8].mxu1  ;;  %2172 = vrot.lane.b32.xlu1 %v2084_v57, %s6295_s18  ;;  %v5440_v59 = vpop.f32.mrb[7].mxu0 }
 0x604   : > { %2168 = vrot.lane.b32.xlu0 %v2005_v58, %s6296_s9  ;;  %v5433_v60 = vpop.f32.mrb[9].mxu1 }
 0x639   : > { %v2163_v61 = vpop.f32.mrb[10].mxu1 }
 0x63a   : > { %2176 = vrot.lane.b32.xlu0 %v2163_v61, %s6297_s6  ;;  %v5447_v62 = vpop.f32.mrb[11].mxu1 }
 0x675   : > { %v2173_v3 = vpop.permute.xlu1 %2172 }
 0x676   : > { %v2169_v63 = vpop.permute.xlu0 %2168 }
 0x677   : > { %v2179_v30 = vsel %vm1493_vm2, %v1926_v39, %v2169_v63 }
 0x678   : > { %v2180_v4 = vsel %vm1806_vm7, %v2179_v30, %v2173_v3 }
 0x6ac   : > { %v2177_v5 = vpop.permute.xlu0 %2176 }
 0x6ad   : > { %v2182_v6 = vsel %vm2181_vm8, %v2180_v4, %v2177_v5 }
 0x6ae   : > { %5457 = vmatmul.mubr.msk.f32.vlgmr.msra.gmra.mrb[8].mxu0 %vm1234_vm0, %v2182_v6 }
 0x781   : > { %v2263_v8 = vpop.f32.mrb[8].mxu0 }
 0x782   : > { %v2264_v9 = vadd.f32 %v5162_v7, %v2263_v8  ;;  %v5458_v10 = vpop.f32.mrb[9].mxu0 }
 0x784   : > { %2267 = vst.msk [vmem:[#allocation2] sm:$0xff] %vm1234_vm0, %v2264_v9 }
 0x785 PF: > { %s7480_s24 = sld [smem:[#allocation33_spill]]  ;;  %vm2270_vm9 = vcmask 261120   ;;  %v6298_v24 = vmov 0.0|0.0   ;;  %vm6299_vm10 = vmmov 0   ;;  %v6300_v17 = vmov 0.0   ;;  %s7481_s11 = sld [smem:[#allocation32_spill]] }
 0x786   : > { %5704 = vmatprep.subr.bf16.mxu1 %v6298_v24  ;;  %5467 = vmatprep.mubr.msk.f32.mxu1 %vm6299_vm10, %v6300_v17  ;;  %v2285_v29 = vlaneseq  ;;  %s6301_s12 = smov 104   ;;  %s6302_s13 = smov 120   ;;  %vm2386_vm11 = vcmask 64512   ;;  %vm3060_vm13 = vcmask 130048   ;;  %vm3062_vm14 = vcmask 195584  }
 0x787   : > { %5480 = vmatprep.subr.mxu0 %v6300_v17  ;;  %5482 = vmatprep.mubr.msk.f32.mxu0 %vm6299_vm10, %v6300_v17  ;;  %s6303_s14 = smov 112   ;;  %s6304_s1 = smov 96  }
 0x788   : > { %v6856_v32 = vshrl.u32 %v2285_v29, 7  ;;  %v6911_v48 = vand.u32 127, %v2285_v29  ;;  %s6305_s15 = smov 64   ;;  %s7484_s20 = sld [smem:[#allocation34_spill]] }
 0x789   : > { %s6306_s16 = smov 8   ;;  %s6307_s7 = smov 16  }
 0x78a   : > { %v2287_v33 = vsub.s32 0, %v6856_v32  ;;  %v2292_v35 = vsub.s32 1, %v6856_v32  ;;  %vm6915_vm12 = vcmp.gt.s32.totalorder %v6911_v48, %v6856_v32  ;;  %s6308_s2 = smov 24   ;;  %s7485_s18 = sld [smem:[#allocation48_spill]] }
 0x78b   : > { %v6838_v11 = vld [vmem:[#allocation2] sm:$0xff]  ;;  %v2296_v22 = vld [vmem:[%s7480_s24 + $0x8] sm:$0xff]  ;;  %v2297_v23 = vld [vmem:[%s7480_s24 + $0x10] sm:$0xff]  ;;  %p5182_p1 = scmp.ne.s32.totalorder %s6259_s25, 1 }
 0x78c   : > { %v2271_v12 = vsel %vm2270_vm9, %v6838_v11, 0.0  ;;  %v2295_v21 = vld [vmem:[%s7480_s24] sm:$0xff]  ;;  %v2298_v18 = vld [vmem:[%s7480_s24 + $0x18] sm:$0xff]  ;;  %s7489_s28 = sld [smem:[#allocation30_spill]] (!%p5182_p1)  ;;  %s6310_s25 = smov (!%p5182_p1), 120   ;;  %vm7075_vm0 = vmpackc.low (!%p5182_p1), %vm2386_vm11, %vm2386_vm11 }
 0x78d   : > { %2272 = vadd.xlane.f32.xlu0 %v2271_v12  ;;  %v5705_v26 = vpack.c.bf16 %v2296_v22, %v2295_v21  ;;  %v5708_v27 = vpack.c.bf16 %v2298_v18, %v2297_v23  ;;  %v6860_v34 = vld [vmem:[%s7481_s11] sm:$0xf]  ;;  %s6313_s17 = smov (!%p5182_p1), 96   ;;  %s7494_s24 = sld [smem:[#allocation16_spill]] (!%p5182_p1) }
 0x78e   : > { %v2288_v36 = vrot.slane %v6860_v34, %v2287_v33  ;;  %v2293_v38 = vrot.slane %v6860_v34, %v2292_v35  ;;  %s6316_s3 = smov (!%p5182_p1), 16   ;;  %s6317_s27 = smov (!%p5182_p1), 24  }
 0x78f   : > { %5706 = vmatpush3.bf16.msra.mxu1 %v5705_v26 }
 0x790   : > { %5707 = vmatprep.subr.bf16.mxu1 %v6298_v24  ;;  %s7486_s9 = scalar_lea.vmem %s7485_s18, %s6633_s5  ;;  %s6311_s5 = smov (!%p5182_p1), 112  }
 0x793   : > { %5709 = vmatpush3.bf16.msra.mxu1 %v5708_v27  ;;  %s7135_s11 = sld [smem:[#allocation7 + %s7494_s24]] (!%p5182_p1)  ;;  %p5215_p3 = scmp.ne.s32.totalorder (!%p5182_p1), %s7494_s24, 0 }
 0x794   : > { %5470 = vmatprep.subr.mxu1 %v6300_v17 }
 0x81a   : > { %v2273_v13 = vpop.xlane.xlu0 %2272 }
 0x81b   : > { %v2275_v14 = vmul.f32 0.03125, %v2273_v13 }
 0x81d   : > { %v2276_v16 = vsub.f32 %v6838_v11, %v2275_v14 }
 0x81f   : > { %v2277_v19 = vmul.f32 %v2276_v16, %v2276_v16 }
 0x821   : > { %v2278_v20 = vsel %vm2270_vm9, %v2277_v19, 0.0 }
 0x822   : > { %2279 = vadd.xlane.f32.xlu0 %v2278_v20 }
 0x8af   : > { %v2280_v15 = vpop.xlane.xlu0 %2279 }
 0x8b0   : > { %v2281_v28 = vmul.f32 0.03125, %v2280_v15 }
 0x8b2   : > { %v2282_v31 = vadd.f32 1e-05, %v2281_v28 }
 0x8b4   : > { %6015 = vrsqrt.f32 %v2282_v31 }
 0x8be   : > { %v6016_v25 = vpop.eup %6015 }
 0x8bf   : > { %v2284_v37 = vmul.f32 %v6016_v25, %v2276_v16 }
 0x8c1   : > { %v2289_v40 = vmul.f32 %v2288_v36, %v2284_v37 }
 0x8c3   : > { %v2294_v41 = vadd.f32 %v2293_v38, %v2289_v40 }
 0x8c5   : > { %5468 = vmatmul.mubr.msk.f32.vlgmr.msra.gmra.mrb[0].mxu1 %vm2270_vm9, %v2294_v41 }
 0x8c6   : > { %5472 = vmatprep.mubr.msk.f32.mxu1 %vm6299_vm10, %v6300_v17 }
 0x998   : > { %v6872_v43 = vpop.f32.mrb[0].mxu1 }
 0x999   : > { %2382 = vrot.lane.b32.xlu0 %v6872_v43, %s6301_s12  ;;  %2378 = vrot.lane.b32.xlu1 %v6872_v43, %s6302_s13  ;;  %v5469_v44 = vpop.f32.mrb[1].mxu1  ;;  %s3384_s12 = ssub.f32 (!%p5182_p1), 1.0, %s7135_s11 }
 0x99d   : > { %2380 = vrot.lane.b32.xlu1 %v6872_v43, %s6303_s14 }
 0x9a1   : > { %2384 = vrot.lane.b32.xlu1 %v6872_v43, %s6304_s1 }
 0xa0b   : > { %v6878_v45 = vpop.permute.xlu1 %2378  ;;  %v6884_v47 = vpop.permute.xlu0 %2382 }
 0xa0c   : > { %2461 = vrot.lane.b32.xlu1 %v6878_v45, %s6304_s1 }
 0xa0f   : > { %v6881_v46 = vpop.permute.xlu1 %2380 }
 0xa10   : > { %2537 = vrot.lane.b32.xlu1 %v6881_v46, %s6304_s1 }
 0xa13   : > { %v2385_v49 = vpop.permute.xlu1 %2384 }
 0xa14   : > { %2613 = vrot.lane.b32.xlu1 %v6884_v47, %s6304_s1  ;;  %5471 = vmatpush3.xpose.msk.msra.mxu1 %vm2386_vm11, %v2385_v49 }
 0xa15   : > { %5475 = vmatprep.subr.mxu1 %v6300_v17 }
 0xa17   : > { %5473 = vmatmul.mubr.msk.f32.vlgmr.msra.gmra.mrb[2].mxu1 %vm2386_vm11, %v6872_v43 }
 0xa18   : > { %5477 = vmatprep.mubr.msk.f32.mxu1 %vm6299_vm10, %v6300_v17 }
 0xa7e   : > { %v2462_v50 = vpop.permute.xlu1 %2461 }
 0xa7f   : > { %5476 = vmatpush3.xpose.msk.msra.mxu1 %vm2386_vm11, %v2462_v50 }
 0xa80   : > { %5485 = vmatprep.subr.mxu1 %v6300_v17 }
 0xa82   : > { %5478 = vmatmul.mubr.msk.f32.vlgmr.msra.gmra.mrb[4].mxu1 %vm2386_vm11, %v6878_v45  ;;  %v2538_v42 = vpop.permute.xlu1 %2537 }
 0xa83   : > { %5481 = vmatpush3.xpose.msk.msra.mxu0 %vm2386_vm11, %v2538_v42  ;;  %5487 = vmatprep.mubr.msk.f32.mxu1 %vm6299_vm10, %v6300_v17 }
 0xa84   : > { %5490 = vmatprep.subr.mxu0 %v6300_v17 }
 0xa86   : > { %5483 = vmatmul.mubr.msk.f32.vlgmr.msra.gmra.mrb[0].mxu0 %vm2386_vm11, %v6881_v46  ;;  %v2614_v51 = vpop.permute.xlu1 %2613 }
 0xa87   : > { %5486 = vmatpush3.xpose.msk.msra.mxu1 %vm2386_vm11, %v2614_v51  ;;  %5492 = vmatprep.mubr.msk.f32.mxu0 %vm6299_vm10, %v6300_v17 }
 0xa88   : > { %5495 = vmatprep.subr.mxu1 %v6300_v17 }
 0xa8a   : > { %5488 = vmatmul.mubr.msk.f32.vlgmr.msra.gmra.mrb[6].mxu1 %vm2386_vm11, %v6884_v47 }
 0xa8b   : > { %5497 = vmatprep.mubr.msk.f32.mxu1 %vm6299_vm10, %v6300_v17 }
 0xaea   : > { %v2457_v52 = vpop.f32.mrb[2].mxu1 }
 0xaeb   : > { %v2689_v54 = vmul.f32 0.35355338, %v2457_v52  ;;  %v5474_v55 = vpop.f32.mrb[3].mxu1 }
 0xaed   : > { %v2695_v39 = vsel %vm6915_vm12, -1e+09, %v2689_v54 }
 0xaee   : > { %v2699_v56 = vsel %vm2386_vm11, %v2695_v39, -inf }
 0xaef   : > { %2700 = vmax.xlane.f32.xlu1 %v2699_v56 }
 0xb55   : > { %v2533_v57 = vpop.f32.mrb[4].mxu1 }
 0xb56   : > { %v2690_v58 = vmul.f32 0.35355338, %v2533_v57  ;;  %v5479_v59 = vpop.f32.mrb[5].mxu1 }
 0xb57   : > { %v3065_v59 = vld [vmem:[%s7484_s20 + $0x8] sm:$0xff] }
 0xb58   : > { %v2696_v60 = vsel %vm6915_vm12, -1e+09, %v2690_v58  ;;  %v3064_v58 = vld [vmem:[%s7484_s20] sm:$0xff] }
 0xb59   : > { %v2609_v61 = vpop.f32.mrb[0].mxu0  ;;  %v2702_v62 = vsel %vm2386_vm11, %v2696_v60, -inf }
 0xb5a   : > { %v2691_v63 = vmul.f32 0.35355338, %v2609_v61  ;;  %v5484_v3 = vpop.f32.mrb[1].mxu0  ;;  %2703 = vmax.xlane.f32.xlu0 %v2702_v62  ;;  %v3066_v61 = vld [vmem:[%s7484_s20 + $0x10] sm:$0xff]  ;;  %v3067_v62 = vld [vmem:[%s7484_s20 + $0x18] sm:$0xff]  ;;  %s6314_s20 = smov (!%p5182_p1), 64  }
 0xb5c   : > { %v2697_v30 = vsel %vm6915_vm12, -1e+09, %v2691_v63  ;;  %v5714_v63 = vpack.c.bf16 %v3067_v62, %v3066_v61  ;;  %v3289_v62 = vld [vmem:[%s6676_s30 + $0x30] sm:$0xff] }
 0xb5d   : > { %v2685_v4 = vpop.f32.mrb[6].mxu1  ;;  %v2705_v5 = vsel %vm2386_vm11, %v2697_v30, -inf }
 0xb5e   : > { %v2692_v6 = vmul.f32 0.35355338, %v2685_v4  ;;  %2706 = vmax.xlane.f32.xlu1 %v2705_v5  ;;  %v5489_v7 = vpop.f32.mrb[7].mxu1 }
 0xb60   : > { %v2698_v8 = vsel %vm6915_vm12, -1e+09, %v2692_v6 }
 0xb61   : > { %v2708_v9 = vsel %vm2386_vm11, %v2698_v8, -inf }
 0xb62   : > { %2709 = vmax.xlane.f32.xlu0 %v2708_v9 }
 0xb6f   : > { %2743 = vrot.lane.b32.xlu1 %v6872_v43, %s6305_s15 }
 0xb7c   : > { %v2701_v10 = vpop.xlane.xlu1 %2700 }
 0xb7d   : > { %v2711_v12 = vsub.f32 %v2695_v39, %v2701_v10 }
 0xb7f   : > { %v2715_v13 = vmul.f32 1.442695, %v2711_v12 }
 0xb81   : > { %6017 = vpow2.f32 %v2715_v13 }
 0xb8b   : > { %v6018_v14 = vpop.eup %6017 }
 0xb8c   : > { %v2723_v16 = vsel %vm2386_vm11, %v6018_v14, 0.0 }
 0xb93   : > { %2724 = vadd.xlane.f32.xlu1 %v2723_v16  ;;  %v5177_v16 = vld [vmem:[%s7486_s9] ss:$0 sm:$0xff] }
 0xbe7   : > { %v2704_v19 = vpop.xlane.xlu0 %2703 }
 0xbe8   : > { %v2712_v20 = vsub.f32 %v2696_v60, %v2704_v19  ;;  %v5711_v60 = vpack.c.bf16 %v3065_v59, %v3064_v58  ;;  %v3286_v58 = vld [vmem:[%s6676_s30 + $0x18] sm:$0xff] }
 0xbea   : > { %v2717_v21 = vmul.f32 1.442695, %v2712_v20 }
 0xbeb   : > { %v2707_v22 = vpop.xlane.xlu1 %2706 }
 0xbec   : > { %6019 = vpow2.f32 %v2717_v21  ;;  %v2713_v23 = vsub.f32 %v2697_v30, %v2707_v22 }
 0xbee   : > { %v2719_v26 = vmul.f32 1.442695, %v2713_v23 }
 0xbef   : > { %v2744_v18 = vpop.permute.xlu1 %2743  ;;  %v2710_v27 = vpop.xlane.xlu0 %2709 }
 0xbf0   : > { %6021 = vpow2.f32 %v2719_v26  ;;  %v2714_v15 = vsub.f32 %v2698_v8, %v2710_v27  ;;  %5491 = vmatpush3.msra.mxu0 %v2744_v18 }
 0xbf1   : > { %5500 = vmatprep.subr.mxu0 %v6300_v17 }
 0xbf2   : > { %v2721_v28 = vmul.f32 1.442695, %v2714_v15 }
 0xbf4   : > { %6023 = vpow2.f32 %v2721_v28  ;;  %v3172_v28 = vld [vmem:[%s6659_s0] sm:$0xff] }
 0xbf6   : > { %v6020_v29 = vpop.eup %6019 }
 0xbf7   : > { %v2726_v31 = vsel %vm2386_vm11, %v6020_v29, 0.0 }
 0xbf8   : > { %2727 = vadd.xlane.f32.xlu0 %v2726_v31 }
 0xbfa   : > { %v6022_v36 = vpop.eup %6021 }
 0xbfb   : > { %v2729_v25 = vsel %vm2386_vm11, %v6022_v36, 0.0 }
 0xbfc   : > { %2730 = vadd.xlane.f32.xlu1 %v2729_v25 }
 0xbfe   : > { %v6024_v37 = vpop.eup %6023 }
 0xbff   : > { %v2732_v38 = vsel %vm2386_vm11, %v6024_v37, 0.0 }
 0xc00   : > { %2733 = vadd.xlane.f32.xlu0 %v2732_v38 }
 0xc0d   : > { %2895 = vrot.lane.b32.xlu1 %v6881_v46, %s6305_s15 }
 0xc11   : > { %2971 = vrot.lane.b32.xlu1 %v6884_v47, %s6305_s15 }
 0xc16   : > { %2819 = vrot.lane.b32.xlu0 %v6878_v45, %s6305_s15 }
 0xc20   : > { %v2725_v40 = vpop.xlane.xlu1 %2724 }
 0xc21   : > { %6025 = vrcp.f32 %v2725_v40 }
 0xc2b   : > { %v6026_v41 = vpop.eup %6025 }
 0xc2c   : > { %v6944_v43 = vmul.f32 %v6026_v41, %v6018_v14  ;;  %v3164_v41 = vsub.s32 2, %v6856_v32 }
 0xc2e   : > { %5493 = vmatmul.mubr.msk.f32.vlgmr.msra.gmra.mrb[2].mxu0 %vm2386_vm11, %v6944_v43 }
 0xc2f   : > { %5502 = vmatprep.mubr.msk.f32.mxu0 %vm6299_vm10, %v6300_v17 }
 0xc85   : > { %v2728_v44 = vpop.xlane.xlu0 %2727 }
 0xc86   : > { %6027 = vrcp.f32 %v2728_v44  ;;  %v3169_v44 = vsub.s32 3, %v6856_v32 }
 0xc89   : > { %v2731_v46 = vpop.xlane.xlu1 %2730 }
 0xc8a   : > { %6029 = vrcp.f32 %v2731_v46  ;;  %v3165_v46 = vrot.slane %v6860_v34, %v3164_v41 }
 0xc8d   : > { %v2896_v49 = vpop.permute.xlu1 %2895  ;;  %v2734_v47 = vpop.xlane.xlu0 %2733 }
 0xc8e   : > { %6031 = vrcp.f32 %v2734_v47  ;;  %5501 = vmatpush3.msra.mxu0 %v2896_v49 }
 0xc8f   : > { %5722 = vmatprep.subr.bf16.mxu0 %v6298_v24 }
 0xc90   : > { %v6028_v45 = vpop.eup %6027 }
 0xc91   : > { %v6951_v50 = vmul.f32 %v6028_v45, %v6020_v29  ;;  %v2820_v42 = vpop.permute.xlu0 %2819  ;;  %v2972_v51 = vpop.permute.xlu1 %2971  ;;  %v3173_v29 = vld [vmem:[%s6659_s0 + $0x8] sm:$0xff]  ;;  %v3170_v45 = vrot.slane %v6860_v34, %v3169_v44  ;;  %v3287_v34 = vld [vmem:[%s6676_s30 + $0x20] sm:$0xff] }
 0xc92   : > { %5496 = vmatpush3.msra.mxu1 %v2820_v42  ;;  %v5717_v31 = vpack.c.bf16 %v3173_v29, %v3172_v28 }
 0xc93   : > { %5498 = vmatmul.mubr.msk.f32.vlgmr.msra.gmra.mrb[8].mxu1 %vm2386_vm11, %v6951_v50  ;;  %5505 = vmatprep.subr.mxu1 %v6300_v17 }
 0xc94   : > { %v6030_v52 = vpop.eup %6029  ;;  %5506 = vmatpush3.msra.mxu1 %v2972_v51  ;;  %5507 = vmatprep.mubr.msk.f32.mxu1 %vm6299_vm10, %v6300_v17 }
 0xc95   : > { %v6958_v54 = vmul.f32 %v6030_v52, %v6022_v36  ;;  %5710 = vmatprep.subr.bf16.mxu1 %v6298_v24  ;;  %v3175_v36 = vld [vmem:[%s6659_s0 + $0x18] sm:$0xff]  ;;  %v3283_v52 = vld [vmem:[%s6676_s30] sm:$0xff] }
 0xc97   : > { %5503 = vmatmul.mubr.msk.f32.vlgmr.msra.gmra.mrb[4].mxu0 %vm2386_vm11, %v6958_v54 }
 0xc98   : > { %v6032_v55 = vpop.eup %6031  ;;  %5564 = vmatprep.mubr.msk.f32.mxu0 %vm6299_vm10, %v6300_v17 }
 0xc99   : > { %v6965_v39 = vmul.f32 %v6032_v55, %v6024_v37  ;;  %v3284_v55 = vld [vmem:[%s6676_s30 + $0x8] sm:$0xff] }
 0xc9b   : > { %5508 = vmatmul.mubr.msk.f32.vlgmr.msra.gmra.mrb[10].mxu1 %vm2386_vm11, %v6965_v39 }
 0xc9c   : > { %5518 = vmatprep.mubr.msk.f32.mxu1 %vm6299_vm10, %v6300_v17  ;;  %5712 = vmatpush3.bf16.msra.mxu1 %v5711_v60  ;;  %v3288_v60 = vld [vmem:[%s6676_s30 + $0x28] sm:$0xff] }
 0xc9d   : > { %5713 = vmatprep.subr.bf16.mxu1 %v6298_v24  ;;  %v5729_v61 = vpack.c.bf16 %v3288_v60, %v3287_v34 }
 0xca0   : > { %5715 = vmatpush3.bf16.msra.mxu1 %v5714_v63  ;;  %v3290_v63 = vld [vmem:[%s6676_s30 + $0x38] sm:$0xff] }
 0xca1   : > { %5716 = vmatprep.subr.bf16.mxu1 %v6298_v24 }
 0xd01   : > { %v2815_v56 = vpop.f32.mrb[2].mxu0 }
 0xd02   : > { %v5494_v57 = vpop.f32.mrb[3].mxu0 }
 0xd03   : > { %v3285_v57 = vld [vmem:[%s6676_s30 + $0x10] sm:$0xff] }
 0xd04   : > { %v5726_v59 = vpack.c.bf16 %v3286_v58, %v3285_v57  ;;  %v5181_v58 = vld [vmem:[%s1200_s19] ss:$0 sm:$0xff]  ;;  %s6312_s19 = smov (!%p5182_p1), 104  }
 0xd66   : > { %v2891_v3 = vpop.f32.mrb[8].mxu1 }
 0xd67   : > { %3048 = vrot.lane.b32.xlu0 %v2891_v3, %s6306_s16  ;;  %v5499_v30 = vpop.f32.mrb[9].mxu1  ;;  %v5732_v3 = vpack.c.bf16 %v3290_v63, %v3289_v62  ;;  %v3393_v62 = vsel (!%p5182_p1), %vm2270_vm9, %v6587_v1, 0.0 }
 0xd68   : > { %v3291_v30 = vld [vmem:[%s6676_s30 + $0x40] sm:$0xff] }
 0xd6a   : > { %v2967_v4 = vpop.f32.mrb[4].mxu0 }
 0xd6b   : > { %3052 = vrot.lane.b32.xlu1 %v2967_v4, %s6307_s7  ;;  %v5504_v5 = vpop.f32.mrb[5].mxu0  ;;  %v3292_v4 = vld [vmem:[%s6676_s30 + $0x48] sm:$0xff]  ;;  %s7495_s7 = sld [smem:[#allocation31_spill]] (!%p5182_p1) }
 0xd6c   : > { %v5735_v5 = vpack.c.bf16 %v3292_v4, %v3291_v30 }
 0xd6e   : > { %v3043_v6 = vpop.f32.mrb[10].mxu1 }
 0xd6f   : > { %3056 = vrot.lane.b32.xlu0 %v3043_v6, %s6308_s2  ;;  %v5509_v7 = vpop.f32.mrb[11].mxu1  ;;  %v3293_v6 = vld [vmem:[%s6676_s30 + $0x50] sm:$0xff]  ;;  %s6315_s2 = smov (!%p5182_p1), 8  }
 0xd70   : > { %v3294_v7 = vld [vmem:[%s6676_s30 + $0x58] sm:$0xff] }
 0xdd9   : > { %v3049_v8 = vpop.permute.xlu0 %3048 }
 0xdda   : > { %v3059_v10 = vsel %vm2386_vm11, %v2815_v56, %v3049_v8  ;;  %v5723_v56 = vpack.c.bf16 %v3284_v55, %v3283_v52  ;;  %v5738_v8 = vpack.c.bf16 %v3294_v7, %v3293_v6 }
 0xddc   : > { %5724 = vmatpush3.bf16.msra.mxu0 %v5723_v56 }
 0xddd   : > { %v3053_v9 = vpop.permute.xlu1 %3052  ;;  %5725 = vmatprep.subr.bf16.mxu0 %v6298_v24 }
 0xdde   : > { %v3061_v12 = vsel %vm3060_vm13, %v3059_v10, %v3053_v9  ;;  %v3295_v9 = vld [vmem:[%s6676_s30 + $0x60] sm:$0xff]  ;;  %v3296_v10 = vld [vmem:[%s6676_s30 + $0x68] sm:$0xff] }
 0xde0   : > { %5727 = vmatpush3.bf16.msra.mxu0 %v5726_v59 }
 0xde1   : > { %v3057_v13 = vpop.permute.xlu0 %3056  ;;  %5728 = vmatprep.subr.bf16.mxu0 %v6298_v24 }
 0xde2   : > { %v3063_v14 = vsel %vm3062_vm14, %v3061_v12, %v3057_v13  ;;  %v5741_v12 = vpack.c.bf16 %v3296_v10, %v3295_v9  ;;  %v3297_v13 = vld [vmem:[%s6676_s30 + $0x70] sm:$0xff]  ;;  %v3428_v10 = vld [vmem:[%s7489_s28] sm:$0xff] (!%p5182_p1) }
 0xde3   : > { %5519 = vmatmul.mubr.msk.f32.vlgmr.msra.gmra.mrb[12].mxu1 %vm2270_vm9, %v3063_v14  ;;  %v3298_v14 = vld [vmem:[%s6676_s30 + $0x78] sm:$0xff] }
 0xde4   : > { %5529 = vmatprep.mubr.msk.f32.mxu1 %vm6299_vm10, %v6300_v17  ;;  %5718 = vmatpush3.bf16.msra.mxu1 %v5717_v31 }
 0xde5   : > { %5719 = vmatprep.subr.bf16.mxu1 %v6298_v24  ;;  %5730 = vmatpush3.bf16.msra.mxu0 %v5729_v61  ;;  %v3390_v61 = vsel (!%p5182_p1), %vm2270_vm9, %v6585_v0, 0.0 }
 0xde6   : > { %5731 = vmatprep.subr.bf16.mxu0 %v6298_v24 }
 0xde9   : > { %5733 = vmatpush3.bf16.msra.mxu0 %v5732_v3 }
 0xdea   : > { %5734 = vmatprep.subr.bf16.mxu0 %v6298_v24 }
 0xded   : > { %5736 = vmatpush3.bf16.msra.mxu0 %v5735_v5 }
 0xdee   : > { %5737 = vmatprep.subr.bf16.mxu0 %v6298_v24 }
 0xdf1   : > { %5739 = vmatpush3.bf16.msra.mxu0 %v5738_v8 }
 0xdf2   : > { %5740 = vmatprep.subr.bf16.mxu0 %v6298_v24 }
 0xdf5   : > { %5742 = vmatpush3.bf16.msra.mxu0 %v5741_v12  ;;  %v3429_v12 = vld [vmem:[%s7489_s28 + $0x8] sm:$0xff] (!%p5182_p1) }
 0xdf6   : > { %5743 = vmatprep.subr.bf16.mxu0 %v6298_v24 }
 0xeb6   : > { %v3144_v19 = vpop.f32.mrb[12].mxu1 }
 0xeb7   : > { %v3145_v20 = vadd.f32 %v5177_v16, %v3144_v19  ;;  %v5520_v21 = vpop.f32.mrb[13].mxu1  ;;  %v5744_v16 = vpack.c.bf16 %v3298_v14, %v3297_v13  ;;  %v5179_v19 = vld [vmem:[%s1184_s8] ss:$0 sm:$0xff]  ;;  %v3430_v13 = vld [vmem:[%s7489_s28 + $0x10] sm:$0xff] (!%p5182_p1)  ;;  %v5746_v14 = vpack.c.bf16 (!%p5182_p1), %v3429_v12, %v3428_v10 }
 0xeb9   : > { %v6990_v22 = vadd.f32 %v3145_v20, %v6838_v11  ;;  %v3174_v11 = vld [vmem:[%s6659_s0 + $0x10] sm:$0xff]  ;;  %5745 = vmatpush3.bf16.msra.mxu0 %v5744_v16  ;;  %v3431_v16 = vld [vmem:[%s7489_s28 + $0x18] sm:$0xff] (!%p5182_p1) }
 0xeba   : > { %v5720_v25 = vpack.c.bf16 %v3175_v36, %v3174_v11  ;;  %5747 = vmatprep.subr.bf16.mxu0 (!%p5182_p1), %v5746_v14 }
 0xebb   : > { %v3149_v23 = vsel %vm2270_vm9, %v6990_v22, 0.0 }
 0xebc   : > { %3150 = vadd.xlane.f32.xlu1 %v3149_v23  ;;  %5721 = vmatpush3.bf16.msra.mxu1 %v5720_v25 }
 0xf49   : > { %v3151_v26 = vpop.xlane.xlu1 %3150 }
 0xf4a   : > { %v3152_v18 = vmul.f32 0.03125, %v3151_v26 }
 0xf4c   : > { %v3153_v17 = vsub.f32 %v6990_v22, %v3152_v18 }
 0xf4e   : > { %v3154_v27 = vmul.f32 %v3153_v17, %v3153_v17 }
 0xf50   : > { %v3155_v15 = vsel %vm2270_vm9, %v3154_v27, 0.0 }
 0xf51   : > { %3156 = vadd.xlane.f32.xlu0 %v3155_v15 }
 0xf55   : > { %3391 = vadd.xlane.f32.xlu0 (!%p5182_p1), %v3390_v61 }
 0xf59   : > { %3394 = vadd.xlane.f32.xlu0 (!%p5182_p1), %v3393_v62 }
 0xfde   : > { %v3157_v37 = vpop.xlane.xlu0 %3156 }
 0xfdf   : > { %v3158_v38 = vmul.f32 0.03125, %v3157_v37 }
 0xfe1   : > { %v3159_v40 = vadd.f32 1e-05, %v3158_v38 }
 0xfe2   : > { %v3392_v63 = vpop.xlane.xlu0 (!%p5182_p1), %3391 }
 0xfe3   : > { %6033 = vrsqrt.f32 %v3159_v40 }
 0xfe6   : > { %v3395_v30 = vpop.xlane.xlu0 (!%p5182_p1), %3394 }
 0xfe7   : > { %v3397_v4 = vmul.f32 (!%p5182_p1), 0.03125, %v3395_v30 }
 0xfe9   : > { %v3399_v6 = vsub.f32 (!%p5182_p1), %v6587_v1, %v3397_v4 }
 0xfeb   : > { %v3401_v8 = vmul.f32 (!%p5182_p1), %v3399_v6, %v3399_v6 }
 0xfed   : > { %v6034_v49 = vpop.eup %6033  ;;  %v3405_v9 = vsel (!%p5182_p1), %vm2270_vm9, %v3401_v8, 0.0 }
 0xfee   : > { %v3161_v47 = vmul.f32 %v6034_v49, %v3153_v17 }
 0xff0   : > { %v3166_v42 = vmul.f32 %v3165_v46, %v3161_v47 }
 0xff2   : > { %v3171_v51 = vadd.f32 %v3170_v45, %v3166_v42  ;;  %v6309_v45 = vmov -1.0  }
 0xff4   : > { %5530 = vmatmul.mubr.msk.f32.vlgmr.msra.gmra.mrb[14].mxu1 %vm2270_vm9, %v3171_v51 }
0x10c7   : > { %v3252_v20 = vpop.f32.mrb[14].mxu1 }
0x10c8   : > { %v3253_v21 = vadd.f32 %v5179_v19, %v3252_v20  ;;  %v5531_v23 = vpop.f32.mrb[15].mxu1  ;;  %v5750_v19 = vpack.c.bf16 (!%p5182_p1), %v3431_v16, %v3430_v13 }
0x10ca   : > { %v3257_v26 = vmul.f32 0.70710677, %v3253_v21  ;;  %v3256_v52 = vmul.f32 0.5, %v3253_v21 }
0x10cc   : > { %v3260_v18 = vand.u32 2147483647, %v3257_v26  ;;  %vm3258_vm15 = vcmp.ge.f32.partialorder %v3257_v26, 0.0 }
0x10cd   : > { %v3259_v42 = vsel %vm3258_vm15, 1.0, %v6309_v45 }
0x10ce   : > { %v3261_v17 = vmul.f32 0.3275911, %v3260_v18  ;;  %v3274_v15 = vsub.f32 0.0, %v3260_v18 }
0x10d0   : > { %v3262_v27 = vadd.f32 1.0, %v3261_v17  ;;  %v3275_v24 = vmul.f32 %v3274_v15, %v3260_v18 }
0x10d2   : > { %6035 = vrcp.f32 %v3262_v27  ;;  %v3276_v11 = vmul.f32 1.442695, %v3275_v24  ;;  %v3419_v27 = vrot.slane (!%p5182_p1), %v6602_v2, %v2287_v33  ;;  %v3425_v24 = vrot.slane (!%p5182_p1), %v6602_v2, %v2292_v35 }
0x10d4   : > { %6037 = vpow2.f32 %v3276_v11 }
0x10dc   : > { %v6036_v28 = vpop.eup %6035 }
0x10dd   : > { %v3265_v29 = vmul.f32 1.0614054, %v6036_v28 }
0x10de   : > { %v6038_v46 = vpop.eup %6037 }
0x10df   : > { %v3266_v31 = vadd.f32 -1.4531521, %v3265_v29 }
0x10e1   : > { %v3267_v36 = vmul.f32 %v6036_v28, %v3266_v31 }
0x10e3   : > { %v3268_v25 = vadd.f32 1.4214138, %v3267_v36 }
0x10e5   : > { %v3269_v37 = vmul.f32 %v6036_v28, %v3268_v25 }
0x10e7   : > { %v3270_v38 = vadd.f32 -0.28449672, %v3269_v37 }
0x10e9   : > { %v3271_v40 = vmul.f32 %v6036_v28, %v3270_v38 }
0x10eb   : > { %v3272_v41 = vadd.f32 0.2548296, %v3271_v40 }
0x10ed   : > { %v3273_v44 = vmul.f32 %v6036_v28, %v3272_v41 }
0x10ef   : > { %v3278_v49 = vmul.f32 %v6038_v46, %v3273_v44 }
0x10f1   : > { %v3279_v47 = vsub.f32 1.0, %v3278_v49 }
0x10f3   : > { %v3280_v51 = vmul.f32 %v3279_v47, %v3259_v42 }
0x10f5   : > { %v3281_v55 = vadd.f32 1.0, %v3280_v51 }
0x10f7   : > { %v3282_v56 = vmul.f32 %v3281_v55, %v3256_v52 }
0x10f9   : > { %5565 = vmatmul.mubr.f32.vlgmr.msra.gmra.mrb[6].mxu0 %v3282_v56 }
0x10fa   : > { %5749 = vmatpush3.bf16.msra.mxu0 (!%p5182_p1), %v5746_v14 }
0x10fb   : > { %5751 = vmatprep.subr.bf16.mxu0 (!%p5182_p1), %v5750_v19 }
0x10fe   : > { %5753 = vmatpush3.bf16.msra.mxu0 (!%p5182_p1), %v5750_v19 }
0x11cb   : > { %3382 = sbr.rel (%p5182_p1) target bundleno = 7011 (0x1b63), region = 128 }
0x11cc   : > { %v3365_v57 = vpop.f32.mrb[6].mxu0 }
0x11cd   : > { %v3369_v59 = vadd.f32 %v3365_v57, %v6990_v22  ;;  %v5566_v34 = vpop.f32.mrb[7].mxu0  ;;  %v3396_v22 = vmul.f32 (!%p5182_p1), 0.03125, %v3392_v63 }
0x11cf   : > { %v3377_v60 = vadd.f32 %v5181_v58, %v3369_v59  ;;  %v3398_v3 = vsub.f32 (!%p5182_p1), %v6585_v0, %v3396_v22 }
0x11d1   : > { %3378 = vst.msk [vmem:[#allocation2] sm:$0xff] %vm2270_vm9, %v3377_v60  ;;  %v3400_v5 = vmul.f32 (!%p5182_p1), %v3398_v3, %v3398_v3 }
0x11d3   : > { %v3402_v7 = vsel %vm2270_vm9, %v3400_v5, 0.0 }
0x11d4   : > { %3403 = vadd.xlane.f32.xlu1 %v3402_v7  ;;  %v3513_v7 = vadd.s32 8, %v6856_v32 }
0x11d6   : > { %vm7106_vm1 = vcmp.gt.s32.totalorder %v6911_v48, %v3513_v7 }
0x11d8   : > { %3406 = vadd.xlane.f32.xlu1 %v3405_v9 }
0x1261   : > { %v3404_v20 = vpop.xlane.xlu1 %3403 }
0x1262   : > { %v3408_v21 = vmul.f32 0.03125, %v3404_v20 }
0x1264   : > { %v3410_v23 = vadd.f32 1e-05, %v3408_v21 }
0x1265   : > { %v3407_v26 = vpop.xlane.xlu1 %3406 }
0x1266   : > { %6079 = vrsqrt.f32 %v3410_v23  ;;  %v3409_v18 = vmul.f32 0.03125, %v3407_v26 }
0x1268   : > { %v3411_v17 = vadd.f32 1e-05, %v3409_v18 }
0x126a   : > { %6081 = vrsqrt.f32 %v3411_v17 }
0x1270   : > { %v6080_v15 = vpop.eup %6079 }
0x1271   : > { %v3414_v28 = vmul.f32 %v6080_v15, %v3398_v3 }
0x1273   : > { %v3420_v29 = vmul.f32 %v3419_v27, %v3414_v28 }
0x1274   : > { %v6082_v31 = vpop.eup %6081 }
0x1275   : > { %v3426_v11 = vadd.f32 %v3425_v24, %v3420_v29  ;;  %v3415_v36 = vmul.f32 %v6082_v31, %v3399_v6 }
0x1277   : > { %5575 = vmatprep.mubr.msk.f32.mxu0 %vm2270_vm9, %v3426_v11  ;;  %v3421_v25 = vmul.f32 %v3419_v27, %v3415_v36 }
0x1279   : > { %v3427_v37 = vadd.f32 %v3425_v24, %v3421_v25 }
0x127b   : > { %5576 = vmatmul.mubr.msk.f32.vlgmr.msra.gmra.mrb[0].mxu0 %vm2270_vm9, %v3427_v37 }
0x134e   : > { %v5577_v38 = vpop.f32.mrb[0].mxu0 }
0x134f   : > { %3519 = vrot.lane.b32.xlu1 %v5577_v38, %s6310_s25  ;;  %v3504_v33 = vpop.f32.mrb[1].mxu0 }
0x1350   : > { %3517 = vrot.lane.b32.xlu0 %v3504_v33, %s6310_s25  ;;  %5582 = vmatprep.mubr.msk.f32.mxu1 %vm2386_vm11, %v3504_v33  ;;  %v7063_v40 = vpack.i.bf16 %v5577_v38, %v3504_v33 }
0x1353   : > { %3523 = vrot.lane.b32.xlu1 %v5577_v38, %s6311_s5 }
0x1354   : > { %3525 = vrot.lane.b32.xlu0 %v3504_v33, %s6312_s19 }
0x1357   : > { %3521 = vrot.lane.b32.xlu1 %v3504_v33, %s6311_s5 }
0x1358   : > { %6040 = vrot.lane.b32.xlu0 %v7063_v40, %s6313_s17 }
0x135b   : > { %3527 = vrot.lane.b32.xlu1 %v5577_v38, %s6312_s19 }
0x13c1   : > { %v3520_v35 = vpop.permute.xlu1 %3519 }
0x13c2   : > { %v3518_v41 = vpop.permute.xlu0 %3517 }
0x13c3   : > { %v7066_v44 = vpack.i.bf16 %v3520_v35, %v3518_v41  ;;  %5589 = vmatprep.mubr.msk.f32.mxu0 %vm2386_vm11, %v3518_v41 }
0x13c5   : > { %v3524_v46 = vpop.permute.xlu1 %3523  ;;  %6045 = vrot.lane.b32.xlu1 %v7066_v44, %s6313_s17 }
0x13c6   : > { %v3526_v49 = vpop.permute.xlu0 %3525 }
0x13c9   : > { %v3522_v47 = vpop.permute.xlu1 %3521 }
0x13ca   : > { %v7070_v45 = vpack.i.bf16 %v3524_v46, %v3522_v47  ;;  %v6041_v42 = vpop.permute.xlu0 %6040 }
0x13cb   : > { %v6043_v51 = vunpack.i.h.bf16 %v6041_v42  ;;  %v6042_v52 = vunpack.i.l.bf16 %v6041_v42 }
0x13cc   : > { %6050 = vrot.lane.b32.xlu0 %v7070_v45, %s6313_s17 }
0x13cd   : > { %v3528_v56 = vpop.permute.xlu1 %3527  ;;  %v5754_v57 = vpack.c.bf16 %v6043_v51, %v6042_v52  ;;  %v3385_v51 = vstv %s3384_s12 }
0x13ce   : > { %v7079_v58 = vpack.i.bf16 %v3528_v56, %v3526_v49  ;;  %v3386_v52 = vmul.f32 %v3385_v51, %v6944_v43  ;;  %v3388_v43 = vmul.f32 %v3385_v51, %v6958_v54 }
0x13cf   : > { %5756 = vmatprep.subr.msk.bf16.mxu1 %vm7075_vm0, %v5754_v57 }
0x13d0   : > { %6055 = vrot.lane.b32.xlu1 %v7079_v58, %s6313_s17  ;;  %5759 = vmatpush3.bf16.xpose.msk.msra.mxu1 %vm7075_vm0, %v5754_v57  ;;  %5810 = vpush %v3386_v52 }
0x13d7   : > { %5583 = vmatmul.mubr.msk.f32.vlgmr.msra.gmra.mrb[0].mxu1 %vm2386_vm11, %v5577_v38 }
0x13d8   : > { %5596 = vmatprep.mubr.msk.f32.mxu1 %vm2386_vm11, %v3522_v47 }
0x1401   : > { %s5811_s13 = spop %5810 }
0x1437   : > { %v6046_v59 = vpop.permute.xlu1 %6045 }
0x1438   : > { %v6048_v34 = vunpack.i.h.bf16 %v6046_v59  ;;  %v6047_v60 = vunpack.i.l.bf16 %v6046_v59 }
0x143a   : > { %v5760_v61 = vpack.c.bf16 %v6048_v34, %v6047_v60 }
0x143c   : > { %5762 = vmatprep.subr.msk.bf16.mxu0 %vm7075_vm0, %v5760_v61 }
0x143d   : > { %5765 = vmatpush3.bf16.xpose.msk.msra.mxu0 %vm7075_vm0, %v5760_v61 }
0x143e   : > { %v6051_v62 = vpop.permute.xlu0 %6050 }
0x143f   : > { %v6053_v63 = vunpack.i.h.bf16 %v6051_v62  ;;  %v6052_v22 = vunpack.i.l.bf16 %v6051_v62 }
0x1441   : > { %v5766_v3 = vpack.c.bf16 %v6053_v63, %v6052_v22 }
0x1442   : > { %v6056_v30 = vpop.permute.xlu1 %6055 }
0x1443   : > { %v6058_v4 = vunpack.i.h.bf16 %v6056_v30  ;;  %v6057_v5 = vunpack.i.l.bf16 %v6056_v30  ;;  %5768 = vmatprep.subr.msk.bf16.mxu1 %vm7075_vm0, %v5766_v3  ;;  %v3389_v30 = vmul.f32 %v3385_v51, %v6965_v39 }
0x1444   : > { %5590 = vmatmul.mubr.msk.f32.vlgmr.msra.gmra.mrb[2].mxu0 %vm2386_vm11, %v3520_v35  ;;  %5771 = vmatpush3.bf16.xpose.msk.msra.mxu1 %vm7075_vm0, %v5766_v3  ;;  %v3387_v3 = vmul.f32 %v3385_v51, %v6951_v50 }
0x1445   : > { %v5772_v6 = vpack.c.bf16 %v6058_v4, %v6057_v5  ;;  %5603 = vmatprep.mubr.msk.f32.mxu0 %vm2386_vm11, %v3526_v49 }
0x1446   : > { %5812 = vpush %v3387_v3 }
0x1447   : > { %5774 = vmatprep.subr.msk.bf16.mxu0 %vm7075_vm0, %v5772_v6  ;;  %5814 = vpush %v3388_v43 }
0x1448   : > { %5777 = vmatpush3.bf16.xpose.msk.msra.mxu0 %vm7075_vm0, %v5772_v6  ;;  %5816 = vpush %v3389_v30 }
0x144b   : > { %5597 = vmatmul.mubr.msk.f32.vlgmr.msra.gmra.mrb[2].mxu1 %vm2386_vm11, %v3524_v46 }
0x144f   : > { %5604 = vmatmul.mubr.msk.f32.vlgmr.msra.gmra.mrb[4].mxu0 %vm2386_vm11, %v3528_v56 }
0x1477   : > { %s5813_s14 = spop %5812 }
0x1478   : > { %s5815_s1 = spop %5814 }
0x1479   : > { %s5817_s15 = spop %5816 }
0x14aa   : > { %v5584_v8 = vpop.f32.mrb[0].mxu1 }
0x14ab   : > { %v3878_v10 = vmul.f32 0.35355338, %v5584_v8  ;;  %v3607_v12 = vpop.f32.mrb[1].mxu1 }
0x14ac   : > { %v3877_v13 = vmul.f32 0.35355338, %v3607_v12 }
0x14ad   : > { %v3888_v14 = vsel %vm7106_vm1, -1e+09, %v3878_v10 }
0x14ae   : > { %v3887_v16 = vsel %vm6915_vm12, -1e+09, %v3877_v13  ;;  %v3898_v19 = vsel %vm3060_vm13, %v3888_v14, -inf }
0x14af   : > { %3899 = vmax.xlane.f32.xlu1 %v3898_v19  ;;  %v3895_v20 = vsel %vm3060_vm13, %v3887_v16, -inf }
0x14b0   : > { %3896 = vmax.xlane.f32.xlu0 %v3895_v20 }
0x1517   : > { %v5591_v21 = vpop.f32.mrb[2].mxu0 }
0x1518   : > { %v3880_v48 = vmul.f32 0.35355338, %v5591_v21  ;;  %v3694_v23 = vpop.f32.mrb[3].mxu0 }
0x1519   : > { %v3879_v26 = vmul.f32 0.35355338, %v3694_v23 }
0x151a   : > { %v3890_v18 = vsel %vm7106_vm1, -1e+09, %v3880_v48 }
0x151b   : > { %v3904_v17 = vsel %vm3060_vm13, %v3890_v18, -inf  ;;  %v3889_v27 = vsel %vm6915_vm12, -1e+09, %v3879_v26 }
0x151c   : > { %3905 = vmax.xlane.f32.xlu0 %v3904_v17  ;;  %v3901_v29 = vsel %vm3060_vm13, %v3889_v27, -inf }
0x151e   : > { %v5598_v15 = vpop.f32.mrb[2].mxu1 }
0x151f   : > { %v3882_v28 = vmul.f32 0.35355338, %v5598_v15  ;;  %v3781_v24 = vpop.f32.mrb[3].mxu1 }
0x1520   : > { %v3881_v31 = vmul.f32 0.35355338, %v3781_v24  ;;  %3902 = vmax.xlane.f32.xlu0 %v3901_v29 }
0x1521   : > { %v3892_v11 = vsel %vm7106_vm1, -1e+09, %v3882_v28 }
0x1522   : > { %v3891_v36 = vsel %vm6915_vm12, -1e+09, %v3881_v31  ;;  %v5605_v25 = vpop.f32.mrb[4].mxu0  ;;  %v3910_v37 = vsel %vm3060_vm13, %v3892_v11, -inf }
0x1523   : > { %v3884_v38 = vmul.f32 0.35355338, %v5605_v25  ;;  %v3868_v33 = vpop.f32.mrb[5].mxu0  ;;  %3911 = vmax.xlane.f32.xlu1 %v3910_v37  ;;  %v3907_v35 = vsel %vm3060_vm13, %v3891_v36, -inf }
0x1524   : > { %v3883_v41 = vmul.f32 0.35355338, %v3868_v33  ;;  %3908 = vmax.xlane.f32.xlu0 %v3907_v35  ;;  %v3983_v35 = vstv %s7135_s11 }
0x1525   : > { %v3894_v46 = vsel %vm7106_vm1, -1e+09, %v3884_v38 }
0x1526   : > { %v3893_v49 = vsel %vm6915_vm12, -1e+09, %v3883_v41  ;;  %v3916_v47 = vsel %vm3060_vm13, %v3894_v46, -inf }
0x1527   : > { %3917 = vmax.xlane.f32.xlu1 %v3916_v47  ;;  %v3913_v42 = vsel %vm3060_vm13, %v3893_v49, -inf  ;;  %v3994_v47 = vstv %s5811_s13 }
0x1528   : > { %3914 = vmax.xlane.f32.xlu0 %v3913_v42 }
0x153c   : > { %v3900_v55 = vpop.xlane.xlu1 %3899 }
0x153d   : > { %v3920_v56 = vsub.f32 %v3888_v14, %v3900_v55  ;;  %v3897_v57 = vpop.xlane.xlu0 %3896 }
0x153e   : > { %v3919_v59 = vsub.f32 %v3887_v16, %v3897_v57 }
0x153f   : > { %v3929_v34 = vmul.f32 1.442695, %v3920_v56 }
0x1540   : > { %v3927_v60 = vmul.f32 1.442695, %v3919_v59 }
0x1541   : > { %6083 = vpow2.f32 %v3929_v34 }
0x1542   : > { %6085 = vpow2.f32 %v3927_v60 }
0x154b   : > { %v6084_v61 = vpop.eup %6083 }
0x154c   : > { %v6086_v62 = vpop.eup %6085  ;;  %v3946_v63 = vsel %vm3060_vm13, %v6084_v61, 0.0 }
0x154d   : > { %3947 = vadd.xlane.f32.xlu1 %v3946_v63  ;;  %v3943_v22 = vsel %vm3060_vm13, %v6086_v62, 0.0 }
0x154e   : > { %3944 = vadd.xlane.f32.xlu0 %v3943_v22 }
0x15a9   : > { %v3906_v4 = vpop.xlane.xlu0 %3905 }
0x15aa   : > { %v3922_v5 = vsub.f32 %v3890_v18, %v3906_v4  ;;  %v3998_v4 = vstv %s5813_s14 }
0x15ac   : > { %v3933_v6 = vmul.f32 1.442695, %v3922_v5 }
0x15ad   : > { %v3903_v7 = vpop.xlane.xlu0 %3902 }
0x15ae   : > { %6087 = vpow2.f32 %v3933_v6  ;;  %v3921_v8 = vsub.f32 %v3889_v27, %v3903_v7 }
0x15b0   : > { %v3931_v10 = vmul.f32 1.442695, %v3921_v8  ;;  %v3912_v12 = vpop.xlane.xlu1 %3911 }
0x15b1   : > { %v3924_v13 = vsub.f32 %v3892_v11, %v3912_v12  ;;  %v3909_v14 = vpop.xlane.xlu0 %3908 }
0x15b2   : > { %6089 = vpow2.f32 %v3931_v10  ;;  %v3923_v16 = vsub.f32 %v3891_v36, %v3909_v14 }
0x15b3   : > { %v3937_v50 = vmul.f32 1.442695, %v3924_v13 }
0x15b4   : > { %v3935_v19 = vmul.f32 1.442695, %v3923_v16  ;;  %v3918_v54 = vpop.xlane.xlu1 %3917 }
0x15b5   : > { %6091 = vpow2.f32 %v3937_v50  ;;  %v3926_v39 = vsub.f32 %v3894_v46, %v3918_v54  ;;  %v3915_v20 = vpop.xlane.xlu0 %3914 }
0x15b6   : > { %6093 = vpow2.f32 %v3935_v19  ;;  %v3925_v21 = vsub.f32 %v3893_v49, %v3915_v20 }
0x15b7   : > { %v3941_v48 = vmul.f32 1.442695, %v3926_v39  ;;  %v4002_v39 = vstv %s5815_s1 }
0x15b8   : > { %v6088_v23 = vpop.eup %6087  ;;  %v3939_v26 = vmul.f32 1.442695, %v3925_v21 }
0x15b9   : > { %6095 = vpow2.f32 %v3941_v48  ;;  %v3952_v18 = vsel %vm3060_vm13, %v6088_v23, 0.0 }
0x15ba   : > { %6097 = vpow2.f32 %v3939_v26  ;;  %3953 = vadd.xlane.f32.xlu1 %v3952_v18 }
0x15bc   : > { %v6090_v17 = vpop.eup %6089 }
0x15bd   : > { %v3949_v27 = vsel %vm3060_vm13, %v6090_v17, 0.0 }
0x15be   : > { %3950 = vadd.xlane.f32.xlu0 %v3949_v27 }
0x15bf   : > { %v6092_v15 = vpop.eup %6091 }
0x15c0   : > { %v6094_v28 = vpop.eup %6093  ;;  %v3958_v24 = vsel %vm3060_vm13, %v6092_v15, 0.0 }
0x15c1   : > { %3959 = vadd.xlane.f32.xlu1 %v3958_v24  ;;  %v3955_v29 = vsel %vm3060_vm13, %v6094_v28, 0.0  ;;  %v4006_v24 = vstv %s5817_s15 }
0x15c2   : > { %3956 = vadd.xlane.f32.xlu0 %v3955_v29 }
0x15c3   : > { %v7148_v31 = vpop.eup %6095 }
0x15c4   : > { %v7150_v11 = vpop.eup %6097  ;;  %v3964_v36 = vsel %vm3060_vm13, %v7148_v31, 0.0 }
0x15c5   : > { %3965 = vadd.xlane.f32.xlu1 %v3964_v36  ;;  %v3961_v25 = vsel %vm3060_vm13, %v7150_v11, 0.0 }
0x15c6   : > { %3962 = vadd.xlane.f32.xlu0 %v3961_v25 }
0x15da   : > { %v3948_v37 = vpop.xlane.xlu1 %3947 }
0x15db   : > { %6099 = vrcp.f32 %v3948_v37  ;;  %v3945_v38 = vpop.xlane.xlu0 %3944 }
0x15dc   : > { %6101 = vrcp.f32 %v3945_v38 }
0x15e5   : > { %v6100_v33 = vpop.eup %6099 }
0x15e6   : > { %v6102_v41 = vpop.eup %6101  ;;  %v3970_v46 = vmul.f32 %v6100_v33, %v6084_v61 }
0x15e7   : > { %v3968_v49 = vmul.f32 %v6102_v41, %v6086_v62 }
0x15e8   : > { %v3985_v42 = vmul.f32 %v3983_v35, %v3970_v46 }
0x15e9   : > { %v3984_v51 = vmul.f32 %v3983_v35, %v3968_v49 }
0x15ea   : > { %v4009_v52 = vadd.f32 %v3994_v47, %v3985_v42 }
0x15eb   : > { %v4008_v55 = vadd.f32 %v3994_v47, %v3984_v51 }
0x15ec   : > { %v7159_v56 = vsel %vm7106_vm1, 0.0, %v4009_v52 }
0x15ed   : > { %v4027_v57 = vsel %vm3060_vm13, %v7159_v56, 0.0  ;;  %v7165_v59 = vsel %vm6915_vm12, 0.0, %v4008_v55 }
0x15ee   : > { %4028 = vadd.xlane.f32.xlu1 %v4027_v57  ;;  %v4024_v34 = vsel %vm3060_vm13, %v7165_v59, 0.0 }
0x15ef   : > { %4025 = vadd.xlane.f32.xlu0 %v4024_v34 }
0x1647   : > { %v3954_v60 = vpop.xlane.xlu1 %3953 }
0x1648   : > { %6103 = vrcp.f32 %v3954_v60 }
0x164b   : > { %v3951_v61 = vpop.xlane.xlu0 %3950 }
0x164c   : > { %6105 = vrcp.f32 %v3951_v61 }
0x164e   : > { %v3960_v62 = vpop.xlane.xlu1 %3959 }
0x164f   : > { %6107 = vrcp.f32 %v3960_v62  ;;  %v3957_v63 = vpop.xlane.xlu0 %3956 }
0x1650   : > { %6109 = vrcp.f32 %v3957_v63 }
0x1652   : > { %v6104_v22 = vpop.eup %6103  ;;  %v3966_v3 = vpop.xlane.xlu1 %3965 }
0x1653   : > { %6111 = vrcp.f32 %v3966_v3  ;;  %v3963_v43 = vpop.xlane.xlu0 %3962  ;;  %v3974_v30 = vmul.f32 %v6104_v22, %v6088_v23 }
0x1654   : > { %6113 = vrcp.f32 %v3963_v43 }
0x1655   : > { %v3987_v5 = vmul.f32 %v3983_v35, %v3974_v30 }
0x1656   : > { %v6106_v6 = vpop.eup %6105 }
0x1657   : > { %v3972_v7 = vmul.f32 %v6106_v6, %v6090_v17  ;;  %v4011_v8 = vadd.f32 %v3998_v4, %v3987_v5 }
0x1659   : > { %v6108_v10 = vpop.eup %6107  ;;  %v3986_v12 = vmul.f32 %v3983_v35, %v3972_v7  ;;  %v7171_v13 = vsel %vm7106_vm1, 0.0, %v4011_v8 }
0x165a   : > { %v6110_v14 = vpop.eup %6109  ;;  %v4033_v16 = vsel %vm3060_vm13, %v7171_v13, 0.0  ;;  %v3978_v50 = vmul.f32 %v6108_v10, %v6092_v15 }
0x165b   : > { %v4010_v19 = vadd.f32 %v3998_v4, %v3986_v12  ;;  %4034 = vadd.xlane.f32.xlu1 %v4033_v16  ;;  %v3976_v54 = vmul.f32 %v6110_v14, %v6094_v28 }
0x165c   : > { %v3989_v20 = vmul.f32 %v3983_v35, %v3978_v50 }
0x165d   : > { %v6112_v21 = vpop.eup %6111  ;;  %v3988_v48 = vmul.f32 %v3983_v35, %v3976_v54  ;;  %v7177_v23 = vsel %vm6915_vm12, 0.0, %v4010_v19 }
0x165e   : > { %v6114_v26 = vpop.eup %6113  ;;  %v4013_v18 = vadd.f32 %v4002_v39, %v3989_v20  ;;  %v4030_v17 = vsel %vm3060_vm13, %v7177_v23, 0.0  ;;  %v3982_v27 = vmul.f32 %v6112_v21, %v7148_v31 }
0x165f   : > { %v4012_v15 = vadd.f32 %v4002_v39, %v3988_v48  ;;  %4031 = vadd.xlane.f32.xlu0 %v4030_v17  ;;  %v3980_v28 = vmul.f32 %v6114_v26, %v7150_v11 }
0x1660   : > { %v3991_v29 = vmul.f32 %v3983_v35, %v3982_v27  ;;  %v7185_v36 = vsel %vm7106_vm1, 0.0, %v4013_v18 }
0x1661   : > { %v3990_v25 = vmul.f32 %v3983_v35, %v3980_v28  ;;  %v4039_v37 = vsel %vm3060_vm13, %v7185_v36, 0.0  ;;  %v4020_v38 = vsel %vm6915_vm12, 0.0, %v4012_v15 }
0x1662   : > { %v4015_v33 = vadd.f32 %v4006_v24, %v3991_v29  ;;  %4040 = vadd.xlane.f32.xlu1 %v4039_v37  ;;  %v4036_v31 = vsel %vm3060_vm13, %v4020_v38, 0.0 }
0x1663   : > { %v4014_v41 = vadd.f32 %v4006_v24, %v3990_v25  ;;  %4037 = vadd.xlane.f32.xlu0 %v4036_v31  ;;  %v4451_v25 = vld [vmem:[%s7495_s7 + $0x8] sm:$0xff] }
0x1664   : > { %v7194_v11 = vsel %vm7106_vm1, 0.0, %v4015_v33 }
0x1665   : > { %v7198_v46 = vsel %vm6915_vm12, 0.0, %v4014_v41  ;;  %v4045_v35 = vsel %vm3060_vm13, %v7194_v11, 0.0 }
0x1666   : > { %4046 = vadd.xlane.f32.xlu1 %v4045_v35  ;;  %v4042_v49 = vsel %vm3060_vm13, %v7198_v46, 0.0 }
0x1667   : > { %4043 = vadd.xlane.f32.xlu0 %v4042_v49 }
0x1677   : > { %6065 = vrot.lane.b32.xlu1 %v7066_v44, %s6314_s20 }
0x167b   : > { %6070 = vrot.lane.b32.xlu1 %v7070_v45, %s6314_s20  ;;  %v4029_v51 = vpop.xlane.xlu1 %4028 }
0x167c   : > { %v4026_v9 = vpop.xlane.xlu0 %4025  ;;  %v4049_v57 = vadd.f32 1e-09, %v4029_v51 }
0x167d   : > { %v4048_v47 = vadd.f32 1e-09, %v4026_v9  ;;  %6060 = vrot.lane.b32.xlu0 %v7063_v40, %s6314_s20 }
0x167f   : > { %6115 = vrcp.f32 %v4048_v47  ;;  %6075 = vrot.lane.b32.xlu1 %v7079_v58, %s6314_s20 }
0x1680   : > { %6117 = vrcp.f32 %v4049_v57 }
0x1689   : > { %v6116_v53 = vpop.eup %6115 }
0x168a   : > { %v4057_v42 = vmul.f32 %v6116_v53, %v7165_v59  ;;  %v6118_v6 = vpop.eup %6117 }
0x168b   : > { %v4059_v21 = vmul.f32 %v6118_v6, %v7159_v56 }
0x168c   : > { %5610 = vmatprep.mubr.msk.f32.mxu1 %vm3060_vm13, %v4057_v42 }
0x16e8   : > { %v4035_v52 = vpop.xlane.xlu1 %4034 }
0x16e9   : > { %v4051_v62 = vadd.f32 1e-09, %v4035_v52 }
0x16ec   : > { %v4032_v55 = vpop.xlane.xlu0 %4031 }
0x16ed   : > { %v4050_v34 = vadd.f32 1e-09, %v4032_v55 }
0x16ef   : > { %v4041_v44 = vpop.xlane.xlu1 %4040  ;;  %6119 = vrcp.f32 %v4050_v34 }
0x16f0   : > { %v4038_v60 = vpop.xlane.xlu0 %4037  ;;  %v4053_v45 = vadd.f32 1e-09, %v4041_v44 }
0x16f1   : > { %v4052_v61 = vadd.f32 1e-09, %v4038_v60 }
0x16f3   : > { %6121 = vrcp.f32 %v4052_v61  ;;  %v4047_v40 = vpop.xlane.xlu1 %4046 }
0x16f4   : > { %v4044_v58 = vpop.xlane.xlu0 %4043  ;;  %6123 = vrcp.f32 %v4053_v45  ;;  %v4055_v59 = vadd.f32 1e-09, %v4047_v40  ;;  %v5209_v40 = vld [vmem:[%s1213_s21] ss:$0 sm:$0xff] }
0x16f5   : > { %v4054_v63 = vadd.f32 1e-09, %v4044_v58  ;;  %6125 = vrcp.f32 %v4051_v62 }
0x16f7   : > { %6127 = vrcp.f32 %v4054_v63  ;;  %v6066_v22 = vpop.permute.xlu1 %6065 }
0x16f8   : > { %v6061_v3 = vpop.permute.xlu0 %6060  ;;  %v6068_v43 = vunpack.i.h.bf16 %v6066_v22  ;;  %v6067_v30 = vunpack.i.l.bf16 %v6066_v22  ;;  %6129 = vrcp.f32 %v4055_v59 }
0x16f9   : > { %v6063_v4 = vunpack.i.h.bf16 %v6061_v3  ;;  %v6062_v5 = vunpack.i.l.bf16 %v6061_v3  ;;  %v6120_v10 = vpop.eup %6119 }
0x16fa   : > { %v5782_v50 = vpack.c.bf16 %v6068_v43, %v6067_v30  ;;  %v4061_v17 = vmul.f32 %v6120_v10, %v7177_v23 }
0x16fb   : > { %v5778_v7 = vpack.c.bf16 %v6063_v4, %v6062_v5  ;;  %v6071_v8 = vpop.permute.xlu1 %6070 }
0x16fc   : > { %v6073_v12 = vunpack.i.h.bf16 %v6071_v8  ;;  %v6072_v14 = vunpack.i.l.bf16 %v6071_v8 }
0x16fd   : > { %v6122_v16 = vpop.eup %6121  ;;  %5779 = vmatprep.subr.bf16.mxu1 %v5778_v7 }
0x16fe   : > { %v5786_v19 = vpack.c.bf16 %v6073_v12, %v6072_v14  ;;  %5781 = vmatpush3.bf16.msra.mxu1 %v5778_v7  ;;  %v4065_v54 = vmul.f32 %v6122_v16, %v4020_v38  ;;  %v6124_v39 = vpop.eup %6123  ;;  %v4453_v38 = vld [vmem:[%s7495_s7 + $0x18] sm:$0xff] }
0x16ff   : > { %v6076_v20 = vpop.permute.xlu1 %6075  ;;  %5783 = vmatprep.subr.bf16.mxu1 %v5782_v50  ;;  %v6126_v48 = vpop.eup %6125  ;;  %v4067_v56 = vmul.f32 %v6124_v39, %v7185_v36  ;;  %v4450_v36 = vld [vmem:[%s7495_s7] sm:$0xff] }
0x1700   : > { %v6078_v26 = vunpack.i.h.bf16 %v6076_v20  ;;  %v6077_v18 = vunpack.i.l.bf16 %v6076_v20  ;;  %5787 = vmatprep.subr.bf16.mxu0 %v5786_v19  ;;  %5624 = vmatprep.mubr.msk.f32.mxu0 %vm3060_vm13, %v4065_v54  ;;  %v4063_v28 = vmul.f32 %v6126_v48, %v7171_v13  ;;  %v5794_v37 = vpack.c.bf16 %v4451_v25, %v4450_v36  ;;  %v4452_v13 = vld [vmem:[%s7495_s7 + $0x10] sm:$0xff]  ;;  %v4583_v20 = vld [vmem:[%s6681_s10 + $0x18] sm:$0xff] }
0x1701   : > { %v6128_v27 = vpop.eup %6127  ;;  %5611 = vmatmul.mubr.msk.f32.vlgmr.msra.gmra.mrb[4].mxu1 %vm3060_vm13, %v4059_v21  ;;  %5789 = vmatpush3.bf16.msra.mxu0 %v5786_v19  ;;  %v5798_v33 = vpack.c.bf16 %v4453_v38, %v4452_v13  ;;  %v4581_v19 = vld [vmem:[%s6681_s10 + $0x8] sm:$0xff]  ;;  %v4582_v54 = vld [vmem:[%s6681_s10 + $0x10] sm:$0xff] }
0x1702   : > { %v5790_v15 = vpack.c.bf16 %v6078_v26, %v6077_v18  ;;  %5785 = vmatpush3.bf16.msra.mxu1 %v5782_v50  ;;  %5617 = vmatprep.mubr.msk.f32.mxu1 %vm3060_vm13, %v4061_v17  ;;  %v6130_v24 = vpop.eup %6129  ;;  %v4069_v23 = vmul.f32 %v6128_v27, %v7198_v46  ;;  %v4580_v50 = vld [vmem:[%s6681_s10] sm:$0xff]  ;;  %v5806_v21 = vpack.c.bf16 %v4583_v20, %v4582_v54 }
0x1703   : > { %v4071_v29 = vmul.f32 %v6130_v24, %v7194_v11  ;;  %5795 = vmatprep.subr.bf16.mxu0 %v5794_v37  ;;  %v5802_v39 = vpack.c.bf16 %v4581_v19, %v4580_v50 }
0x1704   : > { %5625 = vmatmul.mubr.msk.f32.vlgmr.msra.gmra.mrb[6].mxu0 %vm3060_vm13, %v4067_v56  ;;  %5791 = vmatprep.subr.bf16.mxu1 %v5790_v15  ;;  %v4570_v56 = vsub.s32 4, %v6856_v32 }
0x1705   : > { %5618 = vmatmul.mubr.msk.f32.vlgmr.msra.gmra.mrb[6].mxu1 %vm3060_vm13, %v4063_v28  ;;  %5797 = vmatpush3.bf16.msra.mxu0 %v5794_v37  ;;  %v4576_v28 = vsub.s32 5, %v6856_v32  ;;  %v5212_v32 = vld [vmem:[%s1221_s26] ss:$0 sm:$0xff] }
0x1706   : > { %5793 = vmatpush3.bf16.msra.mxu1 %v5790_v15  ;;  %5631 = vmatprep.mubr.msk.f32.mxu1 %vm3060_vm13, %v4069_v23  ;;  %v4571_v24 = vrot.slane %v6602_v2, %v4570_v56 }
0x1707   : > { %5799 = vmatprep.subr.bf16.mxu0 %v5798_v33  ;;  %5803 = vmatprep.subr.bf16.mxu1 %v5802_v39  ;;  %v4577_v36 = vrot.slane %v6602_v2, %v4576_v28 }
0x1709   : > { %5632 = vmatmul.mubr.msk.f32.vlgmr.msra.gmra.mrb[8].mxu1 %vm3060_vm13, %v4071_v29  ;;  %5801 = vmatpush3.bf16.msra.mxu0 %v5798_v33 }
0x170a   : > { %5805 = vmatpush3.bf16.msra.mxu1 %v5802_v39 }
0x170b   : > { %5807 = vmatprep.subr.bf16.mxu1 %v5806_v21 }
0x170e   : > { %5809 = vmatpush3.bf16.msra.mxu1 %v5806_v21 }
0x17d4   : > { %v5612_v31 = vpop.f32.mrb[4].mxu1 }
0x17d5   : > { %v4150_v41 = vpop.f32.mrb[5].mxu1 }
0x17d7   : > { %v5626_v46 = vpop.f32.mrb[6].mxu0 }
0x17d8   : > { %v5619_v35 = vpop.f32.mrb[6].mxu1  ;;  %v4324_v49 = vpop.f32.mrb[7].mxu0 }
0x17d9   : > { %4424 = vrot.lane.b32.xlu1 %v5619_v35, %s6315_s2  ;;  %v4237_v11 = vpop.f32.mrb[7].mxu1 }
0x17da   : > { %4422 = vrot.lane.b32.xlu0 %v4237_v11, %s6315_s2 }
0x17dc   : > { %v5633_v9 = vpop.f32.mrb[8].mxu1 }
0x17dd   : > { %4432 = vrot.lane.b32.xlu1 %v5626_v46, %s6316_s3  ;;  %v4411_v47 = vpop.f32.mrb[9].mxu1 }
0x17de   : > { %4430 = vrot.lane.b32.xlu0 %v4324_v49, %s6316_s3 }
0x17e1   : > { %4440 = vrot.lane.b32.xlu1 %v5633_v9, %s6317_s27 }
0x17e2   : > { %4438 = vrot.lane.b32.xlu0 %v4411_v47, %s6317_s27 }
0x184b   : > { %v4425_v53 = vpop.permute.xlu1 %4424 }
0x184c   : > { %v4423_v42 = vpop.permute.xlu0 %4422  ;;  %v4445_v34 = vsel %vm2386_vm11, %v5612_v31, %v4425_v53 }
0x184d   : > { %v4444_v55 = vsel %vm2386_vm11, %v4150_v41, %v4423_v42 }
0x184f   : > { %v4433_v51 = vpop.permute.xlu1 %4432 }
0x1850   : > { %v4431_v52 = vpop.permute.xlu0 %4430  ;;  %v4447_v45 = vsel %vm3060_vm13, %v4445_v34, %v4433_v51 }
0x1851   : > { %v4446_v44 = vsel %vm3060_vm13, %v4444_v55, %v4431_v52 }
0x1853   : > { %v4441_v57 = vpop.permute.xlu1 %4440 }
0x1854   : > { %v4439_v60 = vpop.permute.xlu0 %4438  ;;  %v4449_v62 = vsel %vm3062_vm14, %v4447_v45, %v4441_v57 }
0x1855   : > { %v4448_v61 = vsel %vm3062_vm14, %v4446_v44, %v4439_v60 }
0x1856   : > { %5642 = vmatprep.mubr.msk.f32.mxu0 %vm2270_vm9, %v4448_v61 }
0x1857   : > { %5643 = vmatmul.mubr.msk.f32.vlgmr.msra.gmra.mrb[8].mxu0 %vm2270_vm9, %v4449_v62 }
0x192a   : > { %v5644_v58 = vpop.f32.mrb[8].mxu0 }
0x192b   : > { %v4539_v63 = vadd.f32 %v5644_v58, %v5209_v40  ;;  %v4533_v59 = vpop.f32.mrb[9].mxu0 }
0x192c   : > { %v4534_v22 = vadd.f32 %v5209_v40, %v4533_v59 }
0x192d   : > { %v4545_v3 = vsel %vm2270_vm9, %v4539_v63, 0.0 }
0x192e   : > { %4546 = vadd.xlane.f32.xlu1 %v4545_v3  ;;  %v4542_v43 = vsel %vm2270_vm9, %v4534_v22, 0.0 }
0x192f   : > { %4543 = vadd.xlane.f32.xlu0 %v4542_v43 }
0x19bb   : > { %v4547_v30 = vpop.xlane.xlu1 %4546 }
0x19bc   : > { %v4549_v4 = vmul.f32 0.03125, %v4547_v30  ;;  %v4544_v5 = vpop.xlane.xlu0 %4543 }
0x19bd   : > { %v4548_v6 = vmul.f32 0.03125, %v4544_v5 }
0x19be   : > { %v4551_v7 = vsub.f32 %v4539_v63, %v4549_v4 }
0x19bf   : > { %v4550_v8 = vsub.f32 %v4534_v22, %v4548_v6 }
0x19c0   : > { %v4553_v14 = vmul.f32 %v4551_v7, %v4551_v7 }
0x19c1   : > { %v4552_v10 = vmul.f32 %v4550_v8, %v4550_v8 }
0x19c2   : > { %v4557_v16 = vsel %vm2270_vm9, %v4553_v14, 0.0 }
0x19c3   : > { %v4554_v12 = vsel %vm2270_vm9, %v4552_v10, 0.0 }
0x19c4   : > { %4555 = vadd.xlane.f32.xlu0 %v4554_v12 }
0x19c8   : > { %4558 = vadd.xlane.f32.xlu0 %v4557_v16 }
0x1a51   : > { %v4556_v48 = vpop.xlane.xlu0 %4555 }
0x1a52   : > { %v4560_v26 = vmul.f32 0.03125, %v4556_v48 }
0x1a54   : > { %v4562_v18 = vadd.f32 1e-05, %v4560_v26 }
0x1a55   : > { %v4559_v17 = vpop.xlane.xlu0 %4558 }
0x1a56   : > { %6131 = vrsqrt.f32 %v4562_v18  ;;  %v4561_v27 = vmul.f32 0.03125, %v4559_v17 }
0x1a58   : > { %v4563_v15 = vadd.f32 1e-05, %v4561_v27 }
0x1a5a   : > { %6133 = vrsqrt.f32 %v4563_v15 }
0x1a60   : > { %v6132_v23 = vpop.eup %6131 }
0x1a61   : > { %v4566_v29 = vmul.f32 %v6132_v23, %v4550_v8 }
0x1a63   : > { %v4572_v25 = vmul.f32 %v4571_v24, %v4566_v29 }
0x1a64   : > { %v6134_v37 = vpop.eup %6133 }
0x1a65   : > { %v4578_v13 = vadd.f32 %v4577_v36, %v4572_v25  ;;  %v4567_v38 = vmul.f32 %v6134_v37, %v4551_v7 }
0x1a67   : > { %5653 = vmatprep.mubr.msk.f32.mxu1 %vm2270_vm9, %v4578_v13  ;;  %v4573_v33 = vmul.f32 %v4571_v24, %v4567_v38 }
0x1a69   : > { %v4579_v31 = vadd.f32 %v4577_v36, %v4573_v33 }
0x1a6b   : > { %5654 = vmatmul.mubr.msk.f32.vlgmr.msra.gmra.mrb[10].mxu1 %vm2270_vm9, %v4579_v31 }
0x1b3c   : > { %4677 = sbr.rel (%p5215_p3) target bundleno = 6981 (0x1b45), region = 132 }
0x1b3e   : > { %v5655_v41 = vpop.f32.mrb[10].mxu1 }
0x1b3f   : > { %v4669_v46 = vadd.f32 %v5655_v41, %v5212_v32  ;;  %v4663_v35 = vpop.f32.mrb[11].mxu1 }
0x1b40   : > { %v4664_v49 = vadd.f32 %v5212_v32, %v4663_v35 }
0x1b41   : > { %v4673_v2 = vadd.f32 %v4669_v46, %v6587_v1 }
0x1b42   : > { %v4672_v11 = vadd.f32 %v4664_v49, %v6585_v0 }
0x1b43   : > { %4679 = vst.msk [vmem:[#allocation3 + $0x8] sm:$0xff] %vm2270_vm9, %v4673_v2 }
0x1b44   : > { %4678 = vst.msk [vmem:[#allocation3] sm:$0xff] %vm2270_vm9, %v4672_v11 }
0x1b45 PF: > { %s7498_s4 = sld [smem:[#allocation16_spill]] }
0x1b4b   : > { %p5216_p9 = scmp.le.s32.totalorder %s7498_s4, 0 }
0x1b4c   : > { %v4684_v9 = vld [vmem:[#allocation3] sm:$0xff] (!%p5216_p9)  ;;  %v4685_v47 = vld [vmem:[#allocation3 + $0x8] sm:$0xff] (!%p5216_p9) }
0x1b4d   : > { %4683 = sbr.rel (%p5216_p9) target bundleno = 6996 (0x1b54), region = 136  ;;  %v4686_v53 = vadd.f32 (!%p5216_p9), %v4684_v9, %v4672_v11  ;;  %v4687_v42 = vadd.f32 (!%p5216_p9), %v4685_v47, %v4673_v2 }
0x1b4f   : > { %4688 = vst.msk [vmem:[#allocation3] sm:$0xff] (!%p5216_p9), %vm2270_vm9, %v4686_v53  ;;  %4689 = vst.msk [vmem:[#allocation3 + $0x8] sm:$0xff] (!%p5216_p9), %vm2270_vm9, %v4687_v42 }
0x1b54 PF: > { %s7499_s23 = sld [smem:[#allocation16_spill]] }
0x1b5a   : > { %p5217_p10 = scmp.ne.s32.totalorder %s7499_s23, 1 }
0x1b5b   : > { %v4694_v51 = vld [vmem:[#allocation3] sm:$0xff] (!%p5217_p10)  ;;  %v4695_v52 = vld [vmem:[#allocation3 + $0x8] sm:$0xff] (!%p5217_p10) }
0x1b5c   : > { %4693 = sbr.rel (%p5217_p10) target bundleno = 7011 (0x1b63), region = 140  ;;  %v4696_v55 = vadd.f32 (!%p5217_p10), %v4694_v51, %v6585_v0  ;;  %v4697_v57 = vadd.f32 (!%p5217_p10), %v4695_v52, %v6587_v1 }
0x1b5e   : > { %4698 = vst.msk [vmem:[%s6688_s29] sm:$0xff] (!%p5217_p10), %vm2270_vm9, %v4696_v55  ;;  %4699 = vst.msk [vmem:[%s6688_s29 + $0x8] sm:$0xff] (!%p5217_p10), %vm2270_vm9, %v4697_v57 }
0x1b63 PF: > { %s7500_s26 = sld [smem:[#allocation17_spill]]  ;;  %s7501_s8 = sld [smem:[#allocation14_spill]] }
0x1b64   : > { %s7502_s30 = sld [smem:[#allocation23_spill]]  ;;  %s7503_s5 = sld [smem:[#allocation58_spill]] }
0x1b65   : > { %s4714_s24 = sshll.u32 %s6688_s29, 4  ;;  %s6318_s14 = smov [#allocation9]   ;;  %s7281_s24 = int_to_ptr.vmem [resolvable:$true] %s4714_s24 }
0x1b66   : > { %s6165_s13 = scalar_lea.vmem %s7281_s24, 256  ;;  %s6169_s1 = sshll.u32 %s6318_s14, 4  ;;  %s6170_s1 = int_to_ptr.vmem [resolvable:$false] %s6169_s1 }
0x1b67   : > { %p6166_p13 = scmp.ne.s32.totalorder %s7281_s24, %s6165_s13  ;;  %s6171_s15 = scalar_lea.vmem %s6170_s1, 512 }
0x1b68   : > { %p6172_p5 = scmp.lt.s32.totalorder %s7281_s24, %s6170_s1  ;;  %p6173_p7 = scmp.lt.s32.totalorder %s6171_s15, %s6165_s13 }
0x1b69   : > { %s5231_s22 = sshll.u32 %s7500_s26, 8  ;;  %s7505_s11 = sand.u32 1, %s7501_s8  }
0x1b6a   : > { %s7504_s19 = smov %s7503_s5  ;;  %s7278_s17 = scalar_lea.hbm %s7503_s5, %s5231_s22 }
0x1b6b   : > { %s7285_s12 = scalar_lea.sflag [#allocation5], %s7505_s11  ;;  %p7506_p0 = scmp.ne.s32.totalorder %s7502_s30, 0 }
0x1b6c   : > { %p6174_p6 = por %p6173_p7, %p6172_p5 }
0x1b6d   : > { %p6167_p2 = pnand %p6166_p13, %p7506_p0 }
0x1b6f   : > { %p6168_p4 = pneg %p6167_p2 }
0x1b71   : > { %p6175_p8 = pnand %p6174_p6, %p6168_p4 }
0x1b73   : > { %6178 = shalt.err (!%p6175_p8)
}
0x1b74   : > { %s6179_s29 = scalar_lea.hbm %s7278_s17, 256  ;;  %s6183_s2 = scalar_lea.hbm %s7504_s19, 512 }
0x1b75   : > { %p6180_p11 = scmp.ne.s32.totalorder %s7278_s17, %s6179_s29  ;;  %p6184_p3 = scmp.lt.u32.totalorder %s7278_s17, %s7504_s19 }
0x1b76   : > { %p6185_p9 = scmp.lt.u32.totalorder %s6183_s2, %s6179_s29  ;;  %p6187_p13 = scmp.lt.u32.totalorder %s6179_s29, %s7278_s17 }
0x1b77   : > { %p6181_p12 = pnand %p6180_p11, %p7506_p0 }
0x1b78   : > { %p6186_p10 = por %p6185_p9, %p6184_p3 }
0x1b79   : > { %p6182_p1 = pneg %p6181_p12 }
0x1b7a   : > { %p6188_p2 = por %p6187_p13, %p6186_p10 }
0x1b7c   : > { %p6189_p4 = pnand %p6188_p2, %p6182_p1 }
0x1b7e   : > { %6192 = shalt.err (!%p6189_p4)
}
0x1b7f   : > { %s6319_s18 = smov 128  }
0x1b80   : > { %5826 = dma.vmem_to_hbm [thread:$0]  (%p7506_p0), %s7281_s24, 256, %s7278_s17, %s7285_s12, %s6319_s18, %s6319_s18, %s6306_s16  }
0x1b81 PF: > { %s7507_s9 = sld [smem:[#allocation21_spill]]  ;;  %s7508_s0 = sld [smem:[#allocation13_spill]] }
0x1b82   : > { %s7509_s21 = sld [smem:[#allocation25_spill]] }
0x1b87   : > { %p5843_p5 = scmp.ge.s32.totalorder %s7507_s9, 2  ;;  %s4729_s10 = sand.u32 1, %s7508_s0  }
0x1b88   : > { %p7510_p7 = scmp.ne.s32.totalorder %s7509_s21, 0  ;;  %s4730_s6 = scalar_lea.sflag [#allocation5], %s4729_s10 }
0x1b8a   : > { %p5836_p6 = pnand %p5843_p5, %p7510_p7 }
0x1b8c   : > { %6242 = dma.done.wait (!%p5836_p6), %s4730_s6, 256  }
0x1b8d   : > { %6244 = vsyncadd (!%p5836_p6), %s4730_s6, 4294967040  ;;  %s38_s27 = sadd.s32 1, %s7507_s9   ;;  %s7511_s4 = sld [smem:[#allocation14_spill]] }
0x1b8e   : > { %p35_p8 = scmp.ge.s32.totalorder %s38_s27, 10   ;;  %s7512_s30 = sld [smem:[#allocation15_spill]] }
0x1b8f   : > { %s7513_s24 = sld [smem:[#allocation27_spill]]  ;;  %s7514_s25 = sld [smem:[#allocation18_spill]] }
0x1b90   : > { %s7515_s5 = sld [smem:[#allocation19_spill]]  ;;  %s7516_s1 = sld [smem:[#allocation20_spill]] }
0x1b91   : > { %s7517_s26 = sld [smem:[#allocation22_spill]]  ;;  %s7518_s2 = sld [smem:[#allocation24_spill]] }
0x1b92   : > { %s7519_s6 = sld [smem:[#allocation26_spill]]  ;;  %37 = sbr.rel (!%p35_p8) target bundleno = 33 (0x21), region = 236 }
0x1b99   :  { %4735 = vsyncpa [#allocation5], 1 }
0x1b9a   :  { %4737 = vsyncpa [#allocation5 + $0x1], 1 }
0x1b9b   :  { %4738 = vsyncpa [#allocation6], 1 }
0x1b9c   :  { %4740 = vsyncpa [#allocation6 + $0x1], 1 }
0x1b9d   :  { %4741 = vsyncpa [#allocation8], 1 }

</bundles_post_ra>
